<compile_context>
chip_gen: v7x
topology: tpu7x:2x2x1
jax: 0.10.0
libtpu: 0.0.40
codegen_flags: <defaults>
</compile_context>

<pallas_src>
import functools
import math

import jax
import jax.numpy as jnp
from jax.experimental import pallas as pl
from jax.experimental.pallas import tpu as pltpu


# --------------------------- hardware-aware config ----------------------------

@functools.lru_cache(maxsize=None)
def _vmem_limit_bytes():
    """~85% of physical VMEM (leaves compiler headroom for scratch/sems/spill).
    v7x: ~54 MiB, v5e/v6e: ~108 MiB.  Falls back to the previously-proven
    64 MiB if the hardware query is unavailable."""
    try:
        cap = pltpu.get_tpu_info().vmem_capacity_bytes
        return int(cap * 0.85)
    except Exception:
        return 64 * 1024 * 1024


@functools.lru_cache(maxsize=None)
def _weight_pipeline_mode():
    """Single-buffer constant-index weight blocks (pl.Buffered(1)); constant
    block indices make the second pipeline buffer pure waste.  Probed once with
    a tiny kernel; returns None (default double-buffering) if this JAX/Mosaic
    build rejects buffer_count=1."""
    try:
        mode = pl.Buffered(1)

        def probe_kernel(w_ref, x_ref, o_ref):
            o_ref[0] = x_ref[0] + w_ref[...]

        x = jnp.zeros((2, 8, 128), jnp.float32)
        w = jnp.ones((8, 128), jnp.float32)
        out = pl.pallas_call(
            probe_kernel,
            out_shape=jax.ShapeDtypeStruct((2, 8, 128), jnp.float32),
            grid=(2,),
            in_specs=[
                pl.BlockSpec((8, 128), lambda i: (0, 0), pipeline_mode=mode),
                pl.BlockSpec((1, 8, 128), lambda i: (i, 0, 0)),
            ],
            out_specs=pl.BlockSpec((1, 8, 128), lambda i: (i, 0, 0)),
        )(w, x)
        jax.block_until_ready(out)
        return mode
    except Exception:
        return None


def _pick_tile(n, preferred):
    for t in preferred:
        if n >= t and n % t == 0:
            return t
    return n


# ----------------------------- in-kernel helpers -----------------------------

def _layer_norm(x, gamma, beta, eps=1e-12):
    # biased variance (matches the reference LayerNorm, eps=1e-12); rsqrt -> EUP
    mean = jnp.mean(x, axis=-1, keepdims=True)
    var = jnp.mean((x - mean) ** 2, axis=-1, keepdims=True)
    out = (x - mean) * jax.lax.rsqrt(var + eps)
    return gamma * out + beta


def _attend(q, k, v, bias, n_head):
    """Scaled dot-product attention over cached K/V, all heads batched.

    q: (Lq, D) f32 (already projected); k, v: (Lk, D) bf16 (cached, bias
    folded in); bias: (Lq, Lk) f32 additive mask.  Returns (Lq, D) f32.
    """
    Lq, D = q.shape
    Lk = k.shape[0]
    d_t = D // n_head
    scale = 1.0 / math.sqrt(d_t)

    # Split heads: (L, D) -> (H, L, d_t).  d_t < 128 on lanes is inherent to
    # the module's n_head; keep one batched einsum per matmul for all heads.
    qh = q.reshape(Lq, n_head, d_t).transpose(1, 0, 2).astype(jnp.bfloat16)
    kh = k.reshape(Lk, n_head, d_t).transpose(1, 0, 2)
    vh = v.reshape(Lk, n_head, d_t).transpose(1, 0, 2)

    s = jnp.einsum('hqd,hkd->hqk', qh, kh,
                   preferred_element_type=jnp.float32) * scale
    s = s + bias[None, :, :]                 # additive mask (0 / -10000)

    # Softmax in f32; approx reciprocal runs on the EUP (~1e-4 rel. error).
    s = s - jnp.max(s, axis=-1, keepdims=True)
    e = jnp.exp(s)
    p = e * pl.reciprocal(jnp.sum(e, axis=-1, keepdims=True), approx=True)

    ctx = jnp.einsum('hqk,hkd->hqd', p.astype(jnp.bfloat16), vh,
                     preferred_element_type=jnp.float32)
    return ctx.transpose(1, 0, 2).reshape(Lq, D)


# -------------------------------- kernels ------------------------------------

def decoder_layer_kernel(
    dec_ref, enc_ref, tb_ref, sb_ref,
    # self-attention
    wq1, bq1, wk1, bk1, wv1, bv1, wo1, bo1, g1, be1,
    # encoder-decoder attention
    wq2, bq2, wk2, bk2, wv2, bv2, wo2, bo2, g2, be2,
    # feed-forward
    w1, bb1, w2, bb2, g3, be3,
    out_ref,
    k1_sc, v1_sc, k2_sc, v2_sc,
    *, n_head, tile_s,
):
    s_id = pl.program_id(1)

    # K/V projections depend only on the batch index -> compute once per batch
    # element (first seq tile) and cache in VMEM scratch for all query tiles.
    @pl.when(s_id == 0)
    def _cache_kv():
        xkv = dec_ref[0]                                  # (S, D) bf16
        k1_sc[...] = (jnp.dot(xkv, wk1[...], preferred_element_type=jnp.float32)
                      + bk1[...]).astype(jnp.bfloat16)
        v1_sc[...] = (jnp.dot(xkv, wv1[...], preferred_element_type=jnp.float32)
                      + bv1[...]).astype(jnp.bfloat16)
        enc = enc_ref[0]                                  # (S_src, D) bf16
        k2_sc[...] = (jnp.dot(enc, wk2[...], preferred_element_type=jnp.float32)
                      + bk2[...]).astype(jnp.bfloat16)
        v2_sc[...] = (jnp.dot(enc, wv2[...], preferred_element_type=jnp.float32)
                      + bv2[...]).astype(jnp.bfloat16)

    # Query rows of this grid step, sliced from the already-resident full
    # decoder block -- no duplicate query input stream / DMA.
    row0 = pl.multiple_of(s_id * tile_s, tile_s)
    xq = dec_ref[0, pl.ds(row0, tile_s), :]               # (tile_s, D) bf16
    x0 = xq.astype(jnp.float32)

    # 1) masked self-attention + residual + LayerNorm
    q = jnp.dot(xq, wq1[...], preferred_element_type=jnp.float32) + bq1[...]
    a = _attend(q, k1_sc[...], v1_sc[...], tb_ref[0], n_head)
    a = jnp.dot(a.astype(jnp.bfloat16), wo1[...],
                preferred_element_type=jnp.float32) + bo1[...]
    x = _layer_norm(a + x0, g1[...], be1[...])

    # 2) encoder-decoder attention + residual + LayerNorm
    q = jnp.dot(x.astype(jnp.bfloat16), wq2[...],
                preferred_element_type=jnp.float32) + bq2[...]
    a = _attend(q, k2_sc[...], v2_sc[...], sb_ref[0], n_head)
    a = jnp.dot(a.astype(jnp.bfloat16), wo2[...],
                preferred_element_type=jnp.float32) + bo2[...]
    x = _layer_norm(a + x, g2[...], be2[...])

    # 3) position-wise FFN + residual + LayerNorm
    h = jnp.dot(x.astype(jnp.bfloat16), w1[...],
                preferred_element_type=jnp.float32) + bb1[...]
    h = jnp.maximum(h, 0.0)
    y = jnp.dot(h.astype(jnp.bfloat16), w2[...],
                preferred_element_type=jnp.float32) + bb2[...]
    x = _layer_norm(y + x, g3[...], be3[...])

    out_ref[0] = x.astype(out_ref.dtype)


def linear_kernel(x_ref, w_ref, b_ref, out_ref):
    out_ref[...] = (jnp.dot(x_ref[...], w_ref[...],
                            preferred_element_type=jnp.float32)
                    + b_ref[...]).astype(out_ref.dtype)


# ------------------------------ wrappers --------------------------------------

def decoder_layer(dec, enc, trg_bias, src_bias, params, n_head, *, tile_s=None):
    B, S, D = dec.shape
    S_src = enc.shape[1]
    if tile_s is None:
        # v6e/v7x MXUs are 256-wide -> prefer 256-row query tiles, else 128,
        # else the whole sequence.
        # TODO(synk): on v5e (128-wide MXU) 128 rows already fill the MXU.
        tile_s = _pick_tile(S, (256, 128))
    assert S % tile_s == 0

    wmode = _weight_pipeline_mode()

    def const(shape):
        # Constant block index across the whole grid: single-buffer if allowed.
        if wmode is not None:
            return pl.BlockSpec(shape, lambda b, s: (0,) * len(shape),
                                pipeline_mode=wmode)
        return pl.BlockSpec(shape, lambda b, s: (0,) * len(shape))

    in_specs = [
        pl.BlockSpec((1, S, D), lambda b, s: (b, 0, 0)),           # full dec seq
        pl.BlockSpec((1, S_src, D), lambda b, s: (b, 0, 0)),       # encoder out
        pl.BlockSpec((1, tile_s, S), lambda b, s: (b, s, 0)),      # trg bias rows
        pl.BlockSpec((1, tile_s, S_src), lambda b, s: (b, s, 0)),  # src bias rows
    ] + [const(p.shape) for p in params]

    return pl.pallas_call(
        functools.partial(decoder_layer_kernel, n_head=n_head, tile_s=tile_s),
        out_shape=jax.ShapeDtypeStruct((B, S, D), jnp.bfloat16),
        grid=(B, S // tile_s),
        in_specs=in_specs,
        out_specs=pl.BlockSpec((1, tile_s, D), lambda b, s: (b, s, 0)),
        scratch_shapes=[
            pltpu.VMEM((S, D), jnp.bfloat16),       # self-attn K cache
            pltpu.VMEM((S, D), jnp.bfloat16),       # self-attn V cache
            pltpu.VMEM((S_src, D), jnp.bfloat16),   # cross-attn K cache
            pltpu.VMEM((S_src, D), jnp.bfloat16),   # cross-attn V cache
        ],
        compiler_params=pltpu.CompilerParams(
            # K/V caches carried across the seq axis -> that axis is arbitrary.
            dimension_semantics=("parallel", "arbitrary"),
            vmem_limit_bytes=_vmem_limit_bytes()),
    )(dec, enc, trg_bias, src_bias, *params)


def final_linear(x, w, b, *, tile_v=None, tile_m=None):
    """Vocab projection.  (B, S) is flattened to one row axis so the matmul M
    dimension fills the MXU, and the grid is vocab-major so each (D, tile_v)
    weight tile streams from HBM exactly once."""
    B, S, D = x.shape
    V = w.shape[1]
    M = B * S
    x2 = x.reshape(M, D)
    if tile_v is None:
        tile_v = _pick_tile(V, (512, 256, 128))
    if tile_m is None:
        tile_m = _pick_tile(M, (512, 256, 128))
    assert V % tile_v == 0 and M % tile_m == 0

    out = pl.pallas_call(
        linear_kernel,
        out_shape=jax.ShapeDtypeStruct((M, V), jnp.float32),
        grid=(V // tile_v, M // tile_m),            # vocab-major (weights outer)
        in_specs=[
            pl.BlockSpec((tile_m, D), lambda j, i: (i, 0)),
            pl.BlockSpec((D, tile_v), lambda j, i: (0, j)),
            pl.BlockSpec((1, tile_v), lambda j, i: (0, j)),
        ],
        out_specs=pl.BlockSpec((tile_m, tile_v), lambda j, i: (i, j)),
        compiler_params=pltpu.CompilerParams(
            dimension_semantics=("parallel", "parallel"),
            vmem_limit_bytes=_vmem_limit_bytes()),
    )(x2, w, b)
    return out.reshape(B, S, V)


# --------------------------- parameter construction ---------------------------

def init_linear(key, fan_in, fan_out):
    k1, k2 = jax.random.split(key)
    bound = 1.0 / math.sqrt(fan_in)
    w = jax.random.uniform(k1, (fan_in, fan_out), jnp.float32, -bound, bound)
    b = jax.random.uniform(k2, (1, fan_out), jnp.float32, -bound, bound)
    return w.astype(jnp.bfloat16), b       # bf16 weights, f32 biases


def init_decoder_layer_params(key, d_model, ffn_hidden):
    keys = jax.random.split(key, 10)
    params = []
    # self-attention: w_q, w_k, w_v, w_concat
    for i in range(4):
        params += list(init_linear(keys[i], d_model, d_model))
    params += [jnp.ones((1, d_model), jnp.float32),
               jnp.zeros((1, d_model), jnp.float32)]          # norm1
    # enc-dec attention
    for i in range(4):
        params += list(init_linear(keys[4 + i], d_model, d_model))
    params += [jnp.ones((1, d_model), jnp.float32),
               jnp.zeros((1, d_model), jnp.float32)]          # norm2
    # ffn (linear1 -> relu -> linear2, the reference's intended structure)
    params += list(init_linear(keys[8], d_model, ffn_hidden))
    params += list(init_linear(keys[9], ffn_hidden, d_model))
    params += [jnp.ones((1, d_model), jnp.float32),
               jnp.zeros((1, d_model), jnp.float32)]          # norm3
    return params


def positional_encoding(max_len, d_model):
    pos = jnp.arange(max_len, dtype=jnp.float32)[:, None]
    two_i = jnp.arange(0, d_model, 2, dtype=jnp.float32)
    angle = pos / (10000.0 ** (two_i / d_model))
    enc = jnp.zeros((max_len, d_model), jnp.float32)
    enc = enc.at[:, 0::2].set(jnp.sin(angle))
    enc = enc.at[:, 1::2].set(jnp.cos(angle))
    return enc


def decoder_forward(trg_ids, enc_out, trg_mask, src_mask,
                    emb_table, pos_table, layer_params, out_w, out_b,
                    *, n_head, tile_s=None):
    # --- embedding (glue: gather + positional add; dropout is identity) ---
    S = trg_ids.shape[1]
    x = jnp.take(emb_table, trg_ids, axis=0) + pos_table[:S, :][None, :, :]
    x = x.astype(jnp.bfloat16)
    enc_bf = enc_out.astype(jnp.bfloat16)
    # Additive masks, precomputed once and shared by every layer:
    # 0 where kept, -10000 where masked (masked_fill(-10000) semantics).
    trg_bias = jnp.where(trg_mask == 0, -10000.0, 0.0).astype(jnp.float32)
    src_bias = jnp.where(src_mask == 0, -10000.0, 0.0).astype(jnp.float32)
    # --- decoder layers (fused Pallas kernel per layer) ---
    for params in layer_params:
        x = decoder_layer(x, enc_bf, trg_bias, src_bias, params, n_head,
                          tile_s=tile_s)
    # --- final vocab projection (Pallas, flattened rows, vocab-major) ---
    return final_linear(x, out_w, out_b)


# ------------------------------------ main ------------------------------------

if __name__ == "__main__":
    # small but lane-dense shapes (D and V multiples of 128)
    B, S, S_SRC = 2, 16, 8
    D_MODEL, FFN_HIDDEN, N_HEAD, N_LAYERS = 128, 256, 4, 2
    VOCAB, MAX_LEN = 256, 16

    root = jax.random.PRNGKey(0)
    k_emb, k_layers, k_out, k_trg, k_enc = jax.random.split(root, 5)

    # token embedding table (padding_idx=1 -> zero row, as nn.Embedding does)
    emb_table = jax.random.normal(k_emb, (VOCAB, D_MODEL), jnp.float32)
    emb_table = emb_table.at[1, :].set(0.0)
    pos_table = positional_encoding(MAX_LEN, D_MODEL)

    layer_keys = jax.random.split(k_layers, N_LAYERS)
    layer_params = [init_decoder_layer_params(k, D_MODEL, FFN_HIDDEN)
                    for k in layer_keys]
    out_w, out_b = init_linear(k_out, D_MODEL, VOCAB)

    # inputs
    trg_ids = jax.random.randint(k_trg, (B, S), 2, VOCAB, dtype=jnp.int32)
    enc_out = jax.random.normal(k_enc, (B, S_SRC, D_MODEL), jnp.float32)
    causal = jnp.tril(jnp.ones((S, S), jnp.float32))
    trg_mask = jnp.broadcast_to(causal, (B, S, S))
    src_mask = jnp.ones((B, S, S_SRC), jnp.float32)

    # tile_s=8 exercises the multi-tile path (K/V cached at seq tile 0, query
    # rows sliced per tile) at these tiny demo shapes.
    logits = decoder_forward(trg_ids, enc_out, trg_mask, src_mask,
                             emb_table, pos_table, layer_params,
                             out_w, out_b, n_head=N_HEAD, tile_s=8)
    jax.block_until_ready(logits)
    assert logits.shape == (B, S, VOCAB)
    assert logits.dtype == jnp.float32
    print("KERNEL_OK")
</pallas_src>

<mosaic_0001>
module attributes {stable_mosaic.version = 11 : i64} {
  func.func @probe_kernel(%arg0: i32, %arg1: memref<8x128xf32, #tpu.memory_space<vmem>>, %arg2: memref<1x8x128xf32, #tpu.memory_space<vmem>>, %arg3: memref<1x8x128xf32, #tpu.memory_space<vmem>>) attributes {dimension_semantics = [#tpu.dimension_semantics<arbitrary>], iteration_bounds = array<i64: 2>, scalar_prefetch = 0 : i64, scratch_operands = 0 : i64, tpu.core_type = #tpu.core_type<tc>, window_params = [{pipeline_mode = #tpu.pipeline_mode<synchronous>, transform_indices = @transform_0, window_bounds = array<i64: 8, 128>}, {transform_indices = @transform_1, window_bounds = array<i64: 1, 8, 128>}, {transform_indices = @transform_2, window_bounds = array<i64: 1, 8, 128>}]} {
    %c0 = arith.constant 0 : index
    %c0_0 = arith.constant 0 : index
    %c0_1 = arith.constant 0 : index
    %0 = vector.load %arg2[%c0, %c0_0, %c0_1] : memref<1x8x128xf32, #tpu.memory_space<vmem>>, vector<1x8x128xf32>
    %1 = vector.shape_cast %0 : vector<1x8x128xf32> to vector<8x128xf32>
    %c0_2 = arith.constant 0 : index
    %c0_3 = arith.constant 0 : index
    %2 = vector.load %arg1[%c0_2, %c0_3] : memref<8x128xf32, #tpu.memory_space<vmem>>, vector<8x128xf32>
    %3 = arith.addf %1, %2 : vector<8x128xf32>
    %c0_4 = arith.constant 0 : index
    %c0_5 = arith.constant 0 : index
    %c0_6 = arith.constant 0 : index
    %4 = vector.load %arg3[%c0_4, %c0_5, %c0_6] : memref<1x8x128xf32, #tpu.memory_space<vmem>>, vector<1x8x128xf32>
    %5 = vector.shape_cast %4 : vector<1x8x128xf32> to vector<8x128xf32>
    %6 = vector.shape_cast %3 : vector<8x128xf32> to vector<1x8x128xf32>
    tpu.vector_store %arg3[%c0_4, %c0_5, %c0_6], %6 {strides = array<i32>} : memref<1x8x128xf32, #tpu.memory_space<vmem>>, vector<1x8x128xf32>,
    return
  }
  func.func @transform_0(%arg0: i32) -> (i32, i32) {
    %c0_i32 = arith.constant 0 : i32
    %c0_i32_0 = arith.constant 0 : i32
    %c0_i32_1 = arith.constant 0 : i32
    return %c0_i32, %c0_i32_0 : i32, i32
  }
  func.func @transform_1(%arg0: i32) -> (i32, i32, i32) {
    %c0_i32 = arith.constant 0 : i32
    %c0_i32_0 = arith.constant 0 : i32
    %c0_i32_1 = arith.constant 0 : i32
    return %arg0, %c0_i32, %c0_i32_0 : i32, i32, i32
  }
  func.func @transform_2(%arg0: i32) -> (i32, i32, i32) {
    %c0_i32 = arith.constant 0 : i32
    %c0_i32_0 = arith.constant 0 : i32
    %c0_i32_1 = arith.constant 0 : i32
    return %arg0, %c0_i32, %c0_i32_0 : i32, i32, i32
  }
}

module attributes {stable_mosaic.version = 11 : i64} {
  func.func @decoder_layer_kernel(%arg0: i32, %arg1: i32, %arg2: memref<1x16x128xbf16, #tpu.memory_space<vmem>>, %arg3: memref<1x8x128xbf16, #tpu.memory_space<vmem>>, %arg4: memref<1x8x16xf32, #tpu.memory_space<vmem>>, %arg5: memref<1x8x8xf32, #tpu.memory_space<vmem>>, %arg6: memref<128x128xbf16, #tpu.memory_space<vmem>>, %arg7: memref<1x128xf32, #tpu.memory_space<vmem>>, %arg8: memref<128x128xbf16, #tpu.memory_space<vmem>>, %arg9: memref<1x128xf32, #tpu.memory_space<vmem>>, %arg10: memref<128x128xbf16, #tpu.memory_space<vmem>>, %arg11: memref<1x128xf32, #tpu.memory_space<vmem>>, %arg12: memref<128x128xbf16, #tpu.memory_space<vmem>>, %arg13: memref<1x128xf32, #tpu.memory_space<vmem>>, %arg14: memref<1x128xf32, #tpu.memory_space<vmem>>, %arg15: memref<1x128xf32, #tpu.memory_space<vmem>>, %arg16: memref<128x128xbf16, #tpu.memory_space<vmem>>, %arg17: memref<1x128xf32, #tpu.memory_space<vmem>>, %arg18: memref<128x128xbf16, #tpu.memory_space<vmem>>, %arg19: memref<1x128xf32, #tpu.memory_space<vmem>>, %arg20: memref<128x128xbf16, #tpu.memory_space<vmem>>, %arg21: memref<1x128xf32, #tpu.memory_space<vmem>>, %arg22: memref<128x128xbf16, #tpu.memory_space<vmem>>, %arg23: memref<1x128xf32, #tpu.memory_space<vmem>>, %arg24: memref<1x128xf32, #tpu.memory_space<vmem>>, %arg25: memref<1x128xf32, #tpu.memory_space<vmem>>, %arg26: memref<128x256xbf16, #tpu.memory_space<vmem>>, %arg27: memref<1x256xf32, #tpu.memory_space<vmem>>, %arg28: memref<256x128xbf16, #tpu.memory_space<vmem>>, %arg29: memref<1x128xf32, #tpu.memory_space<vmem>>, %arg30: memref<1x128xf32, #tpu.memory_space<vmem>>, %arg31: memref<1x128xf32, #tpu.memory_space<vmem>>, %arg32: memref<1x8x128xbf16, #tpu.memory_space<vmem>>, %arg33: memref<16x128xbf16, #tpu.memory_space<vmem>>, %arg34: memref<16x128xbf16, #tpu.memory_space<vmem>>, %arg35: memref<8x128xbf16, #tpu.memory_space<vmem>>, %arg36: memref<8x128xbf16, #tpu.memory_space<vmem>>) attributes {dimension_semantics = [#tpu.dimension_semantics<parallel>, #tpu.dimension_semantics<arbitrary>], iteration_bounds = array<i64: 2, 2>, scalar_prefetch = 0 : i64, scratch_operands = 4 : i64, tpu.core_type = #tpu.core_type<tc>, window_params = [{transform_indices = @transform_0, window_bounds = array<i64: 1, 16, 128>}, {transform_indices = @transform_1, window_bounds = array<i64: 1, 8, 128>}, {transform_indices = @transform_2, window_bounds = array<i64: 1, 8, 16>}, {transform_indices = @transform_3, window_bounds = array<i64: 1, 8, 8>}, {pipeline_mode = #tpu.pipeline_mode<synchronous>, transform_indices = @transform_4, window_bounds = array<i64: 128, 128>}, {pipeline_mode = #tpu.pipeline_mode<synchronous>, transform_indices = @transform_5, window_bounds = array<i64: 1, 128>}, {pipeline_mode = #tpu.pipeline_mode<synchronous>, transform_indices = @transform_6, window_bounds = array<i64: 128, 128>}, {pipeline_mode = #tpu.pipeline_mode<synchronous>, transform_indices = @transform_7, window_bounds = array<i64: 1, 128>}, {pipeline_mode = #tpu.pipeline_mode<synchronous>, transform_indices = @transform_8, window_bounds = array<i64: 128, 128>}, {pipeline_mode = #tpu.pipeline_mode<synchronous>, transform_indices = @transform_9, window_bounds = array<i64: 1, 128>}, {pipeline_mode = #tpu.pipeline_mode<synchronous>, transform_indices = @transform_10, window_bounds = array<i64: 128, 128>}, {pipeline_mode = #tpu.pipeline_mode<synchronous>, transform_indices = @transform_11, window_bounds = array<i64: 1, 128>}, {pipeline_mode = #tpu.pipeline_mode<synchronous>, transform_indices = @transform_12, window_bounds = array<i64: 1, 128>}, {pipeline_mode = #tpu.pipeline_mode<synchronous>, transform_indices = @transform_13, window_bounds = array<i64: 1, 128>}, {pipeline_mode = #tpu.pipeline_mode<synchronous>, transform_indices = @transform_14, window_bounds = array<i64: 128, 128>}, {pipeline_mode = #tpu.pipeline_mode<synchronous>, transform_indices = @transform_15, window_bounds = array<i64: 1, 128>}, {pipeline_mode = #tpu.pipeline_mode<synchronous>, transform_indices = @transform_16, window_bounds = array<i64: 128, 128>}, {pipeline_mode = #tpu.pipeline_mode<synchronous>, transform_indices = @transform_17, window_bounds = array<i64: 1, 128>}, {pipeline_mode = #tpu.pipeline_mode<synchronous>, transform_indices = @transform_18, window_bounds = array<i64: 128, 128>}, {pipeline_mode = #tpu.pipeline_mode<synchronous>, transform_indices = @transform_19, window_bounds = array<i64: 1, 128>}, {pipeline_mode = #tpu.pipeline_mode<synchronous>, transform_indices = @transform_20, window_bounds = array<i64: 128, 128>}, {pipeline_mode = #tpu.pipeline_mode<synchronous>, transform_indices = @transform_21, window_bounds = array<i64: 1, 128>}, {pipeline_mode = #tpu.pipeline_mode<synchronous>, transform_indices = @transform_22, window_bounds = array<i64: 1, 128>}, {pipeline_mode = #tpu.pipeline_mode<synchronous>, transform_indices = @transform_23, window_bounds = array<i64: 1, 128>}, {pipeline_mode = #tpu.pipeline_mode<synchronous>, transform_indices = @transform_24, window_bounds = array<i64: 128, 256>}, {pipeline_mode = #tpu.pipeline_mode<synchronous>, transform_indices = @transform_25, window_bounds = array<i64: 1, 256>}, {pipeline_mode = #tpu.pipeline_mode<synchronous>, transform_indices = @transform_26, window_bounds = array<i64: 256, 128>}, {pipeline_mode = #tpu.pipeline_mode<synchronous>, transform_indices = @transform_27, window_bounds = array<i64: 1, 128>}, {pipeline_mode = #tpu.pipeline_mode<synchronous>, transform_indices = @transform_28, window_bounds = array<i64: 1, 128>}, {pipeline_mode = #tpu.pipeline_mode<synchronous>, transform_indices = @transform_29, window_bounds = array<i64: 1, 128>}, {transform_indices = @transform_30, window_bounds = array<i64: 1, 8, 128>}]} {
    %c0_i32 = arith.constant 0 : i32
    %0 = arith.cmpi eq, %arg1, %c0_i32 : i32
    %1 = arith.extui %0 : i1 to i32
    %c0_i32_0 = arith.constant 0 : i32
    %2 = arith.cmpi ne, %1, %c0_i32_0 : i32
    scf.if %2 {
      %c0_86 = arith.constant 0 : index
      %c0_87 = arith.constant 0 : index
      %c0_88 = arith.constant 0 : index
      %187 = vector.load %arg2[%c0_86, %c0_87, %c0_88] : memref<1x16x128xbf16, #tpu.memory_space<vmem>>, vector<1x16x128xbf16>
      %188 = vector.shape_cast %187 : vector<1x16x128xbf16> to vector<16x128xbf16>
      %c0_89 = arith.constant 0 : index
      %c0_90 = arith.constant 0 : index
      %189 = vector.load %arg8[%c0_89, %c0_90] : memref<128x128xbf16, #tpu.memory_space<vmem>>, vector<128x128xbf16>
      %cst_91 = arith.constant dense<0.000000e+00> : vector<16x128xf32>
      %190 = tpu.matmul %188, %189, %cst_91 {dimension_numbers = #tpu.dot_dimension_numbers<[1], [0], [0], [1], [0, 0, 1, 1], [], []>} : vector<16x128xbf16>, vector<128x128xbf16>, vector<16x128xf32> -> vector<16x128xf32>
      %c0_92 = arith.constant 0 : index
      %c0_93 = arith.constant 0 : index
      %191 = vector.load %arg9[%c0_92, %c0_93] : memref<1x128xf32, #tpu.memory_space<vmem>>, vector<1x128xf32>
      %192 = vector.broadcast %191 : vector<1x128xf32> to vector<16x128xf32>
      %193 = arith.addf %190, %192 : vector<16x128xf32>
      %194 = arith.truncf %193 : vector<16x128xf32> to vector<16x128xbf16>
      %c0_94 = arith.constant 0 : index
      %c0_95 = arith.constant 0 : index
      %195 = vector.load %arg33[%c0_94, %c0_95] : memref<16x128xbf16, #tpu.memory_space<vmem>>, vector<16x128xbf16>
      tpu.vector_store %arg33[%c0_94, %c0_95], %194 {strides = array<i32>} : memref<16x128xbf16, #tpu.memory_space<vmem>>, vector<16x128xbf16>,
      %c0_96 = arith.constant 0 : index
      %c0_97 = arith.constant 0 : index
      %196 = vector.load %arg10[%c0_96, %c0_97] : memref<128x128xbf16, #tpu.memory_space<vmem>>, vector<128x128xbf16>
      %cst_98 = arith.constant dense<0.000000e+00> : vector<16x128xf32>
      %197 = tpu.matmul %188, %196, %cst_98 {dimension_numbers = #tpu.dot_dimension_numbers<[1], [0], [0], [1], [0, 0, 1, 1], [], []>} : vector<16x128xbf16>, vector<128x128xbf16>, vector<16x128xf32> -> vector<16x128xf32>
      %c0_99 = arith.constant 0 : index
      %c0_100 = arith.constant 0 : index
      %198 = vector.load %arg11[%c0_99, %c0_100] : memref<1x128xf32, #tpu.memory_space<vmem>>, vector<1x128xf32>
      %199 = vector.broadcast %198 : vector<1x128xf32> to vector<16x128xf32>
      %200 = arith.addf %197, %199 : vector<16x128xf32>
      %201 = arith.truncf %200 : vector<16x128xf32> to vector<16x128xbf16>
      %c0_101 = arith.constant 0 : index
      %c0_102 = arith.constant 0 : index
      %202 = vector.load %arg34[%c0_101, %c0_102] : memref<16x128xbf16, #tpu.memory_space<vmem>>, vector<16x128xbf16>
      tpu.vector_store %arg34[%c0_101, %c0_102], %201 {strides = array<i32>} : memref<16x128xbf16, #tpu.memory_space<vmem>>, vector<16x128xbf16>,
      %c0_103 = arith.constant 0 : index
      %c0_104 = arith.constant 0 : index
      %c0_105 = arith.constant 0 : index
      %203 = vector.load %arg3[%c0_103, %c0_104, %c0_105] : memref<1x8x128xbf16, #tpu.memory_space<vmem>>, vector<1x8x128xbf16>
      %204 = vector.shape_cast %203 : vector<1x8x128xbf16> to vector<8x128xbf16>
      %c0_106 = arith.constant 0 : index
      %c0_107 = arith.constant 0 : index
      %205 = vector.load %arg18[%c0_106, %c0_107] : memref<128x128xbf16, #tpu.memory_space<vmem>>, vector<128x128xbf16>
      %cst_108 = arith.constant dense<0.000000e+00> : vector<8x128xf32>
      %206 = tpu.matmul %204, %205, %cst_108 {dimension_numbers = #tpu.dot_dimension_numbers<[1], [0], [0], [1], [0, 0, 1, 1], [], []>} : vector<8x128xbf16>, vector<128x128xbf16>, vector<8x128xf32> -> vector<8x128xf32>
      %c0_109 = arith.constant 0 : index
      %c0_110 = arith.constant 0 : index
      %207 = vector.load %arg19[%c0_109, %c0_110] : memref<1x128xf32, #tpu.memory_space<vmem>>, vector<1x128xf32>
      %208 = vector.broadcast %207 : vector<1x128xf32> to vector<8x128xf32>
      %209 = arith.addf %206, %208 : vector<8x128xf32>
      %210 = arith.truncf %209 : vector<8x128xf32> to vector<8x128xbf16>
      %c0_111 = arith.constant 0 : index
      %c0_112 = arith.constant 0 : index
      %211 = vector.load %arg35[%c0_111, %c0_112] : memref<8x128xbf16, #tpu.memory_space<vmem>>, vector<8x128xbf16>
      tpu.vector_store %arg35[%c0_111, %c0_112], %210 {strides = array<i32>} : memref<8x128xbf16, #tpu.memory_space<vmem>>, vector<8x128xbf16>,
      %c0_113 = arith.constant 0 : index
      %c0_114 = arith.constant 0 : index
      %212 = vector.load %arg20[%c0_113, %c0_114] : memref<128x128xbf16, #tpu.memory_space<vmem>>, vector<128x128xbf16>
      %cst_115 = arith.constant dense<0.000000e+00> : vector<8x128xf32>
      %213 = tpu.matmul %204, %212, %cst_115 {dimension_numbers = #tpu.dot_dimension_numbers<[1], [0], [0], [1], [0, 0, 1, 1], [], []>} : vector<8x128xbf16>, vector<128x128xbf16>, vector<8x128xf32> -> vector<8x128xf32>
      %c0_116 = arith.constant 0 : index
      %c0_117 = arith.constant 0 : index
      %214 = vector.load %arg21[%c0_116, %c0_117] : memref<1x128xf32, #tpu.memory_space<vmem>>, vector<1x128xf32>
      %215 = vector.broadcast %214 : vector<1x128xf32> to vector<8x128xf32>
      %216 = arith.addf %213, %215 : vector<8x128xf32>
      %217 = arith.truncf %216 : vector<8x128xf32> to vector<8x128xbf16>
      %c0_118 = arith.constant 0 : index
      %c0_119 = arith.constant 0 : index
      %218 = vector.load %arg36[%c0_118, %c0_119] : memref<8x128xbf16, #tpu.memory_space<vmem>>, vector<8x128xbf16>
      tpu.vector_store %arg36[%c0_118, %c0_119], %217 {strides = array<i32>} : memref<8x128xbf16, #tpu.memory_space<vmem>>, vector<8x128xbf16>,
    } else {
    }
    %c8_i32 = arith.constant 8 : i32
    %3 = arith.muli %arg1, %c8_i32 : i32
    %4 = tpu.assume_multiple %3, 8 : i32
    %c0 = arith.constant 0 : index
    %5 = arith.index_cast %4 : i32 to index
    %c0_1 = arith.constant 0 : index
    %6 = vector.load %arg2[%c0, %5, %c0_1] : memref<1x16x128xbf16, #tpu.memory_space<vmem>>, vector<1x8x128xbf16>
    %7 = vector.shape_cast %6 : vector<1x8x128xbf16> to vector<8x128xbf16>
    %8 = arith.extf %7 : vector<8x128xbf16> to vector<8x128xf32>
    %c0_2 = arith.constant 0 : index
    %c0_3 = arith.constant 0 : index
    %9 = vector.load %arg6[%c0_2, %c0_3] : memref<128x128xbf16, #tpu.memory_space<vmem>>, vector<128x128xbf16>
    %cst = arith.constant dense<0.000000e+00> : vector<8x128xf32>
    %10 = tpu.matmul %7, %9, %cst {dimension_numbers = #tpu.dot_dimension_numbers<[1], [0], [0], [1], [0, 0, 1, 1], [], []>} : vector<8x128xbf16>, vector<128x128xbf16>, vector<8x128xf32> -> vector<8x128xf32>
    %c0_4 = arith.constant 0 : index
    %c0_5 = arith.constant 0 : index
    %11 = vector.load %arg7[%c0_4, %c0_5] : memref<1x128xf32, #tpu.memory_space<vmem>>, vector<1x128xf32>
    %12 = vector.broadcast %11 : vector<1x128xf32> to vector<8x128xf32>
    %13 = arith.addf %10, %12 : vector<8x128xf32>
    %c0_6 = arith.constant 0 : index
    %c0_7 = arith.constant 0 : index
    %14 = vector.load %arg33[%c0_6, %c0_7] : memref<16x128xbf16, #tpu.memory_space<vmem>>, vector<16x128xbf16>
    %c0_8 = arith.constant 0 : index
    %c0_9 = arith.constant 0 : index
    %15 = vector.load %arg34[%c0_8, %c0_9] : memref<16x128xbf16, #tpu.memory_space<vmem>>, vector<16x128xbf16>
    %c0_10 = arith.constant 0 : index
    %c0_11 = arith.constant 0 : index
    %c0_12 = arith.constant 0 : index
    %16 = vector.load %arg4[%c0_10, %c0_11, %c0_12] : memref<1x8x16xf32, #tpu.memory_space<vmem>>, vector<1x8x16xf32>
    %17 = vector.shape_cast %16 : vector<1x8x16xf32> to vector<8x16xf32>
    %18 = vector.shape_cast %13 : vector<8x128xf32> to vector<8x4x32xf32>
    %19 = tpu.transpose %18, [1, 0, 2] : vector<8x4x32xf32> -> vector<4x8x32xf32>
    %20 = arith.truncf %19 : vector<4x8x32xf32> to vector<4x8x32xbf16>
    %21 = vector.shape_cast %14 : vector<16x128xbf16> to vector<16x4x32xbf16>
    %22 = tpu.transpose %21, [1, 0, 2] : vector<16x4x32xbf16> -> vector<4x16x32xbf16>
    %23 = vector.shape_cast %15 : vector<16x128xbf16> to vector<16x4x32xbf16>
    %24 = tpu.transpose %23, [1, 0, 2] : vector<16x4x32xbf16> -> vector<4x16x32xbf16>
    "tpu.trace_start"() <{level = 10 : i32, message = "hqd,hkd->hqk"}> : () -> ()
    %cst_13 = arith.constant dense<0.000000e+00> : vector<4x8x16xf32>
    %25 = tpu.matmul %20, %22, %cst_13 {dimension_numbers = #tpu.dot_dimension_numbers<[2], [2], [1], [1], [0, 0, 0, 1, 1, 1], [0], [0]>} : vector<4x8x32xbf16>, vector<4x16x32xbf16>, vector<4x8x16xf32> -> vector<4x8x16xf32>
    "tpu.trace_stop"() : () -> ()
    %cst_14 = arith.constant 0.176776692 : f32
    %26 = vector.broadcast %cst_14 : f32 to vector<4x8x16xf32>
    %27 = arith.mulf %25, %26 : vector<4x8x16xf32>
    %28 = vector.shape_cast %17 : vector<8x16xf32> to vector<1x8x16xf32>
    %29 = vector.broadcast %28 : vector<1x8x16xf32> to vector<4x8x16xf32>
    %30 = arith.addf %27, %29 : vector<4x8x16xf32>
    %cst_15 = arith.constant dense<0xFF800000> : vector<4x8xf32>
    %31 = vector.multi_reduction <maximumf>, %30, %cst_15 [2] : vector<4x8x16xf32> to vector<4x8xf32>
    %32 = vector.shape_cast %31 : vector<4x8xf32> to vector<4x8x1xf32>
    %33 = vector.broadcast %32 : vector<4x8x1xf32> to vector<4x8x16xf32>
    %34 = arith.subf %30, %33 : vector<4x8x16xf32>
    %35 = math.exp %34 : vector<4x8x16xf32>
    %cst_16 = arith.constant dense<0.000000e+00> : vector<4x8xf32>
    %36 = vector.multi_reduction <add>, %35, %cst_16 [2] : vector<4x8x16xf32> to vector<4x8xf32>
    %37 = vector.shape_cast %36 : vector<4x8xf32> to vector<4x8x1xf32>
    %38 = tpu.reciprocal %37 {approx = true} : vector<4x8x1xf32> -> vector<4x8x1xf32>
    %39 = vector.broadcast %38 : vector<4x8x1xf32> to vector<4x8x16xf32>
    %40 = arith.mulf %35, %39 : vector<4x8x16xf32>
    %41 = arith.truncf %40 : vector<4x8x16xf32> to vector<4x8x16xbf16>
    "tpu.trace_start"() <{level = 10 : i32, message = "hqk,hkd->hqd"}> : () -> ()
    %cst_17 = arith.constant dense<0.000000e+00> : vector<4x8x32xf32>
    %42 = tpu.matmul %41, %24, %cst_17 {dimension_numbers = #tpu.dot_dimension_numbers<[2], [1], [1], [2], [0, 0, 0, 1, 1, 2], [0], [0]>} : vector<4x8x16xbf16>, vector<4x16x32xbf16>, vector<4x8x32xf32> -> vector<4x8x32xf32>
    "tpu.trace_stop"() : () -> ()
    %43 = tpu.transpose %42, [1, 0, 2] : vector<4x8x32xf32> -> vector<8x4x32xf32>
    %44 = vector.shape_cast %43 : vector<8x4x32xf32> to vector<8x128xf32>
    %45 = arith.truncf %44 : vector<8x128xf32> to vector<8x128xbf16>
    %c0_18 = arith.constant 0 : index
    %c0_19 = arith.constant 0 : index
    %46 = vector.load %arg12[%c0_18, %c0_19] : memref<128x128xbf16, #tpu.memory_space<vmem>>, vector<128x128xbf16>
    %cst_20 = arith.constant dense<0.000000e+00> : vector<8x128xf32>
    %47 = tpu.matmul %45, %46, %cst_20 {dimension_numbers = #tpu.dot_dimension_numbers<[1], [0], [0], [1], [0, 0, 1, 1], [], []>} : vector<8x128xbf16>, vector<128x128xbf16>, vector<8x128xf32> -> vector<8x128xf32>
    %c0_21 = arith.constant 0 : index
    %c0_22 = arith.constant 0 : index
    %48 = vector.load %arg13[%c0_21, %c0_22] : memref<1x128xf32, #tpu.memory_space<vmem>>, vector<1x128xf32>
    %49 = vector.broadcast %48 : vector<1x128xf32> to vector<8x128xf32>
    %50 = arith.addf %47, %49 : vector<8x128xf32>
    %51 = arith.addf %50, %8 : vector<8x128xf32>
    %c0_23 = arith.constant 0 : index
    %c0_24 = arith.constant 0 : index
    %52 = vector.load %arg14[%c0_23, %c0_24] : memref<1x128xf32, #tpu.memory_space<vmem>>, vector<1x128xf32>
    %c0_25 = arith.constant 0 : index
    %c0_26 = arith.constant 0 : index
    %53 = vector.load %arg15[%c0_25, %c0_26] : memref<1x128xf32, #tpu.memory_space<vmem>>, vector<1x128xf32>
    %cst_27 = arith.constant dense<0.000000e+00> : vector<8xf32>
    %54 = vector.multi_reduction <add>, %51, %cst_27 [1] : vector<8x128xf32> to vector<8xf32>
    %55 = vector.shape_cast %54 : vector<8xf32> to vector<8x1xf32>
    %cst_28 = arith.constant 1.280000e+02 : f32
    %56 = vector.broadcast %cst_28 : f32 to vector<8x1xf32>
    %57 = arith.divf %55, %56 : vector<8x1xf32>
    %58 = vector.broadcast %57 : vector<8x1xf32> to vector<8x128xf32>
    %59 = arith.subf %51, %58 : vector<8x128xf32>
    %60 = arith.mulf %59, %59 : vector<8x128xf32>
    %cst_29 = arith.constant dense<0.000000e+00> : vector<8xf32>
    %61 = vector.multi_reduction <add>, %60, %cst_29 [1] : vector<8x128xf32> to vector<8xf32>
    %62 = vector.shape_cast %61 : vector<8xf32> to vector<8x1xf32>
    %cst_30 = arith.constant 1.280000e+02 : f32
    %63 = vector.broadcast %cst_30 : f32 to vector<8x1xf32>
    %64 = arith.divf %62, %63 : vector<8x1xf32>
    %65 = vector.broadcast %57 : vector<8x1xf32> to vector<8x128xf32>
    %66 = arith.subf %51, %65 : vector<8x128xf32>
    %cst_31 = arith.constant 9.99999996E-13 : f32
    %67 = vector.broadcast %cst_31 : f32 to vector<8x1xf32>
    %68 = arith.addf %64, %67 : vector<8x1xf32>
    %69 = math.rsqrt %68 : vector<8x1xf32>
    %70 = vector.broadcast %69 : vector<8x1xf32> to vector<8x128xf32>
    %71 = arith.mulf %66, %70 : vector<8x128xf32>
    %72 = vector.broadcast %52 : vector<1x128xf32> to vector<8x128xf32>
    %73 = arith.mulf %72, %71 : vector<8x128xf32>
    %74 = vector.broadcast %53 : vector<1x128xf32> to vector<8x128xf32>
    %75 = arith.addf %73, %74 : vector<8x128xf32>
    %76 = arith.truncf %75 : vector<8x128xf32> to vector<8x128xbf16>
    %c0_32 = arith.constant 0 : index
    %c0_33 = arith.constant 0 : index
    %77 = vector.load %arg16[%c0_32, %c0_33] : memref<128x128xbf16, #tpu.memory_space<vmem>>, vector<128x128xbf16>
    %cst_34 = arith.constant dense<0.000000e+00> : vector<8x128xf32>
    %78 = tpu.matmul %76, %77, %cst_34 {dimension_numbers = #tpu.dot_dimension_numbers<[1], [0], [0], [1], [0, 0, 1, 1], [], []>} : vector<8x128xbf16>, vector<128x128xbf16>, vector<8x128xf32> -> vector<8x128xf32>
    %c0_35 = arith.constant 0 : index
    %c0_36 = arith.constant 0 : index
    %79 = vector.load %arg17[%c0_35, %c0_36] : memref<1x128xf32, #tpu.memory_space<vmem>>, vector<1x128xf32>
    %80 = vector.broadcast %79 : vector<1x128xf32> to vector<8x128xf32>
    %81 = arith.addf %78, %80 : vector<8x128xf32>
    %c0_37 = arith.constant 0 : index
    %c0_38 = arith.constant 0 : index
    %82 = vector.load %arg35[%c0_37, %c0_38] : memref<8x128xbf16, #tpu.memory_space<vmem>>, vector<8x128xbf16>
    %c0_39 = arith.constant 0 : index
    %c0_40 = arith.constant 0 : index
    %83 = vector.load %arg36[%c0_39, %c0_40] : memref<8x128xbf16, #tpu.memory_space<vmem>>, vector<8x128xbf16>
    %c0_41 = arith.constant 0 : index
    %c0_42 = arith.constant 0 : index
    %c0_43 = arith.constant 0 : index
    %84 = vector.load %arg5[%c0_41, %c0_42, %c0_43] : memref<1x8x8xf32, #tpu.memory_space<vmem>>, vector<1x8x8xf32>
    %85 = vector.shape_cast %84 : vector<1x8x8xf32> to vector<8x8xf32>
    %86 = vector.shape_cast %81 : vector<8x128xf32> to vector<8x4x32xf32>
    %87 = tpu.transpose %86, [1, 0, 2] : vector<8x4x32xf32> -> vector<4x8x32xf32>
    %88 = arith.truncf %87 : vector<4x8x32xf32> to vector<4x8x32xbf16>
    %89 = vector.shape_cast %82 : vector<8x128xbf16> to vector<8x4x32xbf16>
    %90 = tpu.transpose %89, [1, 0, 2] : vector<8x4x32xbf16> -> vector<4x8x32xbf16>
    %91 = vector.shape_cast %83 : vector<8x128xbf16> to vector<8x4x32xbf16>
    %92 = tpu.transpose %91, [1, 0, 2] : vector<8x4x32xbf16> -> vector<4x8x32xbf16>
    "tpu.trace_start"() <{level = 10 : i32, message = "hqd,hkd->hqk"}> : () -> ()
    %cst_44 = arith.constant dense<0.000000e+00> : vector<4x8x8xf32>
    %93 = tpu.matmul %88, %90, %cst_44 {dimension_numbers = #tpu.dot_dimension_numbers<[2], [2], [1], [1], [0, 0, 0, 1, 1, 1], [0], [0]>} : vector<4x8x32xbf16>, vector<4x8x32xbf16>, vector<4x8x8xf32> -> vector<4x8x8xf32>
    "tpu.trace_stop"() : () -> ()
    %cst_45 = arith.constant 0.176776692 : f32
    %94 = vector.broadcast %cst_45 : f32 to vector<4x8x8xf32>
    %95 = arith.mulf %93, %94 : vector<4x8x8xf32>
    %96 = vector.shape_cast %85 : vector<8x8xf32> to vector<1x8x8xf32>
    %97 = vector.broadcast %96 : vector<1x8x8xf32> to vector<4x8x8xf32>
    %98 = arith.addf %95, %97 : vector<4x8x8xf32>
    %cst_46 = arith.constant dense<0xFF800000> : vector<4x8xf32>
    %99 = vector.multi_reduction <maximumf>, %98, %cst_46 [2] : vector<4x8x8xf32> to vector<4x8xf32>
    %100 = vector.shape_cast %99 : vector<4x8xf32> to vector<4x8x1xf32>
    %101 = vector.broadcast %100 : vector<4x8x1xf32> to vector<4x8x8xf32>
    %102 = arith.subf %98, %101 : vector<4x8x8xf32>
    %103 = math.exp %102 : vector<4x8x8xf32>
    %cst_47 = arith.constant dense<0.000000e+00> : vector<4x8xf32>
    %104 = vector.multi_reduction <add>, %103, %cst_47 [2] : vector<4x8x8xf32> to vector<4x8xf32>
    %105 = vector.shape_cast %104 : vector<4x8xf32> to vector<4x8x1xf32>
    %106 = tpu.reciprocal %105 {approx = true} : vector<4x8x1xf32> -> vector<4x8x1xf32>
    %107 = vector.broadcast %106 : vector<4x8x1xf32> to vector<4x8x8xf32>
    %108 = arith.mulf %103, %107 : vector<4x8x8xf32>
    %109 = arith.truncf %108 : vector<4x8x8xf32> to vector<4x8x8xbf16>
    "tpu.trace_start"() <{level = 10 : i32, message = "hqk,hkd->hqd"}> : () -> ()
    %cst_48 = arith.constant dense<0.000000e+00> : vector<4x8x32xf32>
    %110 = tpu.matmul %109, %92, %cst_48 {dimension_numbers = #tpu.dot_dimension_numbers<[2], [1], [1], [2], [0, 0, 0, 1, 1, 2], [0], [0]>} : vector<4x8x8xbf16>, vector<4x8x32xbf16>, vector<4x8x32xf32> -> vector<4x8x32xf32>
    "tpu.trace_stop"() : () -> ()
    %111 = tpu.transpose %110, [1, 0, 2] : vector<4x8x32xf32> -> vector<8x4x32xf32>
    %112 = vector.shape_cast %111 : vector<8x4x32xf32> to vector<8x128xf32>
    %113 = arith.truncf %112 : vector<8x128xf32> to vector<8x128xbf16>
    %c0_49 = arith.constant 0 : index
    %c0_50 = arith.constant 0 : index
    %114 = vector.load %arg22[%c0_49, %c0_50] : memref<128x128xbf16, #tpu.memory_space<vmem>>, vector<128x128xbf16>
    %cst_51 = arith.constant dense<0.000000e+00> : vector<8x128xf32>
    %115 = tpu.matmul %113, %114, %cst_51 {dimension_numbers = #tpu.dot_dimension_numbers<[1], [0], [0], [1], [0, 0, 1, 1], [], []>} : vector<8x128xbf16>, vector<128x128xbf16>, vector<8x128xf32> -> vector<8x128xf32>
    %c0_52 = arith.constant 0 : index
    %c0_53 = arith.constant 0 : index
    %116 = vector.load %arg23[%c0_52, %c0_53] : memref<1x128xf32, #tpu.memory_space<vmem>>, vector<1x128xf32>
    %117 = vector.broadcast %116 : vector<1x128xf32> to vector<8x128xf32>
    %118 = arith.addf %115, %117 : vector<8x128xf32>
    %119 = arith.addf %118, %75 : vector<8x128xf32>
    %c0_54 = arith.constant 0 : index
    %c0_55 = arith.constant 0 : index
    %120 = vector.load %arg24[%c0_54, %c0_55] : memref<1x128xf32, #tpu.memory_space<vmem>>, vector<1x128xf32>
    %c0_56 = arith.constant 0 : index
    %c0_57 = arith.constant 0 : index
    %121 = vector.load %arg25[%c0_56, %c0_57] : memref<1x128xf32, #tpu.memory_space<vmem>>, vector<1x128xf32>
    %cst_58 = arith.constant dense<0.000000e+00> : vector<8xf32>
    %122 = vector.multi_reduction <add>, %119, %cst_58 [1] : vector<8x128xf32> to vector<8xf32>
    %123 = vector.shape_cast %122 : vector<8xf32> to vector<8x1xf32>
    %cst_59 = arith.constant 1.280000e+02 : f32
    %124 = vector.broadcast %cst_59 : f32 to vector<8x1xf32>
    %125 = arith.divf %123, %124 : vector<8x1xf32>
    %126 = vector.broadcast %125 : vector<8x1xf32> to vector<8x128xf32>
    %127 = arith.subf %119, %126 : vector<8x128xf32>
    %128 = arith.mulf %127, %127 : vector<8x128xf32>
    %cst_60 = arith.constant dense<0.000000e+00> : vector<8xf32>
    %129 = vector.multi_reduction <add>, %128, %cst_60 [1] : vector<8x128xf32> to vector<8xf32>
    %130 = vector.shape_cast %129 : vector<8xf32> to vector<8x1xf32>
    %cst_61 = arith.constant 1.280000e+02 : f32
    %131 = vector.broadcast %cst_61 : f32 to vector<8x1xf32>
    %132 = arith.divf %130, %131 : vector<8x1xf32>
    %133 = vector.broadcast %125 : vector<8x1xf32> to vector<8x128xf32>
    %134 = arith.subf %119, %133 : vector<8x128xf32>
    %cst_62 = arith.constant 9.99999996E-13 : f32
    %135 = vector.broadcast %cst_62 : f32 to vector<8x1xf32>
    %136 = arith.addf %132, %135 : vector<8x1xf32>
    %137 = math.rsqrt %136 : vector<8x1xf32>
    %138 = vector.broadcast %137 : vector<8x1xf32> to vector<8x128xf32>
    %139 = arith.mulf %134, %138 : vector<8x128xf32>
    %140 = vector.broadcast %120 : vector<1x128xf32> to vector<8x128xf32>
    %141 = arith.mulf %140, %139 : vector<8x128xf32>
    %142 = vector.broadcast %121 : vector<1x128xf32> to vector<8x128xf32>
    %143 = arith.addf %141, %142 : vector<8x128xf32>
    %144 = arith.truncf %143 : vector<8x128xf32> to vector<8x128xbf16>
    %c0_63 = arith.constant 0 : index
    %c0_64 = arith.constant 0 : index
    %145 = vector.load %arg26[%c0_63, %c0_64] : memref<128x256xbf16, #tpu.memory_space<vmem>>, vector<128x256xbf16>
    %cst_65 = arith.constant dense<0.000000e+00> : vector<8x256xf32>
    %146 = tpu.matmul %144, %145, %cst_65 {dimension_numbers = #tpu.dot_dimension_numbers<[1], [0], [0], [1], [0, 0, 1, 1], [], []>} : vector<8x128xbf16>, vector<128x256xbf16>, vector<8x256xf32> -> vector<8x256xf32>
    %c0_66 = arith.constant 0 : index
    %c0_67 = arith.constant 0 : index
    %147 = vector.load %arg27[%c0_66, %c0_67] : memref<1x256xf32, #tpu.memory_space<vmem>>, vector<1x256xf32>
    %148 = vector.broadcast %147 : vector<1x256xf32> to vector<8x256xf32>
    %149 = arith.addf %146, %148 : vector<8x256xf32>
    %cst_68 = arith.constant 0.000000e+00 : f32
    %150 = vector.broadcast %cst_68 : f32 to vector<8x256xf32>
    %151 = arith.maximumf %149, %150 : vector<8x256xf32>
    %152 = arith.truncf %151 : vector<8x256xf32> to vector<8x256xbf16>
    %c0_69 = arith.constant 0 : index
    %c0_70 = arith.constant 0 : index
    %153 = vector.load %arg28[%c0_69, %c0_70] : memref<256x128xbf16, #tpu.memory_space<vmem>>, vector<256x128xbf16>
    %cst_71 = arith.constant dense<0.000000e+00> : vector<8x128xf32>
    %154 = tpu.matmul %152, %153, %cst_71 {dimension_numbers = #tpu.dot_dimension_numbers<[1], [0], [0], [1], [0, 0, 1, 1], [], []>} : vector<8x256xbf16>, vector<256x128xbf16>, vector<8x128xf32> -> vector<8x128xf32>
    %c0_72 = arith.constant 0 : index
    %c0_73 = arith.constant 0 : index
    %155 = vector.load %arg29[%c0_72, %c0_73] : memref<1x128xf32, #tpu.memory_space<vmem>>, vector<1x128xf32>
    %156 = vector.broadcast %155 : vector<1x128xf32> to vector<8x128xf32>
    %157 = arith.addf %154, %156 : vector<8x128xf32>
    %158 = arith.addf %157, %143 : vector<8x128xf32>
    %c0_74 = arith.constant 0 : index
    %c0_75 = arith.constant 0 : index
    %159 = vector.load %arg30[%c0_74, %c0_75] : memref<1x128xf32, #tpu.memory_space<vmem>>, vector<1x128xf32>
    %c0_76 = arith.constant 0 : index
    %c0_77 = arith.constant 0 : index
    %160 = vector.load %arg31[%c0_76, %c0_77] : memref<1x128xf32, #tpu.memory_space<vmem>>, vector<1x128xf32>
    %cst_78 = arith.constant dense<0.000000e+00> : vector<8xf32>
    %161 = vector.multi_reduction <add>, %158, %cst_78 [1] : vector<8x128xf32> to vector<8xf32>
    %162 = vector.shape_cast %161 : vector<8xf32> to vector<8x1xf32>
    %cst_79 = arith.constant 1.280000e+02 : f32
    %163 = vector.broadcast %cst_79 : f32 to vector<8x1xf32>
    %164 = arith.divf %162, %163 : vector<8x1xf32>
    %165 = vector.broadcast %164 : vector<8x1xf32> to vector<8x128xf32>
    %166 = arith.subf %158, %165 : vector<8x128xf32>
    %167 = arith.mulf %166, %166 : vector<8x128xf32>
    %cst_80 = arith.constant dense<0.000000e+00> : vector<8xf32>
    %168 = vector.multi_reduction <add>, %167, %cst_80 [1] : vector<8x128xf32> to vector<8xf32>
    %169 = vector.shape_cast %168 : vector<8xf32> to vector<8x1xf32>
    %cst_81 = arith.constant 1.280000e+02 : f32
    %170 = vector.broadcast %cst_81 : f32 to vector<8x1xf32>
    %171 = arith.divf %169, %170 : vector<8x1xf32>
    %172 = vector.broadcast %164 : vector<8x1xf32> to vector<8x128xf32>
    %173 = arith.subf %158, %172 : vector<8x128xf32>
    %cst_82 = arith.constant 9.99999996E-13 : f32
    %174 = vector.broadcast %cst_82 : f32 to vector<8x1xf32>
    %175 = arith.addf %171, %174 : vector<8x1xf32>
    %176 = math.rsqrt %175 : vector<8x1xf32>
    %177 = vector.broadcast %176 : vector<8x1xf32> to vector<8x128xf32>
    %178 = arith.mulf %173, %177 : vector<8x128xf32>
    %179 = vector.broadcast %159 : vector<1x128xf32> to vector<8x128xf32>
    %180 = arith.mulf %179, %178 : vector<8x128xf32>
    %181 = vector.broadcast %160 : vector<1x128xf32> to vector<8x128xf32>
    %182 = arith.addf %180, %181 : vector<8x128xf32>
    %183 = arith.truncf %182 : vector<8x128xf32> to vector<8x128xbf16>
    %c0_83 = arith.constant 0 : index
    %c0_84 = arith.constant 0 : index
    %c0_85 = arith.constant 0 : index
    %184 = vector.load %arg32[%c0_83, %c0_84, %c0_85] : memref<1x8x128xbf16, #tpu.memory_space<vmem>>, vector<1x8x128xbf16>
    %185 = vector.shape_cast %184 : vector<1x8x128xbf16> to vector<8x128xbf16>
    %186 = vector.shape_cast %183 : vector<8x128xbf16> to vector<1x8x128xbf16>
    tpu.vector_store %arg32[%c0_83, %c0_84, %c0_85], %186 {strides = array<i32>} : memref<1x8x128xbf16, #tpu.memory_space<vmem>>, vector<1x8x128xbf16>,
    return
  }
  func.func @transform_0(%arg0: i32, %arg1: i32) -> (i32, i32, i32) {
    %c0_i32 = arith.constant 0 : i32
    %c0_i32_0 = arith.constant 0 : i32
    %c0_i32_1 = arith.constant 0 : i32
    return %arg0, %c0_i32, %c0_i32_0 : i32, i32, i32
  }
  func.func @transform_1(%arg0: i32, %arg1: i32) -> (i32, i32, i32) {
    %c0_i32 = arith.constant 0 : i32
    %c0_i32_0 = arith.constant 0 : i32
    %c0_i32_1 = arith.constant 0 : i32
    return %arg0, %c0_i32, %c0_i32_0 : i32, i32, i32
  }
  func.func @transform_2(%arg0: i32, %arg1: i32) -> (i32, i32, i32) {
    %c0_i32 = arith.constant 0 : i32
    %c0_i32_0 = arith.constant 0 : i32
    return %arg0, %arg1, %c0_i32 : i32, i32, i32
  }
  func.func @transform_3(%arg0: i32, %arg1: i32) -> (i32, i32, i32) {
    %c0_i32 = arith.constant 0 : i32
    %c0_i32_0 = arith.constant 0 : i32
    return %arg0, %arg1, %c0_i32 : i32, i32, i32
  }
  func.func @transform_4(%arg0: i32, %arg1: i32) -> (i32, i32) {
    %c0_i32 = arith.constant 0 : i32
    %c0_i32_0 = arith.constant 0 : i32
    %c0_i32_1 = arith.constant 0 : i32
    return %c0_i32, %c0_i32_0 : i32, i32
  }
  func.func @transform_5(%arg0: i32, %arg1: i32) -> (i32, i32) {
    %c0_i32 = arith.constant 0 : i32
    %c0_i32_0 = arith.constant 0 : i32
    %c0_i32_1 = arith.constant 0 : i32
    return %c0_i32, %c0_i32_0 : i32, i32
  }
  func.func @transform_6(%arg0: i32, %arg1: i32) -> (i32, i32) {
    %c0_i32 = arith.constant 0 : i32
    %c0_i32_0 = arith.constant 0 : i32
    %c0_i32_1 = arith.constant 0 : i32
    return %c0_i32, %c0_i32_0 : i32, i32
  }
  func.func @transform_7(%arg0: i32, %arg1: i32) -> (i32, i32) {
    %c0_i32 = arith.constant 0 : i32
    %c0_i32_0 = arith.constant 0 : i32
    %c0_i32_1 = arith.constant 0 : i32
    return %c0_i32, %c0_i32_0 : i32, i32
  }
  func.func @transform_8(%arg0: i32, %arg1: i32) -> (i32, i32) {
    %c0_i32 = arith.constant 0 : i32
    %c0_i32_0 = arith.constant 0 : i32
    %c0_i32_1 = arith.constant 0 : i32
    return %c0_i32, %c0_i32_0 : i32, i32
  }
  func.func @transform_9(%arg0: i32, %arg1: i32) -> (i32, i32) {
    %c0_i32 = arith.constant 0 : i32
    %c0_i32_0 = arith.constant 0 : i32
    %c0_i32_1 = arith.constant 0 : i32
    return %c0_i32, %c0_i32_0 : i32, i32
  }
  func.func @transform_10(%arg0: i32, %arg1: i32) -> (i32, i32) {
    %c0_i32 = arith.constant 0 : i32
    %c0_i32_0 = arith.constant 0 : i32
    %c0_i32_1 = arith.constant 0 : i32
    return %c0_i32, %c0_i32_0 : i32, i32
  }
  func.func @transform_11(%arg0: i32, %arg1: i32) -> (i32, i32) {
    %c0_i32 = arith.constant 0 : i32
    %c0_i32_0 = arith.constant 0 : i32
    %c0_i32_1 = arith.constant 0 : i32
    return %c0_i32, %c0_i32_0 : i32, i32
  }
  func.func @transform_12(%arg0: i32, %arg1: i32) -> (i32, i32) {
    %c0_i32 = arith.constant 0 : i32
    %c0_i32_0 = arith.constant 0 : i32
    %c0_i32_1 = arith.constant 0 : i32
    return %c0_i32, %c0_i32_0 : i32, i32
  }
  func.func @transform_13(%arg0: i32, %arg1: i32) -> (i32, i32) {
    %c0_i32 = arith.constant 0 : i32
    %c0_i32_0 = arith.constant 0 : i32
    %c0_i32_1 = arith.constant 0 : i32
    return %c0_i32, %c0_i32_0 : i32, i32
  }
  func.func @transform_14(%arg0: i32, %arg1: i32) -> (i32, i32) {
    %c0_i32 = arith.constant 0 : i32
    %c0_i32_0 = arith.constant 0 : i32
    %c0_i32_1 = arith.constant 0 : i32
    return %c0_i32, %c0_i32_0 : i32, i32
  }
  func.func @transform_15(%arg0: i32, %arg1: i32) -> (i32, i32) {
    %c0_i32 = arith.constant 0 : i32
    %c0_i32_0 = arith.constant 0 : i32
    %c0_i32_1 = arith.constant 0 : i32
    return %c0_i32, %c0_i32_0 : i32, i32
  }
  func.func @transform_16(%arg0: i32, %arg1: i32) -> (i32, i32) {
    %c0_i32 = arith.constant 0 : i32
    %c0_i32_0 = arith.constant 0 : i32
    %c0_i32_1 = arith.constant 0 : i32
    return %c0_i32, %c0_i32_0 : i32, i32
  }
  func.func @transform_17(%arg0: i32, %arg1: i32) -> (i32, i32) {
    %c0_i32 = arith.constant 0 : i32
    %c0_i32_0 = arith.constant 0 : i32
    %c0_i32_1 = arith.constant 0 : i32
    return %c0_i32, %c0_i32_0 : i32, i32
  }
  func.func @transform_18(%arg0: i32, %arg1: i32) -> (i32, i32) {
    %c0_i32 = arith.constant 0 : i32
    %c0_i32_0 = arith.constant 0 : i32
    %c0_i32_1 = arith.constant 0 : i32
    return %c0_i32, %c0_i32_0 : i32, i32
  }
  func.func @transform_19(%arg0: i32, %arg1: i32) -> (i32, i32) {
    %c0_i32 = arith.constant 0 : i32
    %c0_i32_0 = arith.constant 0 : i32
    %c0_i32_1 = arith.constant 0 : i32
    return %c0_i32, %c0_i32_0 : i32, i32
  }
  func.func @transform_20(%arg0: i32, %arg1: i32) -> (i32, i32) {
    %c0_i32 = arith.constant 0 : i32
    %c0_i32_0 = arith.constant 0 : i32
    %c0_i32_1 = arith.constant 0 : i32
    return %c0_i32, %c0_i32_0 : i32, i32
  }
  func.func @transform_21(%arg0: i32, %arg1: i32) -> (i32, i32) {
    %c0_i32 = arith.constant 0 : i32
    %c0_i32_0 = arith.constant 0 : i32
    %c0_i32_1 = arith.constant 0 : i32
    return %c0_i32, %c0_i32_0 : i32, i32
  }
  func.func @transform_22(%arg0: i32, %arg1: i32) -> (i32, i32) {
    %c0_i32 = arith.constant 0 : i32
    %c0_i32_0 = arith.constant 0 : i32
    %c0_i32_1 = arith.constant 0 : i32
    return %c0_i32, %c0_i32_0 : i32, i32
  }
  func.func @transform_23(%arg0: i32, %arg1: i32) -> (i32, i32) {
    %c0_i32 = arith.constant 0 : i32
    %c0_i32_0 = arith.constant 0 : i32
    %c0_i32_1 = arith.constant 0 : i32
    return %c0_i32, %c0_i32_0 : i32, i32
  }
  func.func @transform_24(%arg0: i32, %arg1: i32) -> (i32, i32) {
    %c0_i32 = arith.constant 0 : i32
    %c0_i32_0 = arith.constant 0 : i32
    %c0_i32_1 = arith.constant 0 : i32
    return %c0_i32, %c0_i32_0 : i32, i32
  }
  func.func @transform_25(%arg0: i32, %arg1: i32) -> (i32, i32) {
    %c0_i32 = arith.constant 0 : i32
    %c0_i32_0 = arith.constant 0 : i32
    %c0_i32_1 = arith.constant 0 : i32
    return %c0_i32, %c0_i32_0 : i32, i32
  }
  func.func @transform_26(%arg0: i32, %arg1: i32) -> (i32, i32) {
    %c0_i32 = arith.constant 0 : i32
    %c0_i32_0 = arith.constant 0 : i32
    %c0_i32_1 = arith.constant 0 : i32
    return %c0_i32, %c0_i32_0 : i32, i32
  }
  func.func @transform_27(%arg0: i32, %arg1: i32) -> (i32, i32) {
    %c0_i32 = arith.constant 0 : i32
    %c0_i32_0 = arith.constant 0 : i32
    %c0_i32_1 = arith.constant 0 : i32
    return %c0_i32, %c0_i32_0 : i32, i32
  }
  func.func @transform_28(%arg0: i32, %arg1: i32) -> (i32, i32) {
    %c0_i32 = arith.constant 0 : i32
    %c0_i32_0 = arith.constant 0 : i32
    %c0_i32_1 = arith.constant 0 : i32
    return %c0_i32, %c0_i32_0 : i32, i32
  }
  func.func @transform_29(%arg0: i32, %arg1: i32) -> (i32, i32) {
    %c0_i32 = arith.constant 0 : i32
    %c0_i32_0 = arith.constant 0 : i32
    %c0_i32_1 = arith.constant 0 : i32
    return %c0_i32, %c0_i32_0 : i32, i32
  }
  func.func @transform_30(%arg0: i32, %arg1: i32) -> (i32, i32, i32) {
    %c0_i32 = arith.constant 0 : i32
    %c0_i32_0 = arith.constant 0 : i32
    return %arg0, %arg1, %c0_i32 : i32, i32, i32
  }
}

</mosaic_0001>

<bundles_post_ra>
// kernel: tpu_custom_call.1
= control target key start
LH: loop header
LB: loop body
LE: loop exit
PB: predicated region body
PF: predicated region fallthrough
CT: control target
= control target key end

     0   :  { %7 = vsyncpa [#allocation3], 0  ;;  %s692_s0 = inlined_call_operand.hbm [shape: f32[8,128], index: 0, kind: input, shape index: {}]   ;;  %s693_s1 = inlined_call_operand.hbm [shape: f32[2,8,128], index: 1, kind: input, shape index: {}]   ;;  %s694_s2 = inlined_call_operand.hbm [shape: f32[2,8,128], index: 2, kind: output, shape index: {}]  }
   0x1   :  { %8 = vsyncpa [#allocation6], 0 }
   0x2   :  { %10 = vsyncpa [#allocation6 + $0x1], 0 }
   0x3   :  { %11 = vsyncpa [#allocation4], 0 }
   0x4   :  { %13 = vsyncpa [#allocation4 + $0x1], 0  ;;  %s491_s9 = smov 0   ;;  %s493_s10 = smov 0  }
   0x5   :  { %s495_s11 = smov 0   ;;  %s497_s12 = smov 0  }
   0x6 LB: > { %s512_s13 = sadd.s32 4294967295, %s471_s12   ;;  %s272_s14 = sadd.s32 4294967294, %s471_s12   ;;  %s471_s12 = sphi %s497_s12, %s718_s12   ;;  %s467_s11 = sphi %s495_s11, %s717_s11   ;;  %s463_s10 = sphi %s493_s10, %s716_s10   ;;  %s459_s9 = sphi %s491_s9, %s715_s9  }
   0x7   : > { %p60_p0 = scmp.ne.s32.totalorder %s463_s10, %s459_s9  ;;  %p695_p1 = scmp.eq.s32.totalorder %s512_s13, 0 }
   0x8   : > { %p90_p3 = scmp.eq.s32.totalorder %s272_s14, 1  ;;  %p273_p5 = scmp.ge.s32.totalorder %s471_s12, 1 }
   0x9   : > { %p521_p4 = por %p695_p1, %p60_p0  ;;  %p97_p7 = scmp.lt.s32.totalorder %s471_s12, 3 }
   0xa   : > { %p526_p6 = por %p90_p3, %p60_p0  ;;  %s473_s18 = smov [#allocation2]  }
   0xb   : > { %s698_s15 = scalar_select %p521_p4, 1, 0 }
   0xc   : > { %s699_s16 = scalar_select %p526_p6, 1, 0 }
   0xd   : > { %p531_p8 = pnand %p273_p5, %p97_p7  ;;  %s110_s19 = sshll.u32 %s473_s18, 4  ;;  %s111_s19 = int_to_ptr.vmem [resolvable:$true] %s110_s19 }
   0xe   : > { %s539_s20 = sadd.s32 1, %s471_s12   ;;  %s47_s24 = sadd.s32 1, %s467_s11 }
   0xf   : > { %s700_s17 = scalar_select %p531_p8, 1, 0 }
  0x10   : > { %p294_p10 = pneg %p531_p8  ;;  %s44_s22 = ssub.s32 %s471_s12, %s539_s20 }
  0x11   : > { %p549_p12 = scmp.eq.s32.totalorder %s44_s22, 0  ;;  %s343_s27 = scalar_lea.hbm %s692_s0, 128 }
  0x12   : > { %p543_p11 = pnand %p294_p10, %p695_p1  ;;  %p344_p0 = scmp.ne.s32.totalorder %s692_s0, %s343_s27 }
  0x13   : > { %s702_s23 = scalar_select %p549_p12, 1, 0 }
  0x14   : > { %p345_p3 = pneg %p543_p11  ;;  %p350_p10 = scmp.lt.u32.totalorder %s343_s27, %s692_s0 }
  0x16   : > { %p346_p5 = pnand %p345_p3, %p344_p0 }
  0x18   : > { %p347_p7 = pneg %p346_p5 }
  0x1a   : > { %p352_p9 = pnand %p350_p10, %p347_p7 }
  0x1c   : > { %355 = shalt.err (!%p352_p9)
}
  0x1d   : > { %s356_s4 = scalar_lea.vmem %s111_s19, 128  ;;  %p364_p6 = scmp.lt.s32.totalorder %s111_s19, %s111_s19 }
  0x1e   : > { %p357_p1 = scmp.ne.s32.totalorder %s111_s19, %s356_s4  ;;  %p365_p4 = scmp.lt.s32.totalorder %s356_s4, %s356_s4 }
  0x20   : > { %p359_p2 = pnand %p357_p1, %p345_p3  ;;  %p366_p8 = por %p365_p4, %p364_p6 }
  0x22   : > { %p360_p13 = pneg %p359_p2 }
  0x24   : > { %p367_p12 = pnand %p366_p8, %p360_p13 }
  0x26   : > { %370 = shalt.err (!%p367_p12)
}
  0x27   : > { %297 = dma.hbm_to_vmem [thread:$0]  (!%p543_p11), %s692_s0, 128, %s111_s19, [#allocation3]  }
  0x28   : > { %p703_p1 = scmp.ne.s32.totalorder %s702_s23, 0  ;;  %p55_p2 = scmp.eq.s32.totalorder %s471_s12, 0 }
  0x29   : > { %p704_p4 = scmp.ne.s32.totalorder %s467_s11, %s463_s10  ;;  %p705_p6 = scmp.eq.s32.totalorder %s512_s13, 1 }
  0x2a   : > { %s575_s7 = scalar_select %p703_p1, %s467_s11, %s47_s24  }
  0x2b   : > { %p583_p8 = por %p705_p6, %p704_p4  ;;  %p307_p9 = scmp.lt.s32.totalorder %s471_s12, 2 }
  0x2c   : > { %s121_s14 = sand.u32 1, %s467_s11   ;;  %p707_p12 = pmov %p704_p4 }
  0x2d   : > { %s276_s18 = sshll.u32 %s121_s14, 3  ;;  %s277_s21 = sshll.u32 %s471_s12, 7 }
  0x2e   : > { %p56_p13 = por %p55_p2, %p707_p12  ;;  %s596_s19 = scalar_lea.hbm %s693_s1, %s277_s21 }
  0x2f   : > { %s125_s23 = scalar_lea.vmem [#allocation5], %s276_s18  ;;  %s122_s27 = scalar_lea.sflag [#allocation6], %s121_s14 }
  0x30   : > { %s132_s24 = sshll.u32 %s125_s23, 4  ;;  %p598_p11 = pnand %p307_p9, %p56_p13  ;;  %s602_s24 = int_to_ptr.vmem [resolvable:$true] %s132_s24 }
  0x31   : > { %s371_s28 = scalar_lea.hbm %s596_s19, 128  ;;  %s376_s3 = scalar_lea.hbm %s693_s1, 256 }
  0x32   : > { %p372_p0 = scmp.ne.s32.totalorder %s596_s19, %s371_s28  ;;  %p373_p3 = pneg %p598_p11 }
  0x33   : > { %p377_p10 = scmp.lt.u32.totalorder %s596_s19, %s693_s1  ;;  %p378_p1 = scmp.lt.u32.totalorder %s376_s3, %s371_s28 }
  0x34   : > { %p374_p5 = pnand %p373_p3, %p372_p0  ;;  %p380_p4 = scmp.lt.u32.totalorder %s371_s28, %s596_s19 }
  0x35   : > { %p379_p2 = por %p378_p1, %p377_p10 }
  0x36   : > { %p375_p7 = pneg %p374_p5 }
  0x37   : > { %p381_p6 = por %p380_p4, %p379_p2 }
  0x39   : > { %p382_p9 = pnand %p381_p6, %p375_p7 }
  0x3b   : > { %385 = shalt.err (!%p382_p9)
}
  0x3c   : > { %s386_s6 = scalar_lea.vmem %s602_s24, 128  ;;  %s474_s14 = smov [#allocation5]  }
  0x3d   : > { %p387_p12 = scmp.ne.s32.totalorder %s602_s24, %s386_s6  ;;  %s391_s18 = sshll.u32 %s474_s14, 4  ;;  %s392_s18 = int_to_ptr.vmem [resolvable:$false] %s391_s18 }
  0x3e   : > { %s393_s21 = scalar_lea.vmem %s392_s18, 256  ;;  %p394_p5 = scmp.lt.s32.totalorder %s602_s24, %s392_s18 }
  0x3f   : > { %p389_p13 = pnand %p387_p12, %p373_p3  ;;  %p395_p10 = scmp.lt.s32.totalorder %s393_s21, %s386_s6 }
  0x41   : > { %p390_p0 = pneg %p389_p13  ;;  %p396_p1 = por %p395_p10, %p394_p5 }
  0x43   : > { %p397_p2 = pnand %p396_p1, %p390_p0 }
  0x45   : > { %400 = shalt.err (!%p397_p2)
}
  0x46   : > { %301 = dma.hbm_to_vmem [thread:$0]  (!%p598_p11), %s596_s19, 128, %s602_s24, %s122_s27  }
  0x47   : > { %p709_p7 = scmp.ne.s32.totalorder %s700_s17, 0 }
  0x48   : > { %p710_p3 = scmp.eq.s32.totalorder (!%p709_p7), %s512_s13, 0 }
  0x49   : > { %141 = sbr.rel (%p709_p7) target bundleno = 110 (0x6e), region = 28 }
  0x50   : > { %446 = dma.done.wait (%p710_p3), [#allocation3], 128   ;;  %p711_p4 = pmov %p710_p3 }
  0x51   : > { %s636_s22 = sand.u32 1, %s463_s10   ;;  %p712_p6 = scmp.ne.s32.totalorder %s698_s15, 0 }
  0x52   : > { %448 = vsyncadd (%p711_p4), [#allocation3], 4294967168  ;;  %s280_s25 = sshll.u32 %s636_s22, 3  ;;  %s148_s23 = scalar_lea.sflag [#allocation6], %s636_s22 }
  0x53   : > { %s151_s26 = scalar_lea.vmem [#allocation5], %s280_s25 }
  0x54   : > { %450 = dma.done.wait (%p712_p6), %s148_s23, 128  }
  0x55   : > { %452 = vsyncadd (%p712_p6), %s148_s23, 4294967168  ;;  %s171_s17 = scalar_lea.vmem [#allocation7], %s280_s25  ;;  %s283_s24 = sshll.u32 %s512_s13, 7  ;;  %v172_v0 = vld [vmem:[%s151_s26] sm:$0xff]  ;;  %v173_v1 = vld [vmem:[#allocation2] sm:$0xff] }
  0x56   : > { %s190_s19 = sshll.u32 %s171_s17, 4  ;;  %v174_v2 = vadd.f32 %v173_v1, %v172_v0  ;;  %s650_s29 = scalar_lea.hbm %s694_s2, %s283_s24  ;;  %s645_s19 = int_to_ptr.vmem [resolvable:$true] %s190_s19 }
  0x57   : > { %s177_s15 = scalar_lea.sflag [#allocation4], %s636_s22  ;;  %s401_s30 = scalar_lea.vmem %s645_s19, 128 }
  0x58   : > { %175 = vst [vmem:[%s171_s17] sm:$0xff] %v174_v2  ;;  %p402_p11 = scmp.ne.s32.totalorder %s645_s19, %s401_s30  ;;  %s475_s13 = smov [#allocation7]  }
  0x59   : > { %s405_s3 = sshll.u32 %s475_s13, 4  ;;  %s406_s3 = int_to_ptr.vmem [resolvable:$false] %s405_s3 }
  0x5a   : > { %p403_p9 = pnand %p402_p11, %p583_p8  ;;  %s407_s4 = scalar_lea.vmem %s406_s3, 256 }
  0x5b   : > { %p408_p13 = scmp.lt.s32.totalorder %s645_s19, %s406_s3  ;;  %p409_p0 = scmp.lt.s32.totalorder %s407_s4, %s401_s30 }
  0x5c   : > { %p404_p12 = pneg %p403_p9 }
  0x5d   : > { %p410_p5 = por %p409_p0, %p408_p13 }
  0x5f   : > { %p411_p10 = pnand %p410_p5, %p404_p12 }
  0x61   : > { %414 = shalt.err (!%p411_p10)
}
  0x62   : > { %s415_s5 = scalar_lea.hbm %s650_s29, 128  ;;  %s419_s18 = scalar_lea.hbm %s694_s2, 256 }
  0x63   : > { %p416_p1 = scmp.ne.s32.totalorder %s650_s29, %s415_s5  ;;  %p420_p3 = scmp.lt.u32.totalorder %s650_s29, %s694_s2 }
  0x64   : > { %p421_p4 = scmp.lt.u32.totalorder %s419_s18, %s415_s5  ;;  %p423_p11 = scmp.lt.u32.totalorder %s415_s5, %s650_s29 }
  0x65   : > { %p417_p2 = pnand %p416_p1, %p583_p8 }
  0x66   : > { %p422_p6 = por %p421_p4, %p420_p3 }
  0x67   : > { %p418_p7 = pneg %p417_p2 }
  0x68   : > { %p424_p9 = por %p423_p11, %p422_p6 }
  0x6a   : > { %p425_p12 = pnand %p424_p9, %p418_p7 }
  0x6c   : > { %428 = shalt.err (!%p425_p12)
}
  0x6d   : > { %292 = dma.vmem_to_hbm [thread:$0]  (%p583_p8), %s645_s19, 128, %s650_s29, %s177_s15  }
  0x6e PF: > { %s202_s25 = sand.u32 1, %s459_s9   ;;  %p713_p13 = scmp.ne.s32.totalorder %s699_s16, 0 }
  0x6f   : > { %p714_p0 = scmp.ge.s32.totalorder %s471_s12, 2  ;;  %s203_s23 = scalar_lea.sflag [#allocation4], %s202_s25 }
  0x71   : > { %p303_p5 = pnand %p714_p0, %p713_p13 }
  0x73   : > { %454 = dma.done.wait (!%p303_p5), %s203_s23, 128  }
  0x74   : > { %456 = vsyncadd (!%p303_p5), %s203_s23, 4294967168  ;;  %p16_p10 = scmp.ge.s32.totalorder %s539_s20, 4   ;;  %s715_s9 = smov %s463_s10 }
  0x75   : > { %s716_s10 = smov %s467_s11  ;;  %s717_s11 = smov %s575_s7 }
  0x76   : > { %s718_s12 = smov %s539_s20  ;;  %18 = sbr.rel (!%p16_p10) target bundleno = 6 (0x6), region = 78 }
  0x7d   :  { %208 = vsyncpa [#allocation3], 1 }
  0x7e   :  { %210 = vsyncpa [#allocation3 + $0x1], 1 }
  0x7f   :  { %211 = vsyncpa [#allocation6], 1 }
  0x80   :  { %213 = vsyncpa [#allocation6 + $0x1], 1 }
  0x81   :  { %214 = vsyncpa [#allocation4], 1 }
  0x82   :  { %216 = vsyncpa [#allocation4 + $0x1], 1 }

// kernel: tpu_custom_call.1
= control target key start
LH: loop header
LB: loop body
LE: loop exit
PB: predicated region body
PF: predicated region fallthrough
CT: control target
= control target key end

     0   :  { %s7719_s6 = smov 1   ;;  %s7720_s10 = smov 2   ;;  %s9170_s0 = inlined_call_operand.smem [shape: u32[31], index: -1, kind: input, shape index: {}] }
   0x1   :  { %s7802_s5 = sld [smem:[%s9170_s0]]   ;;  %s7721_s14 = smov 3  }
   0x2   :  { %s7807_s9 = sld [smem:[%s9170_s0 + %s7719_s6]]   ;;  %s7722_s18 = smov 4  }
   0x3   :  { %s7812_s13 = sld [smem:[%s9170_s0 + %s7720_s10]]   ;;  %s7723_s22 = smov 5  }
   0x4   :  { %s7817_s17 = sld [smem:[%s9170_s0 + %s7721_s14]]   ;;  %s7724_s26 = smov 6  }
   0x5   :  { %s7822_s21 = sld [smem:[%s9170_s0 + %s7722_s18]]   ;;  %s7725_s30 = smov 7  }
   0x6   :  { %s7827_s25 = sld [smem:[%s9170_s0 + %s7723_s22]]   ;;  %s7726_s4 = smov 8  }
   0x7   :  { %9239 = sst [smem:[#allocation73_spill]] %s7802_s5  ;;  %s7727_s10 = smov 9  }
   0x8   :  { %9240 = sst [smem:[#allocation74_spill]] %s7807_s9  ;;  %s7728_s15 = smov 10  }
   0x9   :  { %9241 = sst [smem:[#allocation75_spill]] %s7812_s13  ;;  %s7729_s20 = smov 11  }
   0xa   :  { %9242 = sst [smem:[#allocation76_spill]] %s7817_s17  ;;  %s7731_s1 = smov 13  }
   0xb   :  { %9243 = sst [smem:[#allocation77_spill]] %s7822_s21  ;;  %s7732_s7 = smov 14  }
   0xc   :  { %9244 = sst [smem:[#allocation78_spill]] %s7827_s25  ;;  %s7734_s22 = smov 16  }
   0xd   :  { %s7832_s29 = sld [smem:[%s9170_s0 + %s7724_s26]]   ;;  %s7730_s26 = smov 12  }
   0xe   :  { %s7837_s3 = sld [smem:[%s9170_s0 + %s7725_s30]]   ;;  %s7735_s28 = smov 17  }
   0xf   :  { %s7842_s8 = sld [smem:[%s9170_s0 + %s7726_s4]]  }
  0x10   :  { %s7847_s14 = sld [smem:[%s9170_s0 + %s7727_s10]]  }
  0x11   :  { %s7852_s19 = sld [smem:[%s9170_s0 + %s7728_s15]]   ;;  %s7733_s15 = smov 15  }
  0x12   :  { %s7857_s24 = sld [smem:[%s9170_s0 + %s7729_s20]]  }
  0x13   :  { %9245 = sst [smem:[#allocation79_spill]] %s7832_s29 }
  0x14   :  { %9246 = sst [smem:[#allocation80_spill]] %s7837_s3 }
  0x15   :  { %9247 = sst [smem:[#allocation81_spill]] %s7842_s8 }
  0x16   :  { %9248 = sst [smem:[#allocation82_spill]] %s7847_s14 }
  0x17   :  { %9249 = sst [smem:[#allocation83_spill]] %s7852_s19 }
  0x18   :  { %9250 = sst [smem:[#allocation84_spill]] %s7857_s24 }
  0x19   :  { %s7862_s30 = sld [smem:[%s9170_s0 + %s7730_s26]]  }
  0x1a   :  { %s7867_s6 = sld [smem:[%s9170_s0 + %s7731_s1]]  }
  0x1b   :  { %s7872_s12 = sld [smem:[%s9170_s0 + %s7732_s7]]   ;;  %s7736_s7 = smov 18  }
  0x1c   :  { %s7877_s20 = sld [smem:[%s9170_s0 + %s7733_s15]]   ;;  %s7737_s15 = smov 19  }
  0x1d   :  { %s7882_s27 = sld [smem:[%s9170_s0 + %s7734_s22]]   ;;  %s7738_s22 = smov 20  }
  0x1e   :  { %s7887_s4 = sld [smem:[%s9170_s0 + %s7735_s28]]   ;;  %s7739_s28 = smov 21  }
  0x1f   :  { %9251 = sst [smem:[#allocation85_spill]] %s7862_s30 }
  0x20   :  { %9252 = sst [smem:[#allocation86_spill]] %s7867_s6 }
  0x21   :  { %9253 = sst [smem:[#allocation87_spill]] %s7872_s12 }
  0x22   :  { %9254 = sst [smem:[#allocation88_spill]] %s7877_s20 }
  0x23   :  { %9255 = sst [smem:[#allocation89_spill]] %s7882_s27 }
  0x24   :  { %9256 = sst [smem:[#allocation90_spill]] %s7887_s4 }
  0x25   :  { %s7892_s17 = sld [smem:[%s9170_s0 + %s7736_s7]]   ;;  %s7740_s7 = smov 22  }
  0x26   :  { %s7897_s13 = sld [smem:[%s9170_s0 + %s7737_s15]]   ;;  %s7741_s15 = smov 23  }
  0x27   :  { %s7902_s5 = sld [smem:[%s9170_s0 + %s7738_s22]]   ;;  %s7742_s22 = smov 24  }
  0x28   :  { %s7907_s27 = sld [smem:[%s9170_s0 + %s7739_s28]]   ;;  %s7743_s28 = smov 25  }
  0x29   :  { %s7917_s12 = sld [smem:[%s9170_s0 + %s7741_s15]]   ;;  %s7745_s15 = smov 27  }
  0x2a   :  { %s7927_s30 = sld [smem:[%s9170_s0 + %s7743_s28]]   ;;  %s7747_s28 = smov 29  }
  0x2b   :  { %9257 = sst [smem:[#allocation91_spill]] %s7892_s17 }
  0x2c   :  { %9258 = sst [smem:[#allocation92_spill]] %s7897_s13 }
  0x2d   :  { %9259 = sst [smem:[#allocation93_spill]] %s7902_s5 }
  0x2e   :  { %9260 = sst [smem:[#allocation94_spill]] %s7907_s27 }
  0x2f   :  { %s7912_s17 = sld [smem:[%s9170_s0 + %s7740_s7]]   ;;  %s7744_s7 = smov 26  }
  0x30   :  { %9262 = sst [smem:[#allocation96_spill]] %s7917_s12 }
  0x31   :  { %s7922_s5 = sld [smem:[%s9170_s0 + %s7742_s22]]   ;;  %s7746_s22 = smov 28  }
  0x32   :  { %9264 = sst [smem:[#allocation98_spill]] %s7927_s30 }
  0x33   :  { %s7937_s19 = sld [smem:[%s9170_s0 + %s7745_s15]]  }
  0x34   :  { %s7947_s8 = sld [smem:[%s9170_s0 + %s7747_s28]]  }
  0x35   :  { %9261 = sst [smem:[#allocation95_spill]] %s7912_s17 }
  0x36   :  { %s7932_s17 = sld [smem:[%s9170_s0 + %s7744_s7]]   ;;  %s7748_s7 = smov 30  }
  0x37   :  { %9263 = sst [smem:[#allocation97_spill]] %s7922_s5 }
  0x38   :  { %s7942_s5 = sld [smem:[%s9170_s0 + %s7746_s22]]  }
  0x39   :  { %9266 = sst [smem:[#allocation100_spill]] %s7937_s19 }
  0x3a   :  { %9268 = sst [smem:[#allocation102_spill]] %s7947_s8 }
  0x3c   :  { %9265 = sst [smem:[#allocation99_spill]] %s7932_s17 }
  0x3d   :  { %s7952_s17 = sld [smem:[%s9170_s0 + %s7748_s7]]  }
  0x3e   :  { %9267 = sst [smem:[#allocation101_spill]] %s7942_s5 }
  0x43   :  { %9269 = sst [smem:[#allocation103_spill]] %s7952_s17 }
  0x44   :  { %66 = vsyncpa [#allocation7], 0 }
  0x45   :  { %68 = vsyncpa [#allocation7 + $0x1], 0 }
  0x46   :  { %69 = vsyncpa [#allocation10], 0 }
  0x47   :  { %71 = vsyncpa [#allocation10 + $0x1], 0 }
  0x48   :  { %72 = vsyncpa [#allocation13], 0 }
  0x49   :  { %74 = vsyncpa [#allocation13 + $0x1], 0 }
  0x4a   :  { %75 = vsyncpa [#allocation16], 0 }
  0x4b   :  { %76 = vsyncpa [#allocation19], 0 }
  0x4c   :  { %77 = vsyncpa [#allocation22], 0 }
  0x4d   :  { %78 = vsyncpa [#allocation25], 0 }
  0x4e   :  { %79 = vsyncpa [#allocation28], 0 }
  0x4f   :  { %80 = vsyncpa [#allocation31], 0 }
  0x50   :  { %81 = vsyncpa [#allocation34], 0 }
  0x51   :  { %82 = vsyncpa [#allocation37], 0 }
  0x52   :  { %83 = vsyncpa [#allocation40], 0 }
  0x53   :  { %84 = vsyncpa [#allocation43], 0 }
  0x54   :  { %85 = vsyncpa [#allocation46], 0 }
  0x55   :  { %86 = vsyncpa [#allocation49], 0 }
  0x56   :  { %87 = vsyncpa [#allocation52], 0 }
  0x57   :  { %88 = vsyncpa [#allocation8], 0 }
  0x58   :  { %90 = vsyncpa [#allocation8 + $0x1], 0  ;;  %s7954_s0 = smov 0   ;;  %s7956_s15 = smov 0  }
  0x59   :  { %s7958_s16 = smov 0   ;;  %s7960_s18 = smov 0  }
  0x5a   :  { %s7962_s22 = smov 0   ;;  %s7964_s23 = smov 0  }
  0x5b   :  { %s7966_s26 = smov 0   ;;  %s7968_s28 = smov 0  }
  0x5c   :  { %s7970_s1 = smov 0   ;;  %s7972_s2 = smov 0  }
  0x5d   :  { %s7974_s7 = smov 0  }
  0x5e LB: > { %s9270_s30 = sld [smem:[#allocation98_spill]]  ;;  %s9271_s27 = sld [smem:[#allocation94_spill]]  ;;  %s7681_s15 = sphi %s7956_s15, %s9373_s15   ;;  %s7677_s0 = sphi %s7954_s0, %s9372_s0   ;;  %s7717_s7 = sphi %s7974_s7, %s96_s7   ;;  %s7713_s2 = sphi %s7972_s2, %s9379_s2   ;;  %s7709_s1 = sphi %s7970_s1, %s9378_s1   ;;  %s7705_s28 = sphi %s7968_s28, %s9371_s28   ;;  %s7701_s26 = sphi %s7966_s26, %s9370_s26   ;;  %s7697_s23 = sphi %s7964_s23, %s9377_s23   ;;  %s7693_s22 = sphi %s7962_s22, %s9376_s22   ;;  %s7689_s18 = sphi %s7960_s18, %s9375_s18   ;;  %s7685_s16 = sphi %s7958_s16, %s9374_s16  }
  0x5f   : > { %s9272_s25 = sld [smem:[#allocation78_spill]]  ;;  %s9273_s24 = sld [smem:[#allocation84_spill]] }
  0x60   : > { %s9274_s21 = sld [smem:[#allocation77_spill]]  ;;  %s9275_s20 = sld [smem:[#allocation88_spill]] }
  0x61   : > { %s9276_s19 = sld [smem:[#allocation100_spill]]  ;;  %s9277_s14 = sld [smem:[#allocation82_spill]] }
  0x62   : > { %s9278_s13 = sld [smem:[#allocation92_spill]]  ;;  %s9279_s12 = sld [smem:[#allocation96_spill]] }
  0x63   : > { %s9280_s6 = sld [smem:[#allocation86_spill]]  ;;  %s9281_s4 = sld [smem:[#allocation90_spill]] }
  0x64   : > { %s9282_s3 = sld [smem:[#allocation80_spill]]  ;;  %9283 = sst [smem:[#allocation104_spill]] %s7701_s26 }
  0x65   : > { %9284 = sst [smem:[#allocation105_spill]] %s7705_s28  ;;  %s8010_s10 = sadd.s32 4294967295, %s7717_s7  }
  0x66   : > { %9285 = sst [smem:[#allocation106_spill]] %s7709_s1  ;;  %p5504_p0 = scmp.ge.s32.totalorder %s7717_s7, 1 }
  0x67   : > { %9286 = sst [smem:[#allocation107_spill]] %s7713_s2  ;;  %p9191_p1 = scmp.eq.s32.totalorder %s8010_s10, 0 }
  0x68   : > { %p795_p2 = scmp.lt.s32.totalorder %s7717_s7, 5  ;;  %s7749_s17 = smov [#allocation14]  }
  0x69   : > { %s807_s28 = sshll.u32 %s7749_s17, 4  ;;  %s7750_s1 = smov [#allocation15]   ;;  %s8019_s28 = int_to_ptr.vmem [resolvable:$true] %s807_s28 }
  0x6a   : > { %p8015_p3 = pnand %p5504_p0, %p795_p2  ;;  %s821_s8 = sshll.u32 %s7750_s1, 4  ;;  %s8029_s8 = int_to_ptr.vmem [resolvable:$true] %s821_s8 }
  0x6b   : > { %s7751_s5 = smov [#allocation18]   ;;  %s6679_s9 = scalar_lea.hbm %s9274_s21, 1024 }
  0x6c   : > { %s9287_s11 = scalar_select %p8015_p3, 1, 0 }
  0x6d   : > { %p6228_p4 = pneg %p8015_p3  ;;  %s8031_s29 = sshll.u32 %s7751_s5, 4  ;;  %s846_s29 = int_to_ptr.vmem [resolvable:$true] %s8031_s29 }
  0x6e   : > { %9288 = sst [smem:[#allocation108_spill]] %s9287_s11  ;;  %p6680_p6 = scmp.ne.s32.totalorder %s9274_s21, %s6679_s9 }
  0x6f   : > { %p8025_p5 = pnand %p6228_p4, %p9191_p1  ;;  %p6686_p10 = scmp.lt.u32.totalorder %s6679_s9, %s9274_s21 }
  0x71   : > { %s9289_s26 = scalar_select %p8025_p5, 1, 0 }
  0x72   : > { %p8037_p7 = pneg %p8025_p5 }
  0x74   : > { %s9290_s17 = scalar_select %p8037_p7, 1, 0 }
  0x75   : > { %p6682_p8 = pnand %p8037_p7, %p6680_p6 }
  0x77   : > { %p6683_p9 = pneg %p6682_p8 }
  0x79   : > { %p6688_p11 = pnand %p6686_p10, %p6683_p9 }
  0x7b   : > { %6691 = shalt.err (!%p6688_p11)
}
  0x7c   : > { %s6692_s5 = scalar_lea.vmem %s8019_s28, 1024  ;;  %p6700_p2 = scmp.lt.s32.totalorder %s8019_s28, %s8019_s28 }
  0x7d   : > { %p6693_p12 = scmp.ne.s32.totalorder %s8019_s28, %s6692_s5  ;;  %p6701_p4 = scmp.lt.s32.totalorder %s6692_s5, %s6692_s5 }
  0x7f   : > { %p6695_p13 = pnand %p6693_p12, %p8037_p7  ;;  %p6702_p1 = por %p6701_p4, %p6700_p2 }
  0x81   : > { %p6696_p0 = pneg %p6695_p13 }
  0x83   : > { %p6703_p3 = pnand %p6702_p1, %p6696_p0 }
  0x85   : > { %6706 = shalt.err (!%p6703_p3)
}
  0x86   : > { %s9195_s1 = smov 64   ;;  %s9197_s9 = smov 4  }
  0x87   : > { %6231 = dma.hbm_to_vmem [thread:$0]  (!%p8025_p5), %s9274_s21, 1024, %s8019_s28, [#allocation13], %s9195_s1, %s9195_s1, %s9197_s9  }
  0x88   : > { %s6707_s11 = scalar_lea.hbm %s9272_s25, 16 }
  0x89   : > { %p6708_p6 = scmp.ne.s32.totalorder %s9272_s25, %s6707_s11  ;;  %p6714_p3 = scmp.lt.u32.totalorder %s6707_s11, %s9272_s25 }
  0x8b   : > { %p6710_p8 = pnand %p6708_p6, %p8037_p7 }
  0x8d   : > { %p6711_p1 = pneg %p6710_p8 }
  0x8f   : > { %p6716_p9 = pnand %p6714_p3, %p6711_p1 }
  0x91   : > { %6719 = shalt.err (!%p6716_p9)
}
  0x92   : > { %s6720_s5 = scalar_lea.vmem %s8029_s8, 16  ;;  %s6727_s2 = scalar_lea.vmem %s8029_s8, 32 }
  0x93   : > { %p6721_p10 = scmp.ne.s32.totalorder %s8029_s8, %s6720_s5  ;;  %p6728_p13 = scmp.lt.s32.totalorder %s8029_s8, %s8029_s8 }
  0x94   : > { %p6729_p0 = scmp.lt.s32.totalorder %s6727_s2, %s6720_s5 }
  0x95   : > { %p6723_p11 = pnand %p6721_p10, %p8037_p7 }
  0x96   : > { %p6730_p2 = por %p6729_p0, %p6728_p13 }
  0x97   : > { %p6724_p12 = pneg %p6723_p11 }
  0x99   : > { %p6731_p4 = pnand %p6730_p2, %p6724_p12 }
  0x9b   : > { %6734 = shalt.err (!%p6731_p4)
}
  0x9c   : > { %6234 = dma.hbm_to_vmem [thread:$0]  (!%p8025_p5), %s9272_s25, 16, %s8029_s8, [#allocation16]  }
  0x9d   : > { %s6735_s28 = scalar_lea.hbm %s9282_s3, 16 }
  0x9e   : > { %p6736_p6 = scmp.ne.s32.totalorder %s9282_s3, %s6735_s28  ;;  %p6742_p3 = scmp.lt.u32.totalorder %s6735_s28, %s9282_s3 }
  0xa0   : > { %p6738_p8 = pnand %p6736_p6, %p8037_p7 }
  0xa2   : > { %p6739_p1 = pneg %p6738_p8 }
  0xa4   : > { %p6744_p9 = pnand %p6742_p3, %p6739_p1 }
  0xa6   : > { %6747 = shalt.err (!%p6744_p9)
}
  0xa7   : > { %s6748_s2 = scalar_lea.vmem %s846_s29, 16  ;;  %s6755_s11 = scalar_lea.vmem %s846_s29, 32 }
  0xa8   : > { %p6749_p10 = scmp.ne.s32.totalorder %s846_s29, %s6748_s2  ;;  %p6756_p13 = scmp.lt.s32.totalorder %s846_s29, %s846_s29 }
  0xa9   : > { %p6757_p0 = scmp.lt.s32.totalorder %s6755_s11, %s6748_s2 }
  0xaa   : > { %p6751_p11 = pnand %p6749_p10, %p8037_p7 }
  0xab   : > { %p6758_p2 = por %p6757_p0, %p6756_p13 }
  0xac   : > { %p6752_p12 = pneg %p6751_p11 }
  0xae   : > { %p6759_p4 = pnand %p6758_p2, %p6752_p12 }
  0xb0   : > { %6762 = shalt.err (!%p6759_p4)
}
  0xb1   : > { %6240 = dma.hbm_to_vmem [thread:$0]  (!%p8025_p5), %s9282_s3, 16, %s846_s29, [#allocation19]  }
  0xb2   : > { %s7754_s8 = smov [#allocation21]   ;;  %s7755_s28 = smov [#allocation24]  }
  0xb3   : > { %s869_s5 = sshll.u32 %s7754_s8, 4  ;;  %s893_s1 = sshll.u32 %s7755_s28, 4  ;;  %s870_s5 = int_to_ptr.vmem [resolvable:$true] %s869_s5  ;;  %s894_s1 = int_to_ptr.vmem [resolvable:$true] %s893_s1 }
  0xb4   : > { %s6763_s9 = scalar_lea.hbm %s9277_s14, 16 }
  0xb5   : > { %p6764_p6 = scmp.ne.s32.totalorder %s9277_s14, %s6763_s9  ;;  %p6770_p3 = scmp.lt.u32.totalorder %s6763_s9, %s9277_s14 }
  0xb7   : > { %p6766_p8 = pnand %p6764_p6, %p8037_p7 }
  0xb9   : > { %p6767_p1 = pneg %p6766_p8 }
  0xbb   : > { %p6772_p9 = pnand %p6770_p3, %p6767_p1 }
  0xbd   : > { %6775 = shalt.err (!%p6772_p9)
}
  0xbe   : > { %s6776_s2 = scalar_lea.vmem %s870_s5, 16  ;;  %s6783_s29 = scalar_lea.vmem %s870_s5, 32 }
  0xbf   : > { %p6777_p10 = scmp.ne.s32.totalorder %s870_s5, %s6776_s2  ;;  %p6784_p13 = scmp.lt.s32.totalorder %s870_s5, %s870_s5 }
  0xc0   : > { %p6785_p0 = scmp.lt.s32.totalorder %s6783_s29, %s6776_s2 }
  0xc1   : > { %p6779_p11 = pnand %p6777_p10, %p8037_p7 }
  0xc2   : > { %p6786_p2 = por %p6785_p0, %p6784_p13 }
  0xc3   : > { %p6780_p12 = pneg %p6779_p11 }
  0xc5   : > { %p6787_p4 = pnand %p6786_p2, %p6780_p12 }
  0xc7   : > { %6790 = shalt.err (!%p6787_p4)
}
  0xc8   : > { %6246 = dma.hbm_to_vmem [thread:$0]  (!%p8025_p5), %s9277_s14, 16, %s870_s5, [#allocation22]  }
  0xc9   : > { %s6791_s9 = scalar_lea.hbm %s9273_s24, 16 }
  0xca   : > { %p6792_p6 = scmp.ne.s32.totalorder %s9273_s24, %s6791_s9  ;;  %p6798_p3 = scmp.lt.u32.totalorder %s6791_s9, %s9273_s24 }
  0xcc   : > { %p6794_p8 = pnand %p6792_p6, %p8037_p7 }
  0xce   : > { %p6795_p1 = pneg %p6794_p8 }
  0xd0   : > { %p6800_p9 = pnand %p6798_p3, %p6795_p1 }
  0xd2   : > { %6803 = shalt.err (!%p6800_p9)
}
  0xd3   : > { %s6804_s11 = scalar_lea.vmem %s894_s1, 16  ;;  %s6811_s8 = scalar_lea.vmem %s894_s1, 32 }
  0xd4   : > { %p6805_p10 = scmp.ne.s32.totalorder %s894_s1, %s6804_s11  ;;  %p6812_p13 = scmp.lt.s32.totalorder %s894_s1, %s894_s1 }
  0xd5   : > { %p6813_p0 = scmp.lt.s32.totalorder %s6811_s8, %s6804_s11 }
  0xd6   : > { %p6807_p11 = pnand %p6805_p10, %p8037_p7 }
  0xd7   : > { %p6814_p2 = por %p6813_p0, %p6812_p13 }
  0xd8   : > { %p6808_p12 = pneg %p6807_p11 }
  0xda   : > { %p6815_p4 = pnand %p6814_p2, %p6808_p12 }
  0xdc   : > { %6818 = shalt.err (!%p6815_p4)
}
  0xdd   : > { %6252 = dma.hbm_to_vmem [thread:$0]  (!%p8025_p5), %s9273_s24, 16, %s894_s1, [#allocation25]  }
  0xde   : > { %s7756_s5 = smov [#allocation27]   ;;  %s7757_s2 = smov [#allocation30]  }
  0xdf   : > { %s915_s28 = sshll.u32 %s7756_s5, 4  ;;  %s939_s29 = sshll.u32 %s7757_s2, 4  ;;  %s916_s28 = int_to_ptr.vmem [resolvable:$true] %s915_s28  ;;  %s940_s29 = int_to_ptr.vmem [resolvable:$true] %s939_s29 }
  0xe0   : > { %s6819_s9 = scalar_lea.hbm %s9280_s6, 16 }
  0xe1   : > { %p6820_p6 = scmp.ne.s32.totalorder %s9280_s6, %s6819_s9  ;;  %p6826_p3 = scmp.lt.u32.totalorder %s6819_s9, %s9280_s6 }
  0xe3   : > { %p6822_p8 = pnand %p6820_p6, %p8037_p7 }
  0xe5   : > { %p6823_p1 = pneg %p6822_p8 }
  0xe7   : > { %p6828_p9 = pnand %p6826_p3, %p6823_p1 }
  0xe9   : > { %6831 = shalt.err (!%p6828_p9)
}
  0xea   : > { %s6832_s11 = scalar_lea.vmem %s916_s28, 16  ;;  %s6839_s1 = scalar_lea.vmem %s916_s28, 32 }
  0xeb   : > { %p6833_p10 = scmp.ne.s32.totalorder %s916_s28, %s6832_s11  ;;  %p6840_p13 = scmp.lt.s32.totalorder %s916_s28, %s916_s28 }
  0xec   : > { %p6841_p0 = scmp.lt.s32.totalorder %s6839_s1, %s6832_s11 }
  0xed   : > { %p6835_p11 = pnand %p6833_p10, %p8037_p7 }
  0xee   : > { %p6842_p2 = por %p6841_p0, %p6840_p13 }
  0xef   : > { %p6836_p12 = pneg %p6835_p11 }
  0xf1   : > { %p6843_p4 = pnand %p6842_p2, %p6836_p12 }
  0xf3   : > { %6846 = shalt.err (!%p6843_p4)
}
  0xf4   : > { %6258 = dma.hbm_to_vmem [thread:$0]  (!%p8025_p5), %s9280_s6, 16, %s916_s28, [#allocation28]  }
  0xf5   : > { %s6847_s8 = scalar_lea.hbm %s9275_s20, 16 }
  0xf6   : > { %p6848_p6 = scmp.ne.s32.totalorder %s9275_s20, %s6847_s8  ;;  %p6854_p3 = scmp.lt.u32.totalorder %s6847_s8, %s9275_s20 }
  0xf8   : > { %p6850_p8 = pnand %p6848_p6, %p8037_p7 }
  0xfa   : > { %p6851_p1 = pneg %p6850_p8 }
  0xfc   : > { %p6856_p9 = pnand %p6854_p3, %p6851_p1 }
  0xfe   : > { %6859 = shalt.err (!%p6856_p9)
}
  0xff   : > { %s6860_s5 = scalar_lea.vmem %s940_s29, 16  ;;  %s6867_s2 = scalar_lea.vmem %s940_s29, 32 }
 0x100   : > { %p6861_p10 = scmp.ne.s32.totalorder %s940_s29, %s6860_s5  ;;  %p6868_p13 = scmp.lt.s32.totalorder %s940_s29, %s940_s29 }
 0x101   : > { %p6869_p0 = scmp.lt.s32.totalorder %s6867_s2, %s6860_s5 }
 0x102   : > { %p6863_p11 = pnand %p6861_p10, %p8037_p7 }
 0x103   : > { %p6870_p2 = por %p6869_p0, %p6868_p13 }
 0x104   : > { %p6864_p12 = pneg %p6863_p11 }
 0x106   : > { %p6871_p4 = pnand %p6870_p2, %p6864_p12 }
 0x108   : > { %6874 = shalt.err (!%p6871_p4)
}
 0x109   : > { %6264 = dma.hbm_to_vmem [thread:$0]  (!%p8025_p5), %s9275_s20, 16, %s940_s29, [#allocation31]  }
 0x10a   : > { %s7758_s28 = smov [#allocation33]   ;;  %s7759_s11 = smov [#allocation36]  }
 0x10b   : > { %s963_s9 = sshll.u32 %s7758_s28, 4  ;;  %s987_s1 = sshll.u32 %s7759_s11, 4  ;;  %s964_s9 = int_to_ptr.vmem [resolvable:$true] %s963_s9  ;;  %s988_s1 = int_to_ptr.vmem [resolvable:$true] %s987_s1 }
 0x10c   : > { %s6875_s8 = scalar_lea.hbm %s9281_s4, 16 }
 0x10d   : > { %p6876_p6 = scmp.ne.s32.totalorder %s9281_s4, %s6875_s8  ;;  %p6882_p3 = scmp.lt.u32.totalorder %s6875_s8, %s9281_s4 }
 0x10f   : > { %p6878_p8 = pnand %p6876_p6, %p8037_p7 }
 0x111   : > { %p6879_p1 = pneg %p6878_p8 }
 0x113   : > { %p6884_p9 = pnand %p6882_p3, %p6879_p1 }
 0x115   : > { %6887 = shalt.err (!%p6884_p9)
}
 0x116   : > { %s6888_s5 = scalar_lea.vmem %s964_s9, 16  ;;  %s6895_s29 = scalar_lea.vmem %s964_s9, 32 }
 0x117   : > { %p6889_p10 = scmp.ne.s32.totalorder %s964_s9, %s6888_s5  ;;  %p6896_p13 = scmp.lt.s32.totalorder %s964_s9, %s964_s9 }
 0x118   : > { %p6897_p0 = scmp.lt.s32.totalorder %s6895_s29, %s6888_s5 }
 0x119   : > { %p6891_p11 = pnand %p6889_p10, %p8037_p7 }
 0x11a   : > { %p6898_p2 = por %p6897_p0, %p6896_p13 }
 0x11b   : > { %p6892_p12 = pneg %p6891_p11 }
 0x11d   : > { %p6899_p4 = pnand %p6898_p2, %p6892_p12 }
 0x11f   : > { %6902 = shalt.err (!%p6899_p4)
}
 0x120   : > { %6270 = dma.hbm_to_vmem [thread:$0]  (!%p8025_p5), %s9281_s4, 16, %s964_s9, [#allocation34]  }
 0x121   : > { %s6903_s2 = scalar_lea.hbm %s9278_s13, 16 }
 0x122   : > { %p6904_p6 = scmp.ne.s32.totalorder %s9278_s13, %s6903_s2  ;;  %p6910_p3 = scmp.lt.u32.totalorder %s6903_s2, %s9278_s13 }
 0x124   : > { %p6906_p8 = pnand %p6904_p6, %p8037_p7 }
 0x126   : > { %p6907_p1 = pneg %p6906_p8 }
 0x128   : > { %p6912_p9 = pnand %p6910_p3, %p6907_p1 }
 0x12a   : > { %6915 = shalt.err (!%p6912_p9)
}
 0x12b   : > { %s6916_s28 = scalar_lea.vmem %s988_s1, 16  ;;  %s6923_s11 = scalar_lea.vmem %s988_s1, 32 }
 0x12c   : > { %p6917_p10 = scmp.ne.s32.totalorder %s988_s1, %s6916_s28  ;;  %p6924_p13 = scmp.lt.s32.totalorder %s988_s1, %s988_s1 }
 0x12d   : > { %p6925_p0 = scmp.lt.s32.totalorder %s6923_s11, %s6916_s28 }
 0x12e   : > { %p6919_p11 = pnand %p6917_p10, %p8037_p7 }
 0x12f   : > { %p6926_p2 = por %p6925_p0, %p6924_p13 }
 0x130   : > { %p6920_p12 = pneg %p6919_p11 }
 0x132   : > { %p6927_p4 = pnand %p6926_p2, %p6920_p12 }
 0x134   : > { %6930 = shalt.err (!%p6927_p4)
}
 0x135   : > { %6276 = dma.hbm_to_vmem [thread:$0]  (!%p8025_p5), %s9278_s13, 16, %s988_s1, [#allocation37]  }
 0x136   : > { %s7760_s9 = smov [#allocation39]   ;;  %s7761_s5 = smov [#allocation42]  }
 0x137   : > { %s1011_s8 = sshll.u32 %s7760_s9, 4  ;;  %s1033_s29 = sshll.u32 %s7761_s5, 4  ;;  %s1012_s8 = int_to_ptr.vmem [resolvable:$true] %s1011_s8  ;;  %s1034_s29 = int_to_ptr.vmem [resolvable:$true] %s1033_s29 }
 0x138   : > { %s6931_s2 = scalar_lea.hbm %s9271_s27, 16 }
 0x139   : > { %p6932_p6 = scmp.ne.s32.totalorder %s9271_s27, %s6931_s2  ;;  %p6938_p3 = scmp.lt.u32.totalorder %s6931_s2, %s9271_s27 }
 0x13b   : > { %p6934_p8 = pnand %p6932_p6, %p8037_p7 }
 0x13d   : > { %p6935_p1 = pneg %p6934_p8 }
 0x13f   : > { %p6940_p9 = pnand %p6938_p3, %p6935_p1 }
 0x141   : > { %6943 = shalt.err (!%p6940_p9)
}
 0x142   : > { %s6944_s28 = scalar_lea.vmem %s1012_s8, 16  ;;  %s6951_s1 = scalar_lea.vmem %s1012_s8, 32 }
 0x143   : > { %p6945_p10 = scmp.ne.s32.totalorder %s1012_s8, %s6944_s28  ;;  %p6952_p13 = scmp.lt.s32.totalorder %s1012_s8, %s1012_s8 }
 0x144   : > { %p6953_p0 = scmp.lt.s32.totalorder %s6951_s1, %s6944_s28 }
 0x145   : > { %p6947_p11 = pnand %p6945_p10, %p8037_p7 }
 0x146   : > { %p6954_p2 = por %p6953_p0, %p6952_p13 }
 0x147   : > { %p6948_p12 = pneg %p6947_p11 }
 0x149   : > { %p6955_p4 = pnand %p6954_p2, %p6948_p12 }
 0x14b   : > { %6958 = shalt.err (!%p6955_p4)
}
 0x14c   : > { %6282 = dma.hbm_to_vmem [thread:$0]  (!%p8025_p5), %s9271_s27, 16, %s1012_s8, [#allocation40]  }
 0x14d   : > { %s6959_s11 = scalar_lea.hbm %s9279_s12, 16 }
 0x14e   : > { %p6960_p6 = scmp.ne.s32.totalorder %s9279_s12, %s6959_s11  ;;  %p6966_p3 = scmp.lt.u32.totalorder %s6959_s11, %s9279_s12 }
 0x150   : > { %p6962_p8 = pnand %p6960_p6, %p8037_p7 }
 0x152   : > { %p6963_p1 = pneg %p6962_p8 }
 0x154   : > { %p6968_p9 = pnand %p6966_p3, %p6963_p1 }
 0x156   : > { %6971 = shalt.err (!%p6968_p9)
}
 0x157   : > { %s6972_s9 = scalar_lea.vmem %s1034_s29, 16  ;;  %s6979_s5 = scalar_lea.vmem %s1034_s29, 32 }
 0x158   : > { %p6973_p10 = scmp.ne.s32.totalorder %s1034_s29, %s6972_s9  ;;  %p6980_p13 = scmp.lt.s32.totalorder %s1034_s29, %s1034_s29 }
 0x159   : > { %p6981_p0 = scmp.lt.s32.totalorder %s6979_s5, %s6972_s9 }
 0x15a   : > { %p6975_p11 = pnand %p6973_p10, %p8037_p7 }
 0x15b   : > { %p6982_p2 = por %p6981_p0, %p6980_p13 }
 0x15c   : > { %p6976_p12 = pneg %p6975_p11 }
 0x15e   : > { %p6983_p4 = pnand %p6982_p2, %p6976_p12 }
 0x160   : > { %6986 = shalt.err (!%p6983_p4)
}
 0x161   : > { %6288 = dma.hbm_to_vmem [thread:$0]  (!%p8025_p5), %s9279_s12, 16, %s1034_s29, [#allocation43]  }
 0x162   : > { %s7762_s8 = smov [#allocation45]   ;;  %s7763_s28 = smov [#allocation48]  }
 0x163   : > { %s1057_s2 = sshll.u32 %s7762_s8, 4  ;;  %s1081_s1 = sshll.u32 %s7763_s28, 4  ;;  %s1058_s2 = int_to_ptr.vmem [resolvable:$true] %s1057_s2  ;;  %s1082_s1 = int_to_ptr.vmem [resolvable:$true] %s1081_s1 }
 0x164   : > { %s6987_s11 = scalar_lea.hbm %s9270_s30, 32 }
 0x165   : > { %p6988_p6 = scmp.ne.s32.totalorder %s9270_s30, %s6987_s11  ;;  %p6994_p3 = scmp.lt.u32.totalorder %s6987_s11, %s9270_s30 }
 0x167   : > { %p6990_p8 = pnand %p6988_p6, %p8037_p7 }
 0x169   : > { %p6991_p1 = pneg %p6990_p8 }
 0x16b   : > { %p6996_p9 = pnand %p6994_p3, %p6991_p1 }
 0x16d   : > { %6999 = shalt.err (!%p6996_p9)
}
 0x16e   : > { %s7000_s9 = scalar_lea.vmem %s1058_s2, 32  ;;  %p7008_p13 = scmp.lt.s32.totalorder %s1058_s2, %s1058_s2 }
 0x16f   : > { %p7001_p10 = scmp.ne.s32.totalorder %s1058_s2, %s7000_s9  ;;  %p7009_p0 = scmp.lt.s32.totalorder %s7000_s9, %s7000_s9 }
 0x171   : > { %p7003_p11 = pnand %p7001_p10, %p8037_p7  ;;  %p7010_p2 = por %p7009_p0, %p7008_p13 }
 0x173   : > { %p7004_p12 = pneg %p7003_p11 }
 0x175   : > { %p7011_p4 = pnand %p7010_p2, %p7004_p12 }
 0x177   : > { %7014 = shalt.err (!%p7011_p4)
}
 0x178   : > { %6294 = dma.hbm_to_vmem [thread:$0]  (!%p8025_p5), %s9270_s30, 32, %s1058_s2, [#allocation46]  }
 0x179   : > { %s7015_s29 = scalar_lea.hbm %s9276_s19, 16 }
 0x17a   : > { %p7016_p6 = scmp.ne.s32.totalorder %s9276_s19, %s7015_s29  ;;  %p7022_p3 = scmp.lt.u32.totalorder %s7015_s29, %s9276_s19 }
 0x17c   : > { %p7018_p8 = pnand %p7016_p6, %p8037_p7 }
 0x17e   : > { %p7019_p1 = pneg %p7018_p8 }
 0x180   : > { %p7024_p9 = pnand %p7022_p3, %p7019_p1 }
 0x182   : > { %7027 = shalt.err (!%p7024_p9)
}
 0x183   : > { %s7028_s5 = scalar_lea.vmem %s1082_s1, 16  ;;  %s7035_s8 = scalar_lea.vmem %s1082_s1, 32 }
 0x184   : > { %p7029_p10 = scmp.ne.s32.totalorder %s1082_s1, %s7028_s5  ;;  %p7036_p13 = scmp.lt.s32.totalorder %s1082_s1, %s1082_s1 }
 0x185   : > { %p7037_p0 = scmp.lt.s32.totalorder %s7035_s8, %s7028_s5 }
 0x186   : > { %p7031_p11 = pnand %p7029_p10, %p8037_p7 }
 0x187   : > { %p7038_p2 = por %p7037_p0, %p7036_p13 }
 0x188   : > { %p7032_p12 = pneg %p7031_p11 }
 0x18a   : > { %p7039_p4 = pnand %p7038_p2, %p7032_p12 }
 0x18c   : > { %7042 = shalt.err (!%p7039_p4)
}
 0x18d   : > { %6300 = dma.hbm_to_vmem [thread:$0]  (!%p8025_p5), %s9276_s19, 16, %s1082_s1, [#allocation49]  }
 0x18e   : > { %s5503_s2 = sadd.s32 4294967294, %s7717_s7   ;;  %p122_p6 = scmp.ne.s32.totalorder %s7697_s23, %s7693_s22 }
 0x18f   : > { %p123_p8 = scmp.eq.s32.totalorder %s7717_s7, 0  ;;  %p128_p1 = scmp.ne.s32.totalorder %s7693_s22, %s7689_s18 }
 0x190   : > { %p176_p3 = scmp.ne.s32.totalorder %s7685_s16, %s7681_s15  ;;  %s9291_s11 = sld [smem:[#allocation107_spill]] }
 0x191   : > { %p182_p9 = scmp.ne.s32.totalorder %s7681_s15, %s7677_s0  ;;  %s9292_s9 = sld [smem:[#allocation74_spill]] }
 0x192   : > { %p124_p10 = por %p123_p8, %p122_p6  ;;  %p9293_p11 = scmp.eq.s32.totalorder %s8010_s10, 0 }
 0x193   : > { %p8201_p13 = por %p176_p3, %p123_p8  ;;  %p782_p4 = scmp.eq.s32.totalorder %s8010_s10, 3 }
 0x194   : > { %p8197_p12 = por %p9293_p11, %p128_p1  ;;  %p9296_p0 = pmov %p9293_p11 }
 0x195   : > { %p788_p5 = scmp.eq.s32.totalorder %s5503_s2, 3  ;;  %p6350_p6 = scmp.lt.s32.totalorder %s7717_s7, 4 }
 0x196   : > { %s9294_s29 = scalar_select %p8197_p12, 1, 0 }
 0x197   : > { %p8207_p2 = por %p182_p9, %p9296_p0  ;;  %s8214_s18 = sand.u32 1, %s7697_s23  }
 0x198   : > { %p8216_p1 = por %p782_p4, %p176_p3  ;;  %p8220_p8 = por %p788_p5, %p182_p9 }
 0x199   : > { %s9297_s1 = scalar_select %p8207_p2, 1, 0 }
 0x19a   : > { %s9298_s8 = scalar_select %p8216_p1, 1, 0 }
 0x19b   : > { %s9299_s28 = scalar_select %p8220_p8, 1, 0 }
 0x19c   : > { %p8227_p11 = pnand %p6350_p6, %p124_p10  ;;  %s9216_s2 = sand.u32 1, %s7717_s7  }
 0x19d   : > { %s5535_s6 = sshll.u32 %s8214_s18, 2  ;;  %s5536_s12 = sshll.u32 %s9291_s11, 6 }
 0x19e   : > { %s9300_s4 = scalar_select %p8227_p11, 1, 0 }
 0x19f   : > { %s8235_s13 = scalar_lea.hbm %s9292_s9, %s5536_s12  ;;  %s1139_s14 = scalar_lea.vmem [#allocation9], %s5535_s6 }
 0x1a0   : > { %s1146_s3 = sshll.u32 %s1139_s14, 4  ;;  %p8243_p5 = pnand %p6350_p6, %p8201_p13  ;;  %s8237_s3 = int_to_ptr.vmem [resolvable:$true] %s1146_s3 }
 0x1a1   : > { %s8249_s20 = scalar_lea.sflag [#allocation10], %s9216_s2  ;;  %s7043_s21 = scalar_lea.hbm %s8235_s13, 64 }
 0x1a2   : > { %s9301_s19 = scalar_select %p8243_p5, 1, 0 }
 0x1a3   : > { %p7044_p3 = scmp.ne.s32.totalorder %s8235_s13, %s7043_s21  ;;  %p9219_p9 = pneg %p8227_p11 }
 0x1a4   : > { %s7048_s14 = scalar_lea.hbm %s9292_s9, 128  ;;  %p7049_p4 = scmp.lt.u32.totalorder %s8235_s13, %s9292_s9 }
 0x1a5   : > { %p7046_p10 = pnand %p9219_p9, %p7044_p3  ;;  %p7050_p8 = scmp.lt.u32.totalorder %s7048_s14, %s7043_s21 }
 0x1a6   : > { %p7052_p2 = scmp.lt.u32.totalorder %s7043_s21, %s8235_s13 }
 0x1a7   : > { %p7047_p0 = pneg %p7046_p10  ;;  %p7051_p1 = por %p7050_p8, %p7049_p4 }
 0x1a9   : > { %p7053_p13 = por %p7052_p2, %p7051_p1 }
 0x1ab   : > { %p7054_p6 = pnand %p7053_p13, %p7047_p0 }
 0x1ad   : > { %7057 = shalt.err (!%p7054_p6)
}
 0x1ae   : > { %s7058_s6 = scalar_lea.vmem %s8237_s3, 64  ;;  %s7764_s12 = smov [#allocation9]  }
 0x1af   : > { %p7059_p12 = scmp.ne.s32.totalorder %s8237_s3, %s7058_s6  ;;  %s7063_s5 = sshll.u32 %s7764_s12, 4  ;;  %s7064_s5 = int_to_ptr.vmem [resolvable:$false] %s7063_s5 }
 0x1b0   : > { %s7065_s2 = scalar_lea.vmem %s7064_s5, 128  ;;  %p7066_p3 = scmp.lt.s32.totalorder %s8237_s3, %s7064_s5 }
 0x1b1   : > { %p7061_p5 = pnand %p7059_p12, %p9219_p9  ;;  %p7067_p8 = scmp.lt.s32.totalorder %s7065_s2, %s7058_s6 }
 0x1b3   : > { %p7062_p7 = pneg %p7061_p5  ;;  %p7068_p10 = por %p7067_p8, %p7066_p3 }
 0x1b5   : > { %p7069_p2 = pnand %p7068_p10, %p7062_p7 }
 0x1b7   : > { %7072 = shalt.err (!%p7069_p2)
}
 0x1b8   : > { %s9302_s21 = sld [smem:[#allocation79_spill]]  ;;  %s7765_s14 = smov [#allocation17]  }
 0x1b9   : > { %6313 = dma.hbm_to_vmem [thread:$0]  (!%p8227_p11), %s8235_s13, 64, %s8237_s3, %s8249_s20  }
 0x1ba   : > { %s831_s9 = sshll.u32 %s7765_s14, 4  ;;  %s7766_s12 = smov [#allocation20]   ;;  %s832_s9 = int_to_ptr.vmem [resolvable:$true] %s831_s9 }
 0x1bb   : > { %s855_s24 = sshll.u32 %s7766_s12, 4  ;;  %p9303_p12 = scmp.ne.s32.totalorder %s9290_s17, 0  ;;  %s8273_s24 = int_to_ptr.vmem [resolvable:$true] %s855_s24 }
 0x1be   : > { %s7073_s2 = scalar_lea.hbm %s9302_s21, 1024 }
 0x1bf   : > { %p7074_p7 = scmp.ne.s32.totalorder %s9302_s21, %s7073_s2  ;;  %p7080_p0 = scmp.lt.u32.totalorder %s7073_s2, %s9302_s21 }
 0x1c1   : > { %p7076_p1 = pnand %p7074_p7, %p9303_p12 }
 0x1c3   : > { %p7077_p5 = pneg %p7076_p1 }
 0x1c5   : > { %p7082_p4 = pnand %p7080_p0, %p7077_p5 }
 0x1c7   : > { %7085 = shalt.err (!%p7082_p4)
}
 0x1c8   : > { %s7086_s6 = scalar_lea.vmem %s832_s9, 1024  ;;  %p7094_p8 = scmp.lt.s32.totalorder %s832_s9, %s832_s9 }
 0x1c9   : > { %p7087_p13 = scmp.ne.s32.totalorder %s832_s9, %s7086_s6  ;;  %p7095_p10 = scmp.lt.s32.totalorder %s7086_s6, %s7086_s6 }
 0x1cb   : > { %p7089_p6 = pnand %p7087_p13, %p9303_p12  ;;  %p7096_p2 = por %p7095_p10, %p7094_p8 }
 0x1cd   : > { %p7090_p3 = pneg %p7089_p6 }
 0x1cf   : > { %p7097_p9 = pnand %p7096_p2, %p7090_p3 }
 0x1d1   : > { %7100 = shalt.err (!%p7097_p9)
}
 0x1d2   : > { %p9304_p11 = scmp.ne.s32.totalorder %s9289_s26, 0  ;;  %s9305_s13 = smov 4  }
 0x1d3   : > { %s9306_s3 = smov 64   ;;  %s9307_s5 = sld [smem:[#allocation81_spill]] }
 0x1d4   : > { %6237 = dma.hbm_to_vmem [thread:$0]  (!%p9304_p11), %s9302_s21, 1024, %s832_s9, [#allocation16], %s9306_s3, %s9306_s3, %s9305_s13  }
 0x1d9   : > { %s7101_s14 = scalar_lea.hbm %s9307_s5, 1024 }
 0x1da   : > { %p7102_p7 = scmp.ne.s32.totalorder %s9307_s5, %s7101_s14  ;;  %p7108_p0 = scmp.lt.u32.totalorder %s7101_s14, %s9307_s5 }
 0x1dc   : > { %p7104_p1 = pnand %p7102_p7, %p9303_p12 }
 0x1de   : > { %p7105_p5 = pneg %p7104_p1 }
 0x1e0   : > { %p7110_p4 = pnand %p7108_p0, %p7105_p5 }
 0x1e2   : > { %7113 = shalt.err (!%p7110_p4)
}
 0x1e3   : > { %s7114_s12 = scalar_lea.vmem %s8273_s24, 1024  ;;  %p7122_p3 = scmp.lt.s32.totalorder %s8273_s24, %s8273_s24 }
 0x1e4   : > { %p7115_p9 = scmp.ne.s32.totalorder %s8273_s24, %s7114_s12  ;;  %p7123_p8 = scmp.lt.s32.totalorder %s7114_s12, %s7114_s12 }
 0x1e6   : > { %p7117_p13 = pnand %p7115_p9, %p9303_p12  ;;  %p7124_p10 = por %p7123_p8, %p7122_p3 }
 0x1e8   : > { %p7118_p6 = pneg %p7117_p13 }
 0x1ea   : > { %p7125_p2 = pnand %p7124_p10, %p7118_p6 }
 0x1ec   : > { %7128 = shalt.err (!%p7125_p2)
}
 0x1ed   : > { %s9308_s9 = sld [smem:[#allocation83_spill]]  ;;  %s7767_s2 = smov [#allocation23]  }
 0x1ee   : > { %6243 = dma.hbm_to_vmem [thread:$0]  (!%p9304_p11), %s9307_s5, 1024, %s8273_s24, [#allocation19], %s9306_s3, %s9306_s3, %s9305_s13  }
 0x1ef   : > { %s879_s6 = sshll.u32 %s7767_s2, 4  ;;  %s7768_s14 = smov [#allocation26]   ;;  %s880_s6 = int_to_ptr.vmem [resolvable:$true] %s879_s6 }
 0x1f0   : > { %s904_s21 = sshll.u32 %s7768_s14, 4  ;;  %s8306_s21 = int_to_ptr.vmem [resolvable:$true] %s904_s21 }
 0x1f3   : > { %s7129_s12 = scalar_lea.hbm %s9308_s9, 1024 }
 0x1f4   : > { %p7130_p7 = scmp.ne.s32.totalorder %s9308_s9, %s7129_s12  ;;  %p7136_p0 = scmp.lt.u32.totalorder %s7129_s12, %s9308_s9 }
 0x1f6   : > { %p7132_p1 = pnand %p7130_p7, %p9303_p12 }
 0x1f8   : > { %p7133_p5 = pneg %p7132_p1 }
 0x1fa   : > { %p7138_p4 = pnand %p7136_p0, %p7133_p5 }
 0x1fc   : > { %7141 = shalt.err (!%p7138_p4)
}
 0x1fd   : > { %s7142_s25 = scalar_lea.vmem %s880_s6, 1024  ;;  %p7150_p3 = scmp.lt.s32.totalorder %s880_s6, %s880_s6 }
 0x1fe   : > { %p7143_p9 = scmp.ne.s32.totalorder %s880_s6, %s7142_s25  ;;  %p7151_p8 = scmp.lt.s32.totalorder %s7142_s25, %s7142_s25 }
 0x200   : > { %p7145_p13 = pnand %p7143_p9, %p9303_p12  ;;  %p7152_p10 = por %p7151_p8, %p7150_p3 }
 0x202   : > { %p7146_p6 = pneg %p7145_p13 }
 0x204   : > { %p7153_p2 = pnand %p7152_p10, %p7146_p6 }
 0x206   : > { %7156 = shalt.err (!%p7153_p2)
}
 0x207   : > { %s9309_s24 = sld [smem:[#allocation85_spill]] }
 0x208   : > { %6249 = dma.hbm_to_vmem [thread:$0]  (!%p9304_p11), %s9308_s9, 1024, %s880_s6, [#allocation22], %s9306_s3, %s9306_s3, %s9305_s13  }
 0x20d   : > { %s7157_s2 = scalar_lea.hbm %s9309_s24, 16 }
 0x20e   : > { %p7158_p7 = scmp.ne.s32.totalorder %s9309_s24, %s7157_s2  ;;  %p7164_p0 = scmp.lt.u32.totalorder %s7157_s2, %s9309_s24 }
 0x210   : > { %p7160_p1 = pnand %p7158_p7, %p9303_p12 }
 0x212   : > { %p7161_p5 = pneg %p7160_p1 }
 0x214   : > { %p7166_p4 = pnand %p7164_p0, %p7161_p5 }
 0x216   : > { %7169 = shalt.err (!%p7166_p4)
}
 0x217   : > { %s7170_s25 = scalar_lea.vmem %s8306_s21, 16  ;;  %s7177_s14 = scalar_lea.vmem %s8306_s21, 32 }
 0x218   : > { %p7171_p9 = scmp.ne.s32.totalorder %s8306_s21, %s7170_s25  ;;  %p7178_p3 = scmp.lt.s32.totalorder %s8306_s21, %s8306_s21 }
 0x219   : > { %p7179_p8 = scmp.lt.s32.totalorder %s7177_s14, %s7170_s25 }
 0x21a   : > { %p7173_p13 = pnand %p7171_p9, %p9303_p12 }
 0x21b   : > { %p7180_p10 = por %p7179_p8, %p7178_p3 }
 0x21c   : > { %p7174_p6 = pneg %p7173_p13 }
 0x21e   : > { %p7181_p2 = pnand %p7180_p10, %p7174_p6 }
 0x220   : > { %7184 = shalt.err (!%p7181_p2)
}
 0x221   : > { %s9310_s6 = sld [smem:[#allocation87_spill]]  ;;  %s7769_s12 = smov [#allocation29]  }
 0x222   : > { %6255 = dma.hbm_to_vmem [thread:$0]  (!%p9304_p11), %s9309_s24, 16, %s8306_s21, [#allocation25]  }
 0x223   : > { %s925_s2 = sshll.u32 %s7769_s12, 4  ;;  %s7770_s5 = smov [#allocation32]   ;;  %s926_s2 = int_to_ptr.vmem [resolvable:$true] %s925_s2 }
 0x224   : > { %s949_s9 = sshll.u32 %s7770_s5, 4  ;;  %s8337_s9 = int_to_ptr.vmem [resolvable:$true] %s949_s9 }
 0x227   : > { %s7185_s25 = scalar_lea.hbm %s9310_s6, 1024 }
 0x228   : > { %p7186_p7 = scmp.ne.s32.totalorder %s9310_s6, %s7185_s25  ;;  %p7192_p0 = scmp.lt.u32.totalorder %s7185_s25, %s9310_s6 }
 0x22a   : > { %p7188_p1 = pnand %p7186_p7, %p9303_p12 }
 0x22c   : > { %p7189_p5 = pneg %p7188_p1 }
 0x22e   : > { %p7194_p4 = pnand %p7192_p0, %p7189_p5 }
 0x230   : > { %7197 = shalt.err (!%p7194_p4)
}
 0x231   : > { %s7198_s14 = scalar_lea.vmem %s926_s2, 1024  ;;  %p7206_p3 = scmp.lt.s32.totalorder %s926_s2, %s926_s2 }
 0x232   : > { %p7199_p9 = scmp.ne.s32.totalorder %s926_s2, %s7198_s14  ;;  %p7207_p8 = scmp.lt.s32.totalorder %s7198_s14, %s7198_s14 }
 0x234   : > { %p7201_p13 = pnand %p7199_p9, %p9303_p12  ;;  %p7208_p10 = por %p7207_p8, %p7206_p3 }
 0x236   : > { %p7202_p6 = pneg %p7201_p13 }
 0x238   : > { %p7209_p2 = pnand %p7208_p10, %p7202_p6 }
 0x23a   : > { %7212 = shalt.err (!%p7209_p2)
}
 0x23b   : > { %s9311_s21 = sld [smem:[#allocation89_spill]] }
 0x23c   : > { %6261 = dma.hbm_to_vmem [thread:$0]  (!%p9304_p11), %s9310_s6, 1024, %s926_s2, [#allocation28], %s9306_s3, %s9306_s3, %s9305_s13  }
 0x241   : > { %s7213_s5 = scalar_lea.hbm %s9311_s21, 1024 }
 0x242   : > { %p7214_p7 = scmp.ne.s32.totalorder %s9311_s21, %s7213_s5  ;;  %p7220_p0 = scmp.lt.u32.totalorder %s7213_s5, %s9311_s21 }
 0x244   : > { %p7216_p1 = pnand %p7214_p7, %p9303_p12 }
 0x246   : > { %p7217_p5 = pneg %p7216_p1 }
 0x248   : > { %p7222_p4 = pnand %p7220_p0, %p7217_p5 }
 0x24a   : > { %7225 = shalt.err (!%p7222_p4)
}
 0x24b   : > { %s7226_s12 = scalar_lea.vmem %s8337_s9, 1024  ;;  %p7234_p3 = scmp.lt.s32.totalorder %s8337_s9, %s8337_s9 }
 0x24c   : > { %p7227_p9 = scmp.ne.s32.totalorder %s8337_s9, %s7226_s12  ;;  %p7235_p8 = scmp.lt.s32.totalorder %s7226_s12, %s7226_s12 }
 0x24e   : > { %p7229_p13 = pnand %p7227_p9, %p9303_p12  ;;  %p7236_p10 = por %p7235_p8, %p7234_p3 }
 0x250   : > { %p7230_p6 = pneg %p7229_p13 }
 0x252   : > { %p7237_p2 = pnand %p7236_p10, %p7230_p6 }
 0x254   : > { %7240 = shalt.err (!%p7237_p2)
}
 0x255   : > { %s9312_s2 = sld [smem:[#allocation91_spill]]  ;;  %s7771_s14 = smov [#allocation35]  }
 0x256   : > { %6267 = dma.hbm_to_vmem [thread:$0]  (!%p9304_p11), %s9311_s21, 1024, %s8337_s9, [#allocation31], %s9306_s3, %s9306_s3, %s9305_s13  }
 0x257   : > { %s973_s5 = sshll.u32 %s7771_s14, 4  ;;  %s7772_s6 = smov [#allocation38]   ;;  %s974_s5 = int_to_ptr.vmem [resolvable:$true] %s973_s5 }
 0x258   : > { %s997_s24 = sshll.u32 %s7772_s6, 4  ;;  %s8370_s24 = int_to_ptr.vmem [resolvable:$true] %s997_s24 }
 0x25b   : > { %s9313_s25 = smov %s9312_s2  ;;  %s7241_s12 = scalar_lea.hbm %s9312_s2, 1024 }
 0x25c   : > { %p7242_p7 = scmp.ne.s32.totalorder %s9313_s25, %s7241_s12  ;;  %p7248_p0 = scmp.lt.u32.totalorder %s7241_s12, %s9313_s25 }
 0x25e   : > { %p7244_p1 = pnand %p7242_p7, %p9303_p12 }
 0x260   : > { %p7245_p5 = pneg %p7244_p1 }
 0x262   : > { %p7250_p4 = pnand %p7248_p0, %p7245_p5 }
 0x264   : > { %7253 = shalt.err (!%p7250_p4)
}
 0x265   : > { %s7254_s27 = scalar_lea.vmem %s974_s5, 1024  ;;  %p7262_p3 = scmp.lt.s32.totalorder %s974_s5, %s974_s5 }
 0x266   : > { %p7255_p9 = scmp.ne.s32.totalorder %s974_s5, %s7254_s27  ;;  %p7263_p8 = scmp.lt.s32.totalorder %s7254_s27, %s7254_s27 }
 0x268   : > { %p7257_p13 = pnand %p7255_p9, %p9303_p12  ;;  %p7264_p10 = por %p7263_p8, %p7262_p3 }
 0x26a   : > { %p7258_p6 = pneg %p7257_p13 }
 0x26c   : > { %p7265_p2 = pnand %p7264_p10, %p7258_p6 }
 0x26e   : > { %7268 = shalt.err (!%p7265_p2)
}
 0x26f   : > { %s9314_s9 = sld [smem:[#allocation93_spill]] }
 0x270   : > { %6273 = dma.hbm_to_vmem [thread:$0]  (!%p9304_p11), %s9313_s25, 1024, %s974_s5, [#allocation34], %s9306_s3, %s9306_s3, %s9305_s13  }
 0x275   : > { %s7269_s6 = scalar_lea.hbm %s9314_s9, 1024 }
 0x276   : > { %p7270_p7 = scmp.ne.s32.totalorder %s9314_s9, %s7269_s6  ;;  %p7276_p0 = scmp.lt.u32.totalorder %s7269_s6, %s9314_s9 }
 0x278   : > { %p7272_p1 = pnand %p7270_p7, %p9303_p12 }
 0x27a   : > { %p7273_p5 = pneg %p7272_p1 }
 0x27c   : > { %p7278_p4 = pnand %p7276_p0, %p7273_p5 }
 0x27e   : > { %7281 = shalt.err (!%p7278_p4)
}
 0x27f   : > { %s7282_s27 = scalar_lea.vmem %s8370_s24, 1024  ;;  %p7290_p3 = scmp.lt.s32.totalorder %s8370_s24, %s8370_s24 }
 0x280   : > { %p7283_p9 = scmp.ne.s32.totalorder %s8370_s24, %s7282_s27  ;;  %p7291_p8 = scmp.lt.s32.totalorder %s7282_s27, %s7282_s27 }
 0x282   : > { %p7285_p13 = pnand %p7283_p9, %p9303_p12  ;;  %p7292_p10 = por %p7291_p8, %p7290_p3 }
 0x284   : > { %p7286_p6 = pneg %p7285_p13 }
 0x286   : > { %p7293_p2 = pnand %p7292_p10, %p7286_p6 }
 0x288   : > { %7296 = shalt.err (!%p7293_p2)
}
 0x289   : > { %s9315_s2 = sld [smem:[#allocation95_spill]]  ;;  %s7773_s5 = smov [#allocation41]  }
 0x28a   : > { %6279 = dma.hbm_to_vmem [thread:$0]  (!%p9304_p11), %s9314_s9, 1024, %s8370_s24, [#allocation37], %s9306_s3, %s9306_s3, %s9305_s13  }
 0x28b   : > { %s1022_s12 = sshll.u32 %s7773_s5, 4  ;;  %s7774_s6 = smov [#allocation44]   ;;  %s1023_s12 = int_to_ptr.vmem [resolvable:$true] %s1022_s12 }
 0x28c   : > { %s1043_s21 = sshll.u32 %s7774_s6, 4  ;;  %s8403_s21 = int_to_ptr.vmem [resolvable:$true] %s1043_s21 }
 0x28f   : > { %s9316_s14 = smov %s9315_s2  ;;  %s7297_s27 = scalar_lea.hbm %s9315_s2, 16 }
 0x290   : > { %p7298_p7 = scmp.ne.s32.totalorder %s9316_s14, %s7297_s27  ;;  %p7304_p0 = scmp.lt.u32.totalorder %s7297_s27, %s9316_s14 }
 0x292   : > { %p7300_p1 = pnand %p7298_p7, %p9303_p12 }
 0x294   : > { %p7301_p5 = pneg %p7300_p1 }
 0x296   : > { %p7306_p4 = pnand %p7304_p0, %p7301_p5 }
 0x298   : > { %7309 = shalt.err (!%p7306_p4)
}
 0x299   : > { %s7310_s25 = scalar_lea.vmem %s1023_s12, 16  ;;  %s7317_s24 = scalar_lea.vmem %s1023_s12, 32 }
 0x29a   : > { %p7311_p9 = scmp.ne.s32.totalorder %s1023_s12, %s7310_s25  ;;  %p7318_p3 = scmp.lt.s32.totalorder %s1023_s12, %s1023_s12 }
 0x29b   : > { %p7319_p8 = scmp.lt.s32.totalorder %s7317_s24, %s7310_s25 }
 0x29c   : > { %p7313_p13 = pnand %p7311_p9, %p9303_p12 }
 0x29d   : > { %p7320_p10 = por %p7319_p8, %p7318_p3 }
 0x29e   : > { %p7314_p6 = pneg %p7313_p13 }
 0x2a0   : > { %p7321_p2 = pnand %p7320_p10, %p7314_p6 }
 0x2a2   : > { %7324 = shalt.err (!%p7321_p2)
}
 0x2a3   : > { %s9317_s2 = sld [smem:[#allocation97_spill]] }
 0x2a4   : > { %6285 = dma.hbm_to_vmem [thread:$0]  (!%p9304_p11), %s9316_s14, 16, %s1023_s12, [#allocation40]  }
 0x2a9   : > { %s9318_s5 = smov %s9317_s2  ;;  %s7325_s6 = scalar_lea.hbm %s9317_s2, 2048 }
 0x2aa   : > { %p7326_p7 = scmp.ne.s32.totalorder %s9318_s5, %s7325_s6  ;;  %p7332_p0 = scmp.lt.u32.totalorder %s7325_s6, %s9318_s5 }
 0x2ac   : > { %p7328_p1 = pnand %p7326_p7, %p9303_p12 }
 0x2ae   : > { %p7329_p5 = pneg %p7328_p1 }
 0x2b0   : > { %p7334_p4 = pnand %p7332_p0, %p7329_p5 }
 0x2b2   : > { %7337 = shalt.err (!%p7334_p4)
}
 0x2b3   : > { %s7338_s25 = scalar_lea.vmem %s8403_s21, 2048  ;;  %p7346_p3 = scmp.lt.s32.totalorder %s8403_s21, %s8403_s21 }
 0x2b4   : > { %p7339_p9 = scmp.ne.s32.totalorder %s8403_s21, %s7338_s25  ;;  %p7347_p8 = scmp.lt.s32.totalorder %s7338_s25, %s7338_s25 }
 0x2b6   : > { %p7341_p13 = pnand %p7339_p9, %p9303_p12  ;;  %p7348_p10 = por %p7347_p8, %p7346_p3 }
 0x2b8   : > { %p7342_p6 = pneg %p7341_p13 }
 0x2ba   : > { %p7349_p2 = pnand %p7348_p10, %p7342_p6 }
 0x2bc   : > { %7352 = shalt.err (!%p7349_p2)
}
 0x2bd   : > { %s7775_s12 = smov 128   ;;  %s9319_s27 = sld [smem:[#allocation99_spill]] }
 0x2be   : > { %s7776_s24 = smov 8   ;;  %s7777_s2 = smov [#allocation47]  }
 0x2bf   : > { %6291 = dma.hbm_to_vmem [thread:$0]  (!%p9304_p11), %s9318_s5, 2048, %s8403_s21, [#allocation43], %s7775_s12, %s7775_s12, %s7776_s24  }
 0x2c0   : > { %s1067_s6 = sshll.u32 %s7777_s2, 4  ;;  %s7778_s9 = smov [#allocation50]   ;;  %s1068_s6 = int_to_ptr.vmem [resolvable:$true] %s1067_s6 }
 0x2c1   : > { %s1092_s14 = sshll.u32 %s7778_s9, 4  ;;  %s8430_s14 = int_to_ptr.vmem [resolvable:$true] %s1092_s14 }
 0x2c3   : > { %s7353_s25 = scalar_lea.hbm %s9319_s27, 2048 }
 0x2c4   : > { %p7354_p7 = scmp.ne.s32.totalorder %s9319_s27, %s7353_s25  ;;  %p7360_p0 = scmp.lt.u32.totalorder %s7353_s25, %s9319_s27 }
 0x2c6   : > { %p7356_p1 = pnand %p7354_p7, %p9303_p12 }
 0x2c8   : > { %p7357_p5 = pneg %p7356_p1 }
 0x2ca   : > { %p7362_p4 = pnand %p7360_p0, %p7357_p5 }
 0x2cc   : > { %7365 = shalt.err (!%p7362_p4)
}
 0x2cd   : > { %s7366_s30 = scalar_lea.vmem %s1068_s6, 2048  ;;  %p7374_p3 = scmp.lt.s32.totalorder %s1068_s6, %s1068_s6 }
 0x2ce   : > { %p7367_p9 = scmp.ne.s32.totalorder %s1068_s6, %s7366_s30  ;;  %p7375_p8 = scmp.lt.s32.totalorder %s7366_s30, %s7366_s30 }
 0x2d0   : > { %p7369_p13 = pnand %p7367_p9, %p9303_p12  ;;  %p7376_p10 = por %p7375_p8, %p7374_p3 }
 0x2d2   : > { %p7370_p6 = pneg %p7369_p13 }
 0x2d4   : > { %p7377_p2 = pnand %p7376_p10, %p7370_p6 }
 0x2d6   : > { %7380 = shalt.err (!%p7377_p2)
}
 0x2d7   : > { %s9320_s21 = sld [smem:[#allocation101_spill]] }
 0x2d8   : > { %6297 = dma.hbm_to_vmem [thread:$0]  (!%p9304_p11), %s9319_s27, 2048, %s1068_s6, [#allocation46], %s9306_s3, %s9306_s3, %s9305_s13  }
 0x2dd   : > { %s7381_s9 = scalar_lea.hbm %s9320_s21, 16 }
 0x2de   : > { %p7382_p7 = scmp.ne.s32.totalorder %s9320_s21, %s7381_s9  ;;  %p7388_p0 = scmp.lt.u32.totalorder %s7381_s9, %s9320_s21 }
 0x2e0   : > { %p7384_p1 = pnand %p7382_p7, %p9303_p12 }
 0x2e2   : > { %p7385_p5 = pneg %p7384_p1 }
 0x2e4   : > { %p7390_p4 = pnand %p7388_p0, %p7385_p5 }
 0x2e6   : > { %7393 = shalt.err (!%p7390_p4)
}
 0x2e7   : > { %s7394_s30 = scalar_lea.vmem %s8430_s14, 16  ;;  %s7401_s12 = scalar_lea.vmem %s8430_s14, 32 }
 0x2e8   : > { %p7395_p9 = scmp.ne.s32.totalorder %s8430_s14, %s7394_s30  ;;  %p7402_p3 = scmp.lt.s32.totalorder %s8430_s14, %s8430_s14 }
 0x2e9   : > { %p7403_p8 = scmp.lt.s32.totalorder %s7401_s12, %s7394_s30 }
 0x2ea   : > { %p7397_p13 = pnand %p7395_p9, %p9303_p12 }
 0x2eb   : > { %p7404_p10 = por %p7403_p8, %p7402_p3 }
 0x2ec   : > { %p7398_p6 = pneg %p7397_p13 }
 0x2ee   : > { %p7405_p2 = pnand %p7404_p10, %p7398_p6 }
 0x2f0   : > { %7408 = shalt.err (!%p7405_p2)
}
 0x2f1   : > { %s9321_s24 = sld [smem:[#allocation102_spill]]  ;;  %s7779_s2 = smov [#allocation51]  }
 0x2f2   : > { %6303 = dma.hbm_to_vmem [thread:$0]  (!%p9304_p11), %s9320_s21, 16, %s8430_s14, [#allocation49]  }
 0x2f3   : > { %s1103_s6 = sshll.u32 %s7779_s2, 4  ;;  %s5731_s25 = sshll.u32 %s9291_s11, 7  ;;  %s1104_s6 = int_to_ptr.vmem [resolvable:$true] %s1103_s6 }
 0x2f7   : > { %s7409_s9 = scalar_lea.hbm %s9321_s24, 16 }
 0x2f8   : > { %p7410_p7 = scmp.ne.s32.totalorder %s9321_s24, %s7409_s9  ;;  %p7416_p0 = scmp.lt.u32.totalorder %s7409_s9, %s9321_s24 }
 0x2fa   : > { %p7412_p1 = pnand %p7410_p7, %p9303_p12 }
 0x2fc   : > { %p7413_p5 = pneg %p7412_p1 }
 0x2fe   : > { %p7418_p4 = pnand %p7416_p0, %p7413_p5 }
 0x300   : > { %7421 = shalt.err (!%p7418_p4)
}
 0x301   : > { %s7422_s30 = scalar_lea.vmem %s1104_s6, 16  ;;  %s7429_s12 = scalar_lea.vmem %s1104_s6, 32 }
 0x302   : > { %p7423_p9 = scmp.ne.s32.totalorder %s1104_s6, %s7422_s30  ;;  %p7430_p3 = scmp.lt.s32.totalorder %s1104_s6, %s1104_s6 }
 0x303   : > { %p7431_p8 = scmp.lt.s32.totalorder %s7429_s12, %s7422_s30 }
 0x304   : > { %p7425_p13 = pnand %p7423_p9, %p9303_p12 }
 0x305   : > { %p7432_p10 = por %p7431_p8, %p7430_p3 }
 0x306   : > { %p7426_p6 = pneg %p7425_p13 }
 0x308   : > { %p7433_p2 = pnand %p7432_p10, %p7426_p6 }
 0x30a   : > { %7436 = shalt.err (!%p7433_p2)
}
 0x30b   : > { %s9322_s14 = sld [smem:[#allocation73_spill]]  ;;  %s9323_s17 = sshll.u32 %s8214_s18, 3 }
 0x30c   : > { %6306 = dma.hbm_to_vmem [thread:$0]  (!%p9304_p11), %s9321_s24, 16, %s1104_s6, [#allocation52]  }
 0x30d   : > { %s1118_s9 = scalar_lea.vmem [#allocation6], %s9323_s17  ;;  %s1115_s26 = scalar_lea.sflag [#allocation7], %s8214_s18 }
 0x30e   : > { %s1125_s30 = sshll.u32 %s1118_s9, 4  ;;  %p9324_p7 = scmp.ne.s32.totalorder %s9300_s4, 0  ;;  %s8477_s30 = int_to_ptr.vmem [resolvable:$true] %s1125_s30 }
 0x310   : > { %p9325_p1 = pneg %p9324_p7 }
 0x311   : > { %s8473_s2 = scalar_lea.hbm %s9322_s14, %s5731_s25  ;;  %s7442_s5 = scalar_lea.hbm %s9322_s14, 256 }
 0x312   : > { %s7437_s12 = scalar_lea.hbm %s8473_s2, 128  ;;  %p7443_p11 = scmp.lt.u32.totalorder %s8473_s2, %s9322_s14 }
 0x313   : > { %p7438_p12 = scmp.ne.s32.totalorder %s8473_s2, %s7437_s12  ;;  %p7444_p4 = scmp.lt.u32.totalorder %s7442_s5, %s7437_s12 }
 0x314   : > { %p7446_p13 = scmp.lt.u32.totalorder %s7437_s12, %s8473_s2 }
 0x315   : > { %p7440_p5 = pnand %p7438_p12, %p9325_p1  ;;  %p7445_p9 = por %p7444_p4, %p7443_p11 }
 0x317   : > { %p7441_p0 = pneg %p7440_p5  ;;  %p7447_p6 = por %p7446_p13, %p7445_p9 }
 0x319   : > { %p7448_p3 = pnand %p7447_p6, %p7441_p0 }
 0x31b   : > { %7451 = shalt.err (!%p7448_p3)
}
 0x31c   : > { %s7452_s6 = scalar_lea.vmem %s8477_s30, 128  ;;  %p9326_p10 = pmov %p9325_p1 }
 0x31d   : > { %p7453_p8 = scmp.ne.s32.totalorder %s8477_s30, %s7452_s6  ;;  %s7780_s25 = smov [#allocation6]  }
 0x31e   : > { %s7457_s17 = sshll.u32 %s7780_s25, 4  ;;  %s7458_s17 = int_to_ptr.vmem [resolvable:$false] %s7457_s17 }
 0x31f   : > { %p7455_p2 = pnand %p7453_p8, %p9326_p10  ;;  %s7459_s9 = scalar_lea.vmem %s7458_s17, 256 }
 0x320   : > { %p7460_p12 = scmp.lt.s32.totalorder %s8477_s30, %s7458_s17  ;;  %p7461_p5 = scmp.lt.s32.totalorder %s7459_s9, %s7452_s6 }
 0x321   : > { %p7456_p1 = pneg %p7455_p2 }
 0x322   : > { %p7462_p11 = por %p7461_p5, %p7460_p12 }
 0x324   : > { %p7463_p4 = pnand %p7462_p11, %p7456_p1 }
 0x326   : > { %7466 = shalt.err (!%p7463_p4)
}
 0x327   : > { %s9327_s5 = sld [smem:[#allocation106_spill]]  ;;  %s108_s12 = sadd.s32 1, %s9291_s11 }
 0x328   : > { %6310 = dma.hbm_to_vmem [thread:$0]  (!%p9324_p7), %s8473_s2, 128, %s8477_s30, %s1115_s26, %s9306_s3, %s9306_s3, %s9305_s13  }
 0x329   : > { %s9328_s6 = sld [smem:[#allocation75_spill]]  ;;  %s169_s4 = sadd.s32 1, %s7685_s16 }
 0x32a   : > { %s1155_s17 = sand.u32 1, %s7685_s16   ;;  %s5538_s18 = sshll.u32 %s9291_s11, 1 }
 0x32b   : > { %s8508_s9 = sshll.u32 %s1155_s17, 3  ;;  %s9329_s14 = sld [smem:[#allocation76_spill]] }
 0x32c   : > { %s1157_s30 = scalar_lea.vmem [#allocation11], %s8508_s9  ;;  %p9331_p3 = scmp.ne.s32.totalorder %s9301_s19, 0 }
 0x32d   : > { %s105_s25 = sadd.s32 1, %s9327_s5  ;;  %s1162_s3 = sadd.s32 %s9327_s5, %s5538_s18 }
 0x32e   : > { %p106_p0 = scmp.ge.s32.totalorder %s105_s25, 2  ;;  %s5539_s2 = sshll.u32 %s1162_s3, 7 }
 0x32f   : > { %s1166_s26 = sshll.u32 %s1157_s30, 4  ;;  %s8521_s17 = scalar_lea.hbm %s9328_s6, %s5539_s2  ;;  %s8523_s26 = int_to_ptr.vmem [resolvable:$true] %s1166_s26 }
 0x330   : > { %s9381_s25 = smov (%p106_p0, %s105_s25), 0  ;;  %s9383_s12 = smov (!%p106_p0, %s108_s12), %s9291_s11 }
 0x331   : > { %s165_s13 = ssub.s32 %s9327_s5, %s9381_s25  ;;  %p110_p7 = scmp.ge.s32.totalorder %s9383_s12, 2 }
 0x332   : > { %s8528_s18 = scalar_lea.hbm %s9329_s14, %s5539_s2  ;;  %s9330_s3 = sadd.s32 1, %s7697_s23 }
 0x333   : > { %s9385_s12 = smov (%p110_p7, %s9383_s12), 0  ;;  %s7467_s27 = scalar_lea.hbm %s8521_s17, 128 }
 0x334   : > { %s112_s21 = ssub.s32 %s9291_s11, %s9385_s12  ;;  %p7468_p6 = scmp.ne.s32.totalorder %s8521_s17, %s7467_s27 }
 0x335   : > { %p113_p9 = scmp.eq.s32.totalorder %s112_s21, 0  ;;  %s166_s5 = sor.u32 %s165_s13, %s112_s21 }
 0x336   : > { %p167_p13 = scmp.eq.s32.totalorder %s166_s5, 0  ;;  %p7469_p8 = pneg %p9331_p3 }
 0x337   : > { %s8533_s30 = scalar_select %p113_p9, %s7697_s23, %s9330_s3  }
 0x338   : > { %s8536_s24 = scalar_select %p167_p13, %s7685_s16, %s169_s4  }
 0x339   : > { %p7470_p10 = pnand %p7469_p8, %p7468_p6  ;;  %s7472_s11 = scalar_lea.hbm %s9328_s6, 512 }
 0x33a   : > { %p7473_p1 = scmp.lt.u32.totalorder %s8521_s17, %s9328_s6  ;;  %p7474_p12 = scmp.lt.u32.totalorder %s7472_s11, %s7467_s27 }
 0x33b   : > { %p7471_p2 = pneg %p7470_p10  ;;  %p7476_p11 = scmp.lt.u32.totalorder %s7467_s27, %s8521_s17 }
 0x33c   : > { %p7475_p5 = por %p7474_p12, %p7473_p1 }
 0x33e   : > { %p7477_p4 = por %p7476_p11, %p7475_p5 }
 0x340   : > { %p7478_p0 = pnand %p7477_p4, %p7471_p2 }
 0x342   : > { %7481 = shalt.err (!%p7478_p0)
}
 0x343   : > { %s7482_s21 = scalar_lea.vmem %s8523_s26, 128  ;;  %s7781_s4 = smov [#allocation11]  }
 0x344   : > { %p7483_p7 = scmp.ne.s32.totalorder %s8523_s26, %s7482_s21  ;;  %s7487_s13 = sshll.u32 %s7781_s4, 4  ;;  %s7488_s13 = int_to_ptr.vmem [resolvable:$false] %s7487_s13 }
 0x345   : > { %s7489_s2 = scalar_lea.vmem %s7488_s13, 256  ;;  %p7490_p6 = scmp.lt.s32.totalorder %s8523_s26, %s7488_s13 }
 0x346   : > { %p7485_p9 = pnand %p7483_p7, %p7469_p8  ;;  %p7491_p10 = scmp.lt.s32.totalorder %s7489_s2, %s7482_s21 }
 0x348   : > { %p7486_p13 = pneg %p7485_p9  ;;  %p7492_p1 = por %p7491_p10, %p7490_p6 }
 0x34a   : > { %p7493_p12 = pnand %p7492_p1, %p7486_p13 }
 0x34c   : > { %7496 = shalt.err (!%p7493_p12)
}
 0x34d   : > { %6316 = dma.hbm_to_vmem [thread:$0]  (!%p9331_p3), %s8521_s17, 128, %s8523_s26, %s8249_s20  }
 0x34e   : > { %s1177_s27 = scalar_lea.vmem [#allocation12], %s8508_s9  ;;  %s9332_s3 = sand.u32 1, %s7717_s7  }
 0x34f   : > { %s1186_s5 = sshll.u32 %s1177_s27, 4  ;;  %s1174_s11 = scalar_lea.sflag [#allocation13], %s9332_s3  ;;  %s1187_s5 = int_to_ptr.vmem [resolvable:$true] %s1186_s5 }
 0x350   : > { %s7497_s21 = scalar_lea.hbm %s8528_s18, 128  ;;  %s7502_s4 = scalar_lea.hbm %s9329_s14, 512 }
 0x351   : > { %p7498_p2 = scmp.ne.s32.totalorder %s8528_s18, %s7497_s21  ;;  %p7503_p4 = scmp.lt.u32.totalorder %s8528_s18, %s9329_s14 }
 0x352   : > { %p7504_p0 = scmp.lt.u32.totalorder %s7502_s4, %s7497_s21  ;;  %p7506_p9 = scmp.lt.u32.totalorder %s7497_s21, %s8528_s18 }
 0x353   : > { %p7500_p5 = pnand %p7498_p2, %p7469_p8 }
 0x354   : > { %p7505_p7 = por %p7504_p0, %p7503_p4 }
 0x355   : > { %p7501_p11 = pneg %p7500_p5 }
 0x356   : > { %p7507_p13 = por %p7506_p9, %p7505_p7 }
 0x358   : > { %p7508_p6 = pnand %p7507_p13, %p7501_p11 }
 0x35a   : > { %7511 = shalt.err (!%p7508_p6)
}
 0x35b   : > { %s7512_s20 = scalar_lea.vmem %s1187_s5, 128  ;;  %s7782_s9 = smov [#allocation12]  }
 0x35c   : > { %p7513_p10 = scmp.ne.s32.totalorder %s1187_s5, %s7512_s20  ;;  %s7517_s26 = sshll.u32 %s7782_s9, 4  ;;  %s7518_s26 = int_to_ptr.vmem [resolvable:$false] %s7517_s26 }
 0x35d   : > { %s7519_s17 = scalar_lea.vmem %s7518_s26, 256  ;;  %p7520_p2 = scmp.lt.s32.totalorder %s1187_s5, %s7518_s26 }
 0x35e   : > { %p7515_p1 = pnand %p7513_p10, %p7469_p8  ;;  %p7521_p5 = scmp.lt.s32.totalorder %s7519_s17, %s7512_s20 }
 0x360   : > { %p7516_p12 = pneg %p7515_p1  ;;  %p7522_p0 = por %p7521_p5, %p7520_p2 }
 0x362   : > { %p7523_p4 = pnand %p7522_p0, %p7516_p12 }
 0x364   : > { %7526 = shalt.err (!%p7523_p4)
}
 0x365   : > { %6319 = dma.hbm_to_vmem [thread:$0]  (!%p9331_p3), %s8528_s18, 128, %s1187_s5, %s1174_s11  }
 0x366   : > { %s9333_s13 = sld [smem:[#allocation108_spill]] }
 0x36c   : > { %p9334_p11 = scmp.ne.s32.totalorder %s9333_s13, 0 }
 0x36d   : > { %s1197_s2 = sand.u32 (!%p9334_p11), 1, %s7693_s22   ;;  %p9335_p8 = scmp.ne.s32.totalorder (!%p9334_p11), %s9294_s29, 0 }
 0x36e   : > { %1195 = sbr.rel (%p9334_p11) target bundleno = 5674 (0x162a), region = 140  ;;  %s5544_s27 = sshll.u32 (!%p9334_p11), %s1197_s2, 3 }
 0x36f   : > { %s1198_s3 = scalar_lea.sflag (!%p9334_p11), [#allocation7], %s1197_s2  ;;  %s8581_s21 = scalar_lea.vmem (!%p9334_p11), [#allocation6], %s5544_s27 }
 0x375   : > { %7600 = dma.done.wait (%p9335_p8), %s1198_s3, 128  }
 0x376   : > { %7602 = vsyncadd (%p9335_p8), %s1198_s3, 4294967168  ;;  %s1206_s19 = sand.u32 1, %s8010_s10   ;;  %s5545_s4 = sshll.u32 %s1197_s2, 2 }
 0x377   : > { %s1207_s18 = scalar_lea.sflag [#allocation10], %s1206_s19  ;;  %s8588_s5 = scalar_lea.vmem [#allocation9], %s5545_s4 }
 0x378   : > { %7604 = dma.done.wait (%p9335_p8), %s1207_s18, 64  }
 0x379   : > { %7606 = vsyncadd (%p9335_p8), %s1207_s18, 4294967232  ;;  %s8595_s11 = sand.u32 1, %s7681_s15   ;;  %p9336_p3 = scmp.ne.s32.totalorder %s9297_s1, 0 }
 0x37a   : > { %s5546_s20 = sshll.u32 %s8595_s11, 3 }
 0x37b   : > { %s8598_s9 = scalar_lea.vmem [#allocation11], %s5546_s20 }
 0x37c   : > { %7608 = dma.done.wait (%p9336_p3), %s1207_s18, 128  }
 0x37d   : > { %7610 = vsyncadd (%p9336_p3), %s1207_s18, 4294967168  ;;  %s1225_s26 = scalar_lea.sflag [#allocation13], %s1206_s19  ;;  %s8604_s17 = scalar_lea.vmem [#allocation12], %s5546_s20 }
 0x37e   : > { %7612 = dma.done.wait (%p9336_p3), %s1225_s26, 128  }
 0x37f   : > { %7614 = vsyncadd (%p9336_p3), %s1225_s26, 4294967168  ;;  %p9337_p7 = scmp.eq.s32.totalorder %s8010_s10, 0 }
 0x381   : > { %7616 = dma.done.wait (%p9337_p7), [#allocation13], 1024   ;;  %p9338_p9 = pmov %p9337_p7 }
 0x382   : > { %p9339_p13 = pmov %p9337_p7 }
 0x383   : > { %7618 = vsyncadd (%p9338_p9), [#allocation13], 4294966272 }
 0x384   : > { %7620 = dma.done.wait (%p9339_p13), [#allocation16], 1040   ;;  %p9340_p6 = pmov %p9337_p7 }
 0x386   : > { %7622 = vsyncadd (%p9340_p6), [#allocation16], 4294966256  ;;  %p9341_p10 = pmov %p9340_p6 }
 0x387   : > { %p9342_p1 = pmov %p9340_p6 }
 0x388   : > { %7624 = dma.done.wait (%p9341_p10), [#allocation19], 1040  }
 0x389   : > { %7626 = vsyncadd (%p9342_p1), [#allocation19], 4294966256  ;;  %p9343_p12 = pmov %p9342_p1 }
 0x38a   : > { %p9344_p2 = pmov %p9342_p1 }
 0x38b   : > { %7628 = dma.done.wait (%p9343_p12), [#allocation22], 1040  }
 0x38c   : > { %7630 = vsyncadd (%p9344_p2), [#allocation22], 4294966256  ;;  %p9345_p5 = pmov %p9342_p1 }
 0x38d   : > { %p9346_p0 = pmov %p9342_p1 }
 0x38e   : > { %7632 = dma.done.wait (%p9345_p5), [#allocation25], 32  }
 0x38f   : > { %7634 = vsyncadd (%p9346_p0), [#allocation25], 4294967264  ;;  %p9347_p4 = pmov %p9346_p0 }
 0x390   : > { %p9348_p11 = pmov %p9346_p0 }
 0x391   : > { %7636 = dma.done.wait (%p9347_p4), [#allocation28], 1040  }
 0x392   : > { %7638 = vsyncadd (%p9348_p11), [#allocation28], 4294966256  ;;  %p9349_p8 = pmov %p9346_p0 }
 0x393   : > { %p9350_p3 = pmov %p9346_p0 }
 0x394   : > { %7640 = dma.done.wait (%p9349_p8), [#allocation31], 1040  }
 0x395   : > { %7642 = vsyncadd (%p9350_p3), [#allocation31], 4294966256  ;;  %p9351_p7 = pmov %p9346_p0 }
 0x396   : > { %p9352_p9 = pmov %p9346_p0 }
 0x397   : > { %7644 = dma.done.wait (%p9351_p7), [#allocation34], 1040  }
 0x398   : > { %7646 = vsyncadd (%p9352_p9), [#allocation34], 4294966256  ;;  %p9353_p13 = pmov %p9346_p0 }
 0x399   : > { %p9354_p6 = pmov %p9346_p0 }
 0x39a   : > { %7648 = dma.done.wait (%p9353_p13), [#allocation37], 1040  }
 0x39b   : > { %7650 = vsyncadd (%p9354_p6), [#allocation37], 4294966256  ;;  %p9355_p10 = pmov %p9346_p0 }
 0x39c   : > { %p9356_p1 = pmov %p9346_p0 }
 0x39d   : > { %7652 = dma.done.wait (%p9355_p10), [#allocation40], 32  }
 0x39e   : > { %7654 = vsyncadd (%p9356_p1), [#allocation40], 4294967264  ;;  %p9357_p12 = pmov %p9346_p0 }
 0x39f   : > { %p9358_p2 = pmov %p9346_p0 }
 0x3a0   : > { %7656 = dma.done.wait (%p9357_p12), [#allocation43], 2064  }
 0x3a1   : > { %7658 = vsyncadd (%p9358_p2), [#allocation43], 4294965232  ;;  %p9359_p5 = pmov %p9346_p0 }
 0x3a3   : > { %7660 = dma.done.wait (%p9359_p5), [#allocation46], 2080  }
 0x3a4   : > { %7662 = vsyncadd (%p9346_p0), [#allocation46], 4294965216  ;;  %p9360_p4 = pmov %p9346_p0 }
 0x3a5   : > { %p9361_p11 = pmov %p9346_p0 }
 0x3a6   : > { %7664 = dma.done.wait (%p9360_p4), [#allocation49], 32  }
 0x3a7   : > { %7666 = vsyncadd (%p9361_p11), [#allocation49], 4294967264  ;;  %p9362_p8 = pmov %p9346_p0 }
 0x3a8   : > { %p9363_p3 = pmov %p9346_p0 }
 0x3a9   : > { %7668 = dma.done.wait (%p9362_p8), [#allocation52], 16  }
 0x3aa   : > { %7670 = vsyncadd (%p9363_p3), [#allocation52], 4294967280  ;;  %s5574_s29 = sshll.u32 %s8595_s11, 2  ;;  %s9364_s13 = sld [smem:[#allocation104_spill]] }
 0x3ab   : > { %s8667_s1 = scalar_lea.vmem [#allocation53], %s5574_s29 }
 0x3b0   : > { %p5575_p7 = scmp.ne.s32.totalorder %s9364_s13, 0 }
 0x3b1   : > { %v6536_v0 = vld [vmem:[#allocation17] sm:$0xff] (!%p5575_p7)   ;;  %v7783_v1 = vmov (!%p5575_p7), 0.0   ;;  %v6538_v3 = vld [vmem:[#allocation17 + $0x8] sm:$0xff] (!%p5575_p7)   ;;  %vm7784_vm0 = vmmov (!%p5575_p7), 0   ;;  %v6540_v5 = vld [vmem:[#allocation17 + $0x10] sm:$0xff] (!%p5575_p7)  }
 0x3b2   : > { %1428 = sbr.rel (%p5575_p7) target bundleno = 1228 (0x4cc), region = 264  ;;  %5858 = vmatprep.subr.bf16.mxu0 (!%p5575_p7), %v7783_v1  ;;  %5878 = vmatprep.subr.bf16.mxu1 (!%p5575_p7), %v7783_v1  ;;  %v6537_v2 = vld [vmem:[#allocation20] sm:$0xff] (!%p5575_p7)   ;;  %v6539_v4 = vld [vmem:[#allocation20 + $0x8] sm:$0xff] (!%p5575_p7)   ;;  %v6541_v6 = vld [vmem:[#allocation20 + $0x10] sm:$0xff] (!%p5575_p7)  }
 0x3b3   : > { %5859 = vmatpush3.bf16.msra.mxu0 (!%p5575_p7), %v6536_v0  ;;  %5874 = vmatprep.mubr.msk.bf16.mxu0 (!%p5575_p7), %vm7784_vm0, %v7783_v1  ;;  %v6542_v7 = vld [vmem:[#allocation17 + $0x18] sm:$0xff] (!%p5575_p7)   ;;  %v6544_v9 = vld [vmem:[#allocation17 + $0x20] sm:$0xff] (!%p5575_p7)   ;;  %v6546_v11 = vld [vmem:[#allocation17 + $0x28] sm:$0xff] (!%p5575_p7)  }
 0x3b4   : > { %5879 = vmatpush3.bf16.msra.mxu1 (!%p5575_p7), %v6537_v2  ;;  %5860 = vmatprep.subr.bf16.mxu0 (!%p5575_p7), %v7783_v1  ;;  %v6543_v8 = vld [vmem:[#allocation20 + $0x18] sm:$0xff] (!%p5575_p7)   ;;  %v6545_v10 = vld [vmem:[#allocation20 + $0x20] sm:$0xff] (!%p5575_p7)   ;;  %v6547_v12 = vld [vmem:[#allocation20 + $0x28] sm:$0xff] (!%p5575_p7)  }
 0x3b5   : > { %5880 = vmatprep.subr.bf16.mxu1 (!%p5575_p7), %v7783_v1  ;;  %5894 = vmatprep.mubr.msk.bf16.mxu1 (!%p5575_p7), %vm7784_vm0, %v7783_v1  ;;  %v6548_v13 = vld [vmem:[#allocation17 + $0x30] sm:$0xff] (!%p5575_p7)   ;;  %v6550_v15 = vld [vmem:[#allocation17 + $0x38] sm:$0xff] (!%p5575_p7)   ;;  %v6559_v24 = vld [vmem:[#allocation32 + $0x18] sm:$0xff] (!%p5575_p7)  }
 0x3b6   : > { %v6549_v14 = vld [vmem:[#allocation20 + $0x30] sm:$0xff] (!%p5575_p7)   ;;  %v6551_v16 = vld [vmem:[#allocation20 + $0x38] sm:$0xff] (!%p5575_p7)   ;;  %v6560_v25 = vld [vmem:[#allocation35 + $0x18] sm:$0xff] (!%p5575_p7)  }
 0x3b7   : > { %5861 = vmatpush3.bf16.msra.mxu0 (!%p5575_p7), %v6538_v3  ;;  %v6552_v17 = vld [vmem:[%s8581_s21] sm:$0xff] (!%p5575_p7)   ;;  %v6556_v21 = vld [vmem:[#allocation35 + $0x8] sm:$0xff] (!%p5575_p7)   ;;  %v6558_v23 = vld [vmem:[#allocation35 + $0x10] sm:$0xff] (!%p5575_p7)  }
 0x3b8   : > { %5881 = vmatpush3.bf16.msra.mxu1 (!%p5575_p7), %v6539_v4  ;;  %5862 = vmatprep.subr.bf16.mxu0 (!%p5575_p7), %v7783_v1  ;;  %v6553_v18 = vld [vmem:[#allocation32] sm:$0xff] (!%p5575_p7)   ;;  %v6555_v20 = vld [vmem:[#allocation32 + $0x8] sm:$0xff] (!%p5575_p7)   ;;  %v6557_v22 = vld [vmem:[#allocation32 + $0x10] sm:$0xff] (!%p5575_p7)  }
 0x3b9   : > { %5882 = vmatprep.subr.bf16.mxu1 %v7783_v1  ;;  %v6554_v19 = vld [vmem:[#allocation35] sm:$0xff]   ;;  %v6564_v29 = vld [vmem:[#allocation35 + $0x28] sm:$0xff]   ;;  %v6566_v31 = vld [vmem:[#allocation35 + $0x30] sm:$0xff]  }
 0x3ba   : > { %v6561_v26 = vld [vmem:[#allocation32 + $0x20] sm:$0xff]   ;;  %v6563_v28 = vld [vmem:[#allocation32 + $0x28] sm:$0xff]   ;;  %v6565_v30 = vld [vmem:[#allocation32 + $0x30] sm:$0xff]  }
 0x3bb   : > { %5863 = vmatpush3.bf16.msra.mxu0 %v6540_v5  ;;  %v6562_v27 = vld [vmem:[#allocation35 + $0x20] sm:$0xff]   ;;  %v6567_v32 = vld [vmem:[#allocation32 + $0x38] sm:$0xff]   ;;  %v1665_v34 = vld [vmem:[%s8588_s5] sm:$0xf] }
 0x3bc   : > { %5883 = vmatpush3.bf16.msra.mxu1 %v6541_v6  ;;  %5864 = vmatprep.subr.bf16.mxu0 %v7783_v1  ;;  %v6568_v33 = vld [vmem:[#allocation35 + $0x38] sm:$0xff]   ;;  %v5576_v35 = vld [vmem:[#allocation18] ss:$0 sm:$0xff]  ;;  %v5586_v36 = vld [vmem:[#allocation21] ss:$0 sm:$0xff] }
 0x3bd   : > { %5884 = vmatprep.subr.bf16.mxu1 %v7783_v1  ;;  %v5595_v51 = vld [vmem:[#allocation33] ss:$0 sm:$0xff]  ;;  %v5604_v52 = vld [vmem:[#allocation36] ss:$0 sm:$0xff] }
 0x3bf   : > { %5865 = vmatpush3.bf16.msra.mxu0 %v6542_v7 }
 0x3c0   : > { %5885 = vmatpush3.bf16.msra.mxu1 %v6543_v8  ;;  %5866 = vmatprep.subr.bf16.mxu0 %v7783_v1 }
 0x3c1   : > { %5886 = vmatprep.subr.bf16.mxu1 %v7783_v1 }
 0x3c3   : > { %5867 = vmatpush3.bf16.msra.mxu0 %v6544_v9 }
 0x3c4   : > { %5887 = vmatpush3.bf16.msra.mxu1 %v6545_v10  ;;  %5868 = vmatprep.subr.bf16.mxu0 %v7783_v1 }
 0x3c5   : > { %5888 = vmatprep.subr.bf16.mxu1 %v7783_v1 }
 0x3c7   : > { %5869 = vmatpush3.bf16.msra.mxu0 %v6546_v11 }
 0x3c8   : > { %5889 = vmatpush3.bf16.msra.mxu1 %v6547_v12  ;;  %5870 = vmatprep.subr.bf16.mxu0 %v7783_v1 }
 0x3c9   : > { %5890 = vmatprep.subr.bf16.mxu1 %v7783_v1 }
 0x3cb   : > { %5871 = vmatpush3.bf16.msra.mxu0 %v6548_v13 }
 0x3cc   : > { %5891 = vmatpush3.bf16.msra.mxu1 %v6549_v14  ;;  %5872 = vmatprep.subr.bf16.mxu0 %v7783_v1 }
 0x3cd   : > { %5892 = vmatprep.subr.bf16.mxu1 %v7783_v1 }
 0x3cf   : > { %5873 = vmatpush3.bf16.msra.mxu0 %v6550_v15 }
 0x3d0   : > { %5893 = vmatpush3.bf16.msra.mxu1 %v6551_v16  ;;  %5898 = vmatprep.subr.bf16.mxu0 %v7783_v1 }
 0x3d1   : > { %5918 = vmatprep.subr.bf16.mxu1 %v7783_v1 }
 0x3d2   : > { %5875 = vmatmul.mubr.bf16.vlgmr.msra.gmra.mrb[0].mxu0 %v6552_v17 }
 0x3d3   : > { %5895 = vmatmul.mubr.bf16.vlgmr.msra.gmra.mrb[0].mxu1 %v6552_v17  ;;  %5899 = vmatpush3.bf16.msra.mxu0 %v6553_v18 }
 0x3d4   : > { %5919 = vmatpush3.bf16.msra.mxu1 %v6554_v19  ;;  %5900 = vmatprep.subr.bf16.mxu0 %v7783_v1 }
 0x3d5   : > { %5920 = vmatprep.subr.bf16.mxu1 %v7783_v1  ;;  %5914 = vmatprep.mubr.msk.bf16.mxu0 %vm7784_vm0, %v7783_v1 }
 0x3d6   : > { %5934 = vmatprep.mubr.msk.bf16.mxu1 %vm7784_vm0, %v7783_v1 }
 0x3d7   : > { %5901 = vmatpush3.bf16.msra.mxu0 %v6555_v20 }
 0x3d8   : > { %5921 = vmatpush3.bf16.msra.mxu1 %v6556_v21  ;;  %5902 = vmatprep.subr.bf16.mxu0 %v7783_v1 }
 0x3d9   : > { %5922 = vmatprep.subr.bf16.mxu1 %v7783_v1 }
 0x3db   : > { %5903 = vmatpush3.bf16.msra.mxu0 %v6557_v22 }
 0x3dc   : > { %5923 = vmatpush3.bf16.msra.mxu1 %v6558_v23  ;;  %5904 = vmatprep.subr.bf16.mxu0 %v7783_v1 }
 0x3dd   : > { %5924 = vmatprep.subr.bf16.mxu1 %v7783_v1 }
 0x3df   : > { %5905 = vmatpush3.bf16.msra.mxu0 %v6559_v24 }
 0x3e0   : > { %5925 = vmatpush3.bf16.msra.mxu1 %v6560_v25  ;;  %5906 = vmatprep.subr.bf16.mxu0 %v7783_v1 }
 0x3e1   : > { %5926 = vmatprep.subr.bf16.mxu1 %v7783_v1 }
 0x3e3   : > { %5907 = vmatpush3.bf16.msra.mxu0 %v6561_v26 }
 0x3e4   : > { %5927 = vmatpush3.bf16.msra.mxu1 %v6562_v27  ;;  %5908 = vmatprep.subr.bf16.mxu0 %v7783_v1 }
 0x3e5   : > { %5928 = vmatprep.subr.bf16.mxu1 %v7783_v1 }
 0x3e7   : > { %5909 = vmatpush3.bf16.msra.mxu0 %v6563_v28 }
 0x3e8   : > { %5929 = vmatpush3.bf16.msra.mxu1 %v6564_v29  ;;  %5910 = vmatprep.subr.bf16.mxu0 %v7783_v1 }
 0x3e9   : > { %5930 = vmatprep.subr.bf16.mxu1 %v7783_v1 }
 0x3eb   : > { %5911 = vmatpush3.bf16.msra.mxu0 %v6565_v30 }
 0x3ec   : > { %5931 = vmatpush3.bf16.msra.mxu1 %v6566_v31  ;;  %5912 = vmatprep.subr.bf16.mxu0 %v7783_v1 }
 0x3ed   : > { %5932 = vmatprep.subr.bf16.mxu1 %v7783_v1 }
 0x3ef   : > { %5913 = vmatpush3.bf16.msra.mxu0 %v6567_v32 }
 0x3f0   : > { %5933 = vmatpush3.bf16.msra.mxu1 %v6568_v33 }
 0x3f2   : > { %5915 = vmatmul.mubr.bf16.vlgmr.msra.gmra.mrb[4].mxu0 %v1665_v34 }
 0x3f3   : > { %5935 = vmatmul.mubr.bf16.vlgmr.msra.gmra.mrb[4].mxu1 %v1665_v34 }
 0x4a5   : > { %v1542_v37 = vpop.f32.mrb[0].mxu0 }
 0x4a6   : > { %v1543_v38 = vadd.f32 %v5576_v35, %v1542_v37  ;;  %v1656_v39 = vpop.f32.mrb[0].mxu1  ;;  %v5876_v40 = vpop.f32.mrb[1].mxu0 }
 0x4a7   : > { %v1657_v41 = vadd.f32 %v5586_v36, %v1656_v39  ;;  %v5896_v42 = vpop.f32.mrb[1].mxu1  ;;  %v1545_v43 = vpop.f32.mrb[2].mxu0 }
 0x4a8   : > { %v1546_v44 = vadd.f32 %v5576_v35, %v1545_v43  ;;  %v1659_v45 = vpop.f32.mrb[2].mxu1  ;;  %v5877_v46 = vpop.f32.mrb[3].mxu0 }
 0x4a9   : > { %v1660_v47 = vadd.f32 %v5586_v36, %v1659_v45  ;;  %v5897_v48 = vpop.f32.mrb[3].mxu1 }
 0x4aa   : > { %v1549_v49 = vpack.c.bf16 %v1546_v44, %v1543_v38 }
 0x4ab   : > { %v1663_v50 = vpack.c.bf16 %v1660_v47, %v1657_v41 }
 0x4ac   : > { %1550 = vst [vmem:[#allocation2] sm:$0xff] %v1549_v49 }
 0x4ad   : > { %1664 = vst [vmem:[#allocation3] sm:$0xff] %v1663_v50 }
 0x4c5   : > { %v1771_v53 = vpop.f32.mrb[4].mxu0 }
 0x4c6   : > { %v1772_v54 = vadd.f32 %v5595_v51, %v1771_v53  ;;  %v1884_v55 = vpop.f32.mrb[4].mxu1  ;;  %v5916_v56 = vpop.f32.mrb[5].mxu0 }
 0x4c7   : > { %v1885_v57 = vadd.f32 %v5604_v52, %v1884_v55  ;;  %v5936_v58 = vpop.f32.mrb[5].mxu1  ;;  %v1774_v59 = vpop.f32.mrb[6].mxu0 }
 0x4c8   : > { %v1777_v60 = vpack.c.bf16 %v1772_v54, %v1772_v54  ;;  %v1887_v61 = vpop.f32.mrb[6].mxu1  ;;  %v5917_v62 = vpop.f32.mrb[7].mxu0 }
 0x4c9   : > { %v1890_v63 = vpack.c.bf16 %v1885_v57, %v1885_v57  ;;  %v5937_v0 = vpop.f32.mrb[7].mxu1 }
 0x4ca   : > { %1778 = vst [vmem:[#allocation4] sm:$0xf] %v1777_v60 }
 0x4cb   : > { %1891 = vst [vmem:[#allocation5] sm:$0xf] %v1890_v63 }
 0x4cc PF: > { %v6569_v1 = vld [vmem:[#allocation14] sm:$0xff]   ;;  %s9365_s10 = sld [smem:[#allocation104_spill]]  ;;  %v7785_v2 = vmov 0.0   ;;  %v6570_v3 = vld [vmem:[#allocation14 + $0x8] sm:$0xff]   ;;  %vm7786_vm1 = vmmov 0   ;;  %v6571_v4 = vld [vmem:[#allocation14 + $0x10] sm:$0xff]   ;;  %v2028_v17 = vlaneseq }
 0x4cd   : > { %5938 = vmatprep.subr.bf16.mxu0 %v7785_v2  ;;  %5958 = vmatprep.subr.bf16.mxu1 %v7785_v2  ;;  %v6572_v5 = vld [vmem:[#allocation14 + $0x18] sm:$0xff]   ;;  %v2010_v6 = vld [vmem:[#allocation2] sm:$0xff]  ;;  %s7787_s19 = smov 96   ;;  %s7788_s4 = smov 32   ;;  %v6573_v7 = vld [vmem:[#allocation14 + $0x20] sm:$0xff]   ;;  %v7791_v22 = vmov 0  }
 0x4ce   : > { %5939 = vmatpush3.bf16.msra.mxu0 %v6569_v1  ;;  %5954 = vmatprep.mubr.msk.bf16.mxu0 %vm7786_vm1, %v7785_v2  ;;  %s7789_s18 = smov 64   ;;  %v6574_v8 = vld [vmem:[#allocation14 + $0x28] sm:$0xff]   ;;  %v6575_v9 = vld [vmem:[#allocation14 + $0x30] sm:$0xff]   ;;  %v6576_v10 = vld [vmem:[#allocation14 + $0x38] sm:$0xff]   ;;  %v7790_v15 = vmov 1983009808   ;;  %v8738_v23 = vpack.i.b16 %v7791_v22, %v7791_v22 }
 0x4cf   : > { %5940 = vmatprep.subr.bf16.mxu0 %v7785_v2  ;;  %5960 = vmatprep.mubr.msk.bf16.mxu1 %vm7786_vm1, %v7785_v2  ;;  %v2026_v16 = vunpack.c.l.s4 %v7790_v15  ;;  %v2174_v18 = vshrl.u32 %v2010_v6, 16  ;;  %v8740_v26 = vshrl.u32 %v2028_v17, 7  ;;  %v7792_v30 = vmov 1934713408   ;;  %s9367_s20 = sld [smem:[#allocation103_spill]]  ;;  %s5070_s29 = sshll.u32 %s8667_s1, 4  ;;  %s9112_s29 = int_to_ptr.vmem [resolvable:$true] %s5070_s29 }
 0x4d0   : > { %2164 = vrot.lane.b32.xlu0 %v2010_v6, %s7787_s19  ;;  %2168 = vrot.lane.b32.xlu1 %v2010_v6, %s7788_s4  ;;  %v2058_v31 = vunpack.c.l.s4 %v7792_v30  ;;  %vm2707_vm2 = vcmask 261120   ;;  %vm2900_vm3 = vcmask 130048   ;;  %vm3270_vm4 = vcmask 523264   ;;  %p9368_p13 = scmp.ne.s32.totalorder %s9298_s8, 0 }
 0x4d1   : > { %v2027_v25 = vunpack.c.0.s8 %v2026_v16  ;;  %vm3272_vm5 = vcmask 785408   ;;  %vm4170_vm6 = vcmask 64512   ;;  %vm4222_vm7 = vcmask 1043456  }
 0x4d2   : > { %s5613_s2 = sshll.u32 %s9365_s10, 3  ;;  %5941 = vmatpush3.bf16.msra.mxu0 %v6570_v3  ;;  %v2059_v37 = vunpack.c.0.s8 %v2058_v31 }
 0x4d3   : > { %s1893_s27 = sshra.s32 %s5613_s2, 3  ;;  %5942 = vmatprep.subr.bf16.mxu0 %v7785_v2  ;;  %v8743_v32 = vsub.s32 %v2027_v25, %v8740_v26  ;;  %s5055_s2 = scalar_lea.sflag [#allocation8], %s8595_s11 }
 0x4d4   : > { %s5614_s3 = sshll.u32 %s1893_s27, 2  ;;  %2166 = vrot.lane.b32.xlu0 %v2010_v6, %s7789_s18  ;;  %v8758_v46 = vsub.s32 %v2059_v37, %v8740_v26  ;;  %v5615_v37 = vld [vmem:[#allocation15] ss:$0 sm:$0xff]  ;;  %s7527_s27 = scalar_lea.vmem %s9112_s29, 64 }
 0x4d5   : > { %s1896_s5 = scalar_lea.vmem %s8581_s21, %s5614_s3 [#allocation6]  ;;  %s9366_s21 = sld [smem:[#allocation105_spill]] }
 0x4d6   : > { %5943 = vmatpush3.bf16.msra.mxu0 %v6571_v4  ;;  %v8730_v11 = vld [vmem:[%s1896_s5] sm:$0xf]  ;;  %p7528_p9 = scmp.ne.s32.totalorder %s9112_s29, %s7527_s27 }
 0x4d7   : > { %5944 = vmatprep.subr.bf16.mxu0 %v7785_v2 }
 0x4d8   : > { %p7529_p6 = pnand %p7528_p9, %p9368_p13 }
 0x4da   : > { %5945 = vmatpush3.bf16.msra.mxu0 %v6572_v5  ;;  %p7530_p10 = pneg %p7529_p6 }
 0x4db   : > { %5946 = vmatprep.subr.bf16.mxu0 %v7785_v2 }
 0x4de   : > { %5947 = vmatpush3.bf16.msra.mxu0 %v6573_v7 }
 0x4df   : > { %5948 = vmatprep.subr.bf16.mxu0 %v7785_v2 }
 0x4e2   : > { %5949 = vmatpush3.bf16.msra.mxu0 %v6574_v8 }
 0x4e3   : > { %5950 = vmatprep.subr.bf16.mxu0 %v7785_v2 }
 0x4e6   : > { %5951 = vmatpush3.bf16.msra.mxu0 %v6575_v9 }
 0x4e7   : > { %5952 = vmatprep.subr.bf16.mxu0 %v7785_v2 }
 0x4ea   : > { %5953 = vmatpush3.bf16.msra.mxu0 %v6576_v10 }
 0x4eb   : > { %6006 = vmatprep.subr.bf16.mxu0 %v7785_v2 }
 0x4ed   : > { %5955 = vmatmul.mubr.bf16.vlgmr.msra.gmra.mrb[0].mxu0 %v8730_v11 }
 0x4ee   : > { %6022 = vmatprep.mubr.msk.bf16.mxu0 %vm7786_vm1, %v7785_v2 }
 0x542   : > { %v2165_v12 = vpop.permute.xlu0 %2164  ;;  %v2169_v13 = vpop.permute.xlu1 %2168 }
 0x543   : > { %v2175_v19 = vshrl.u32 %v2165_v12, 16  ;;  %v2183_v20 = vshrl.u32 %v2169_v13, 16  ;;  %v2172_v24 = vpack.i.b16 %v2165_v12, %v2010_v6 }
 0x545   : > { %v2176_v28 = vpack.i.b16 %v2175_v19, %v2174_v18  ;;  %v2192_v33 = vcombine.high %v2172_v24, %v8738_v23  ;;  %v2199_v38 = vrot.slane %v2172_v24, %v8743_v32 }
 0x546   : > { %v2167_v14 = vpop.permute.xlu0 %2166 }
 0x547   : > { %v2182_v21 = vshrl.u32 %v2167_v14, 16  ;;  %v2180_v27 = vpack.i.b16 %v2169_v13, %v2167_v14  ;;  %v2258_v35 = vcombine.high %v2176_v28, %v8738_v23  ;;  %v2206_v39 = vrot.slane %v2192_v33, %v8743_v32 }
 0x548   : > { %v2265_v42 = vrot.slane %v2176_v28, %v8743_v32 }
 0x549   : > { %v2184_v29 = vpack.i.b16 %v2183_v20, %v2182_v21  ;;  %v2207_v34 = vcombine.high %v2180_v27, %v8738_v23  ;;  %v2214_v40 = vrot.slane %v2180_v27, %v8743_v32  ;;  %v2272_v44 = vrot.slane %v2258_v35, %v8743_v32 }
 0x54b   : > { %v2273_v36 = vcombine.high %v2184_v29, %v8738_v23  ;;  %v2221_v41 = vrot.slane %v2207_v34, %v8743_v32  ;;  %v2280_v43 = vrot.slane %v2184_v29, %v8743_v32  ;;  %v2222_v47 = vcombine.low %v2199_v38, %v2214_v40 }
 0x54c   : > { %v2223_v48 = vcombine.high %v2199_v38, %v2214_v40 }
 0x54d   : > { %v2287_v45 = vrot.slane %v2273_v36, %v8743_v32  ;;  %v2238_v49 = vcombine.low %v2206_v39, %v2221_v41  ;;  %v2239_v50 = vcombine.high %v2206_v39, %v2221_v41  ;;  %v2288_v51 = vcombine.low %v2265_v42, %v2280_v43 }
 0x54e   : > { %v2289_v52 = vcombine.high %v2265_v42, %v2280_v43  ;;  %v2230_v55 = vrot.slane %v2222_v47, %v8758_v46  ;;  %v2237_v56 = vrot.slane %v2223_v48, %v8758_v46 }
 0x54f   : > { %v2304_v53 = vcombine.low %v2272_v44, %v2287_v45  ;;  %v2305_v54 = vcombine.high %v2272_v44, %v2287_v45  ;;  %v2246_v57 = vrot.slane %v2238_v49, %v8758_v46  ;;  %v2253_v58 = vrot.slane %v2239_v50, %v8758_v46 }
 0x550   : > { %v2296_v59 = vrot.slane %v2288_v51, %v8758_v46  ;;  %v2303_v60 = vrot.slane %v2289_v52, %v8758_v46  ;;  %v2324_v63 = vcombine.low %v2230_v55, %v2237_v56  ;;  %v5626_v0 = vcombine.high %v2230_v55, %v2237_v56 }
 0x551   : > { %v2312_v61 = vrot.slane %v2304_v53, %v8758_v46  ;;  %v2319_v62 = vrot.slane %v2305_v54, %v8758_v46  ;;  %v2340_v1 = vcombine.low %v2246_v57, %v2253_v58  ;;  %v5627_v3 = vcombine.high %v2246_v57, %v2253_v58 }
 0x552   : > { %v2374_v4 = vcombine.low %v2296_v59, %v2303_v60  ;;  %v5628_v5 = vcombine.high %v2296_v59, %v2303_v60  ;;  %v2331_v8 = vrot.slane %v2324_v63, %v8743_v32  ;;  %v2339_v9 = vrot.slane %v5626_v0, %v8743_v32 }
 0x553   : > { %v2390_v6 = vcombine.low %v2312_v61, %v2319_v62  ;;  %v5629_v7 = vcombine.high %v2312_v61, %v2319_v62  ;;  %v2347_v10 = vrot.slane %v2340_v1, %v8743_v32  ;;  %v2355_v12 = vrot.slane %v5627_v3, %v8743_v32 }
 0x554   : > { %v2381_v13 = vrot.slane %v2374_v4, %v8743_v32  ;;  %v2389_v14 = vrot.slane %v5628_v5, %v8743_v32  ;;  %v2356_v17 = vcombine.low %v2331_v8, %v2339_v9 }
 0x555   : > { %v2397_v15 = vrot.slane %v2390_v6, %v8743_v32  ;;  %v2405_v16 = vrot.slane %v5629_v7, %v8743_v32  ;;  %v2364_v18 = vcombine.low %v2347_v10, %v2355_v12 }
 0x556   : > { %v2406_v19 = vcombine.low %v2381_v13, %v2389_v14  ;;  %v2363_v21 = vrot.slane %v2356_v17, %v8758_v46 }
 0x557   : > { %v2414_v20 = vcombine.low %v2397_v15, %v2405_v16  ;;  %v2371_v24 = vrot.slane %v2364_v18, %v8758_v46 }
 0x558   : > { %v2413_v25 = vrot.slane %v2406_v19, %v8758_v46 }
 0x559   : > { %v2421_v27 = vrot.slane %v2414_v20, %v8758_v46  ;;  %v2372_v28 = vcombine.low %v2363_v21, %v2371_v24  ;;  %v8780_v30 = vcombine.high %v2363_v21, %v2371_v24 }
 0x55b   : > { %v2422_v29 = vcombine.low %v2413_v25, %v2421_v27  ;;  %v8782_v31 = vcombine.high %v2413_v25, %v2421_v27  ;;  %v2427_v33 = vshrl.u32 %v2372_v28, 16  ;;  %v2433_v38 = vshrl.u32 %v8780_v30, 16 }
 0x55d   : > { %v2426_v34 = vpack.i.b16 %v2422_v29, %v2372_v28  ;;  %v2428_v35 = vshrl.u32 %v2422_v29, 16  ;;  %v2432_v36 = vpack.i.b16 %v8782_v31, %v8780_v30  ;;  %v2434_v39 = vshrl.u32 %v8782_v31, 16 }
 0x55f   : > { %v2712_v40 = vsel %vm2707_vm2, %v2426_v34, 0  ;;  %v2429_v41 = vpack.i.b16 %v2428_v35, %v2427_v33  ;;  %v2435_v43 = vpack.i.b16 %v2434_v39, %v2433_v38  ;;  %v2804_v30 = vsel %vm2707_vm2, %v2432_v36, 0  ;;  %v2012_v38 = vld [vmem:[%s8598_s9] sm:$0xff]  ;;  %s5727_s9 = sshll.u32 %s9366_s21, 1 }
 0x560   : > { %5959 = vmatpush3.bf16.xpose.msra.mxu1 %v2712_v40  ;;  %s5066_s26 = sadd.s32 %s9365_s10, %s5727_s9  ;;  %s7793_s10 = smov [#allocation53]  }
 0x561   : > { %5964 = vmatprep.subr.bf16.mxu1 %v7785_v2  ;;  %v2758_v20 = vsel %vm2707_vm2, %v2429_v41, 0  ;;  %v2850_v34 = vsel %vm2707_vm2, %v2435_v43, 0  ;;  %s7531_s3 = sshll.u32 %s7793_s10, 4  ;;  %s7532_s3 = int_to_ptr.vmem [resolvable:$false] %s7531_s3 }
 0x562   : > { %p7534_p1 = scmp.lt.s32.totalorder %s9112_s29, %s7532_s3 }
 0x5c0   : > { %v2004_v42 = vpop.f32.mrb[0].mxu0 }
 0x5c1   : > { %v2005_v44 = vadd.f32 %v5615_v37, %v2004_v42  ;;  %v5956_v45 = vpop.f32.mrb[1].mxu0 }
 0x5c2   : > { %v2007_v47 = vpop.f32.mrb[2].mxu0 }
 0x5c3   : > { %2017 = vrot.lane.b32.xlu0 %v2005_v44, %s7789_s18  ;;  %2014 = vrot.lane.b32.xlu1 %v2005_v44, %s7787_s19  ;;  %v5957_v48 = vpop.f32.mrb[3].mxu0 }
 0x5c7   : > { %2020 = vrot.lane.b32.xlu1 %v2005_v44, %s7788_s4 }
 0x635   : > { %v2018_v49 = vpop.permute.xlu0 %2017  ;;  %v2015_v50 = vpop.permute.xlu1 %2014 }
 0x636   : > { %v2023_v51 = vcombine.low %v2005_v44, %v2018_v49  ;;  %v2024_v52 = vcombine.high %v2005_v44, %v2018_v49 }
 0x638   : > { %v2031_v56 = vrot.slane %v2023_v51, %v8743_v32  ;;  %v2038_v57 = vrot.slane %v2024_v52, %v8743_v32 }
 0x639   : > { %v2021_v53 = vpop.permute.xlu1 %2020 }
 0x63a   : > { %v2039_v54 = vcombine.low %v2015_v50, %v2021_v53  ;;  %v2040_v55 = vcombine.high %v2015_v50, %v2021_v53 }
 0x63c   : > { %v2047_v58 = vrot.slane %v2039_v54, %v8743_v32  ;;  %v2054_v59 = vrot.slane %v2040_v55, %v8743_v32 }
 0x63e   : > { %v2055_v60 = vcombine.low %v2031_v56, %v2047_v58  ;;  %v2056_v61 = vcombine.high %v2031_v56, %v2047_v58  ;;  %v2071_v62 = vcombine.low %v2038_v57, %v2054_v59  ;;  %v2072_v63 = vcombine.high %v2038_v57, %v2054_v59 }
 0x640   : > { %v2063_v0 = vrot.slane %v2055_v60, %v8758_v46  ;;  %v2070_v1 = vrot.slane %v2056_v61, %v8758_v46  ;;  %v2079_v3 = vrot.slane %v2071_v62, %v8758_v46  ;;  %v2086_v4 = vrot.slane %v2072_v63, %v8758_v46 }
 0x642   : > { %v2091_v5 = vcombine.low %v2063_v0, %v2070_v1  ;;  %v5624_v6 = vcombine.high %v2063_v0, %v2070_v1  ;;  %v2107_v7 = vcombine.low %v2079_v3, %v2086_v4  ;;  %v5625_v8 = vcombine.high %v2079_v3, %v2086_v4  ;;  %v2011_v3 = vld [vmem:[#allocation3] sm:$0xff] }
 0x644   : > { %v2098_v9 = vrot.slane %v2091_v5, %v8743_v32  ;;  %v2106_v10 = vrot.slane %v5624_v6, %v8743_v32  ;;  %v2114_v12 = vrot.slane %v2107_v7, %v8743_v32  ;;  %v2122_v13 = vrot.slane %v5625_v8, %v8743_v32 }
 0x646   : > { %v2123_v14 = vcombine.low %v2098_v9, %v2106_v10  ;;  %v2139_v15 = vcombine.low %v2114_v12, %v2122_v13  ;;  %v2124_v21 = vcombine.high %v2098_v9, %v2106_v10  ;;  %v2140_v24 = vcombine.high %v2114_v12, %v2122_v13 }
 0x648   : > { %v2131_v16 = vrot.slane %v2123_v14, %v8758_v46  ;;  %v2147_v17 = vrot.slane %v2139_v15, %v8758_v46  ;;  %v2138_v28 = vrot.slane %v2124_v21, %v8758_v46  ;;  %v2154_v29 = vrot.slane %v2140_v24, %v8758_v46 }
 0x64a   : > { %v2155_v18 = vcombine.low %v2131_v16, %v2147_v17  ;;  %v2156_v25 = vcombine.high %v2131_v16, %v2147_v17  ;;  %v2157_v31 = vcombine.low %v2138_v28, %v2154_v29  ;;  %v2158_v35 = vcombine.high %v2138_v28, %v2154_v29 }
 0x64c   : > { %v2159_v19 = vpack.c.bf16 %v2155_v18, %v2155_v18  ;;  %v2160_v27 = vpack.c.bf16 %v2156_v25, %v2156_v25  ;;  %v2161_v33 = vpack.c.bf16 %v2157_v31, %v2157_v31  ;;  %v2162_v36 = vpack.c.bf16 %v2158_v35, %v2158_v35 }
 0x64d   : > { %v2447_v31 = vshrl.u32 %v2011_v3, 16 }
 0x64e   : > { %5961 = vmatmul.mubr.msk.bf16.vlgmr.msra.gmra.mrb[0].mxu1 %vm2707_vm2, %v2159_v19 }
 0x64f   : > { %5965 = vmatpush3.bf16.xpose.msra.mxu1 %v2758_v20  ;;  %5966 = vmatprep.mubr.msk.bf16.mxu1 %vm7786_vm1, %v7785_v2 }
 0x650   : > { %5970 = vmatprep.subr.bf16.mxu1 %v7785_v2 }
 0x656   : > { %5967 = vmatmul.mubr.msk.bf16.vlgmr.msra.gmra.mrb[4].mxu1 %vm2707_vm2, %v2160_v27 }
 0x657   : > { %5971 = vmatpush3.bf16.xpose.msra.mxu1 %v2804_v30  ;;  %5972 = vmatprep.mubr.msk.bf16.mxu1 %vm7786_vm1, %v7785_v2 }
 0x658   : > { %5976 = vmatprep.subr.bf16.mxu1 %v7785_v2 }
 0x65e   : > { %5973 = vmatmul.mubr.msk.bf16.vlgmr.msra.gmra.mrb[8].mxu1 %vm2707_vm2, %v2161_v33 }
 0x65f   : > { %5977 = vmatpush3.bf16.xpose.msra.mxu1 %v2850_v34  ;;  %5978 = vmatprep.mubr.msk.bf16.mxu1 %vm7786_vm1, %v7785_v2 }
 0x660   : > { %5982 = vmatprep.subr.bf16.mxu1 %v7785_v2 }
 0x666   : > { %5979 = vmatmul.mubr.msk.bf16.vlgmr.msra.gmra.mrb[12].mxu1 %vm2707_vm2, %v2162_v36 }
 0x667   : > { %5984 = vmatprep.mubr.msk.bf16.mxu1 %vm7786_vm1, %v7785_v2 }
 0x721   : > { %v2748_v37 = vpop.f32.mrb[0].mxu1 }
 0x722   : > { %v2892_v39 = vmul.f32 0.17677669, %v2748_v37  ;;  %v5962_v40 = vpop.f32.mrb[1].mxu1 }
 0x723   : > { %v2751_v41 = vpop.f32.mrb[2].mxu1 }
 0x724   : > { %v5963_v42 = vpop.f32.mrb[3].mxu1  ;;  %v2896_v43 = vadd.f32 %v2892_v39, %v2012_v38 }
 0x726   : > { %v2901_v44 = vsel %vm2900_vm3, %v2896_v43, -inf }
 0x727   : > { %2902 = vmax.xlane.f32.xlu0 %v2901_v44 }
 0x729   : > { %v2794_v45 = vpop.f32.mrb[4].mxu1 }
 0x72a   : > { %v2893_v47 = vmul.f32 0.17677669, %v2794_v45  ;;  %v5968_v48 = vpop.f32.mrb[5].mxu1 }
 0x72b   : > { %v2797_v49 = vpop.f32.mrb[6].mxu1 }
 0x72c   : > { %v5969_v50 = vpop.f32.mrb[7].mxu1  ;;  %v2897_v51 = vadd.f32 %v2893_v47, %v2012_v38 }
 0x72e   : > { %v2904_v52 = vsel %vm2900_vm3, %v2897_v51, -inf }
 0x72f   : > { %2905 = vmax.xlane.f32.xlu1 %v2904_v52 }
 0x731   : > { %v2840_v53 = vpop.f32.mrb[8].mxu1 }
 0x732   : > { %v2894_v54 = vmul.f32 0.17677669, %v2840_v53  ;;  %v5974_v55 = vpop.f32.mrb[9].mxu1 }
 0x733   : > { %v2843_v56 = vpop.f32.mrb[10].mxu1 }
 0x734   : > { %v5975_v57 = vpop.f32.mrb[11].mxu1  ;;  %v2898_v58 = vadd.f32 %v2894_v54, %v2012_v38 }
 0x736   : > { %v2907_v59 = vsel %vm2900_vm3, %v2898_v58, -inf }
 0x737   : > { %2908 = vmax.xlane.f32.xlu0 %v2907_v59 }
 0x739   : > { %v2886_v60 = vpop.f32.mrb[12].mxu1 }
 0x73a   : > { %v2895_v61 = vmul.f32 0.17677669, %v2886_v60  ;;  %v5980_v62 = vpop.f32.mrb[13].mxu1 }
 0x73b   : > { %v2889_v63 = vpop.f32.mrb[14].mxu1 }
 0x73c   : > { %v5981_v0 = vpop.f32.mrb[15].mxu1  ;;  %v2899_v1 = vadd.f32 %v2895_v61, %v2012_v38 }
 0x73e   : > { %v2910_v4 = vsel %vm2900_vm3, %v2899_v1, -inf }
 0x73f   : > { %2911 = vmax.xlane.f32.xlu0 %v2910_v4 }
 0x740   : > { %2439 = vrot.lane.b32.xlu1 %v2011_v3, %s7789_s18 }
 0x755   : > { %2437 = vrot.lane.b32.xlu0 %v2011_v3, %s7787_s19 }
 0x7b4   : > { %v2903_v5 = vpop.xlane.xlu0 %2902 }
 0x7b5   : > { %v2913_v6 = vsub.f32 %v2896_v43, %v2903_v5 }
 0x7b7   : > { %v2917_v7 = vmul.f32 1.442695, %v2913_v6 }
 0x7b9   : > { %6641 = vpow2.f32 %v2917_v7 }
 0x7bc   : > { %v2906_v8 = vpop.xlane.xlu1 %2905 }
 0x7bd   : > { %v2914_v9 = vsub.f32 %v2897_v51, %v2906_v8 }
 0x7bf   : > { %v2919_v10 = vmul.f32 1.442695, %v2914_v9 }
 0x7c0   : > { %v2440_v30 = vpop.permute.xlu1 %2439 }
 0x7c1   : > { %6643 = vpow2.f32 %v2919_v10  ;;  %v2455_v39 = vshrl.u32 %v2440_v30, 16 }
 0x7c3   : > { %v8834_v12 = vpop.eup %6641 }
 0x7c4   : > { %v2925_v13 = vsel %vm2900_vm3, %v8834_v12, 0.0  ;;  %v2909_v14 = vpop.xlane.xlu0 %2908 }
 0x7c5   : > { %2926 = vadd.xlane.f32.xlu1 %v2925_v13  ;;  %v2915_v24 = vsub.f32 %v2898_v58, %v2909_v14 }
 0x7c7   : > { %v2921_v25 = vmul.f32 1.442695, %v2915_v24 }
 0x7cb   : > { %v8838_v15 = vpop.eup %6643 }
 0x7cc   : > { %v2912_v16 = vpop.xlane.xlu0 %2911  ;;  %v2928_v17 = vsel %vm2900_vm3, %v8838_v15, 0.0 }
 0x7cd   : > { %v2916_v18 = vsub.f32 %v2899_v1, %v2912_v16  ;;  %2929 = vadd.xlane.f32.xlu0 %v2928_v17 }
 0x7cf   : > { %v2923_v19 = vmul.f32 1.442695, %v2916_v18 }
 0x7d0   : > { %v2438_v29 = vpop.permute.xlu0 %2437 }
 0x7d1   : > { %6645 = vpow2.f32 %v2923_v19  ;;  %v2448_v33 = vshrl.u32 %v2438_v29, 16  ;;  %v2445_v34 = vpack.i.b16 %v2438_v29, %v2011_v3 }
 0x7d2   : > { %6647 = vpow2.f32 %v2921_v25 }
 0x7d3   : > { %v2449_v36 = vpack.i.b16 %v2448_v33, %v2447_v31  ;;  %v2459_v37 = vcombine.high %v2445_v34, %v8738_v23  ;;  %v2466_v43 = vrot.slane %v2445_v34, %v8743_v32 }
 0x7d5   : > { %v2525_v42 = vcombine.high %v2449_v36, %v8738_v23  ;;  %v2473_v48 = vrot.slane %v2459_v37, %v8743_v32  ;;  %v2532_v53 = vrot.slane %v2449_v36, %v8743_v32 }
 0x7d6   : > { %2441 = vrot.lane.b32.xlu1 %v2011_v3, %s7788_s4 }
 0x7d7   : > { %v2539_v54 = vrot.slane %v2525_v42, %v8743_v32 }
 0x7db   : > { %v8843_v20 = vpop.eup %6645 }
 0x7dc   : > { %v2934_v21 = vsel %vm2900_vm3, %v8843_v20, 0.0  ;;  %v8847_v27 = vpop.eup %6647 }
 0x7dd   : > { %2935 = vadd.xlane.f32.xlu0 %v2934_v21  ;;  %v2931_v28 = vsel %vm2900_vm3, %v8847_v27, 0.0 }
 0x7fa   : > { %2932 = vadd.xlane.f32.xlu1 %v2931_v28 }
 0x852   : > { %v2927_v35 = vpop.xlane.xlu1 %2926 }
 0x853   : > { %6649 = vrcp.f32 %v2927_v35 }
 0x856   : > { %v2442_v38 = vpop.permute.xlu1 %2441 }
 0x857   : > { %v2453_v40 = vpack.i.b16 %v2442_v38, %v2440_v30  ;;  %v2456_v41 = vshrl.u32 %v2442_v38, 16 }
 0x859   : > { %v2457_v44 = vpack.i.b16 %v2456_v41, %v2455_v39  ;;  %v2474_v45 = vcombine.high %v2453_v40, %v8738_v23  ;;  %v2481_v47 = vrot.slane %v2453_v40, %v8743_v32 }
 0x85a   : > { %v2930_v29 = vpop.xlane.xlu0 %2929 }
 0x85b   : > { %v2488_v49 = vrot.slane %v2474_v45, %v8743_v32  ;;  %v2489_v50 = vcombine.low %v2466_v43, %v2481_v47  ;;  %v2490_v51 = vcombine.high %v2466_v43, %v2481_v47  ;;  %v2540_v52 = vcombine.high %v2457_v44, %v8738_v23 }
 0x85c   : > { %v2547_v55 = vrot.slane %v2457_v44, %v8743_v32  ;;  %6651 = vrcp.f32 %v2930_v29 }
 0x85d   : > { %v2497_v56 = vrot.slane %v2489_v50, %v8758_v46  ;;  %v2504_v57 = vrot.slane %v2490_v51, %v8758_v46  ;;  %v2505_v58 = vcombine.low %v2473_v48, %v2488_v49  ;;  %v2506_v59 = vcombine.high %v2473_v48, %v2488_v49  ;;  %v6650_v36 = vpop.eup %6649 }
 0x85e   : > { %v2554_v60 = vrot.slane %v2540_v52, %v8743_v32  ;;  %v2555_v61 = vcombine.low %v2532_v53, %v2547_v55  ;;  %v2556_v62 = vcombine.high %v2532_v53, %v2547_v55  ;;  %v2941_v44 = vmul.f32 %v6650_v36, %v8834_v12 }
 0x85f   : > { %v2513_v63 = vrot.slane %v2505_v58, %v8758_v46  ;;  %v2520_v23 = vrot.slane %v2506_v59, %v8758_v46  ;;  %v2591_v0 = vcombine.low %v2497_v56, %v2504_v57  ;;  %v5630_v1 = vcombine.high %v2497_v56, %v2504_v57 }
 0x860   : > { %v2563_v3 = vrot.slane %v2555_v61, %v8758_v46  ;;  %v2570_v4 = vrot.slane %v2556_v62, %v8758_v46  ;;  %v2571_v5 = vcombine.low %v2539_v54, %v2554_v60  ;;  %v2572_v6 = vcombine.high %v2539_v54, %v2554_v60 }
 0x861   : > { %v2598_v7 = vrot.slane %v2591_v0, %v8743_v32  ;;  %v2606_v8 = vrot.slane %v5630_v1, %v8743_v32  ;;  %v2607_v9 = vcombine.low %v2513_v63, %v2520_v23  ;;  %v5631_v10 = vcombine.high %v2513_v63, %v2520_v23  ;;  %v6578_v1 = vld [vmem:[#allocation23 + $0x8] sm:$0xff]  }
 0x862   : > { %v2579_v13 = vrot.slane %v2571_v5, %v8758_v46  ;;  %v2586_v14 = vrot.slane %v2572_v6, %v8758_v46  ;;  %v2641_v16 = vcombine.low %v2563_v3, %v2570_v4  ;;  %v5632_v17 = vcombine.high %v2563_v3, %v2570_v4  ;;  %v6579_v3 = vld [vmem:[#allocation23 + $0x10] sm:$0xff]   ;;  %v6580_v4 = vld [vmem:[#allocation23 + $0x18] sm:$0xff]   ;;  %v6582_v5 = vld [vmem:[#allocation23 + $0x28] sm:$0xff]  }
 0x863   : > { %v2614_v18 = vrot.slane %v2607_v9, %v8743_v32  ;;  %v2622_v19 = vrot.slane %v5631_v10, %v8743_v32  ;;  %v2623_v31 = vcombine.low %v2598_v7, %v2606_v8  ;;  %v2945_v49 = vpack.c.bf16 %v2941_v44, %v2941_v44 }
 0x864   : > { %v2648_v21 = vrot.slane %v2641_v16, %v8743_v32  ;;  %v2656_v24 = vrot.slane %v5632_v17, %v8743_v32  ;;  %v2657_v25 = vcombine.low %v2579_v13, %v2586_v14  ;;  %v5633_v28 = vcombine.high %v2579_v13, %v2586_v14 }
 0x865   : > { %v2631_v30 = vcombine.low %v2614_v18, %v2622_v19  ;;  %v2630_v39 = vrot.slane %v2623_v31, %v8758_v46 }
 0x866   : > { %v2664_v33 = vrot.slane %v2657_v25, %v8743_v32  ;;  %v2672_v34 = vrot.slane %v5633_v28, %v8743_v32  ;;  %v2673_v35 = vcombine.low %v2648_v21, %v2656_v24  ;;  %v6652_v50 = vpop.eup %6651 }
 0x867   : > { %v2638_v37 = vrot.slane %v2631_v30, %v8758_v46  ;;  %v2942_v52 = vmul.f32 %v6652_v50, %v8838_v15 }
 0x868   : > { %v2681_v38 = vcombine.low %v2664_v33, %v2672_v34  ;;  %v2680_v40 = vrot.slane %v2673_v35, %v8758_v46 }
 0x869   : > { %v2639_v42 = vcombine.low %v2630_v39, %v2638_v37  ;;  %v2640_v53 = vcombine.high %v2630_v39, %v2638_v37  ;;  %v2946_v54 = vpack.c.bf16 %v2942_v52, %v2942_v52 }
 0x86a   : > { %v2688_v41 = vrot.slane %v2681_v38, %v8758_v46  ;;  %v2936_v57 = vpop.xlane.xlu0 %2935 }
 0x86b   : > { %v2695_v48 = vshrl.u32 %v2639_v42, 16  ;;  %v2703_v60 = vshrl.u32 %v2640_v53, 16 }
 0x86c   : > { %v2689_v43 = vcombine.low %v2680_v40, %v2688_v41  ;;  %v2690_v12 = vcombine.high %v2680_v40, %v2688_v41 }
 0x86e   : > { %v2693_v45 = vpack.i.b16 %v2689_v43, %v2639_v42  ;;  %v2696_v47 = vshrl.u32 %v2689_v43, 16  ;;  %v2701_v55 = vpack.i.b16 %v2690_v12, %v2640_v53  ;;  %v2704_v15 = vshrl.u32 %v2690_v12, 16  ;;  %v6583_v43 = vld [vmem:[#allocation23 + $0x30] sm:$0xff]  }
 0x870   : > { %5983 = vmatpush3.bf16.msra.mxu1 %v2693_v45  ;;  %v2697_v51 = vpack.i.b16 %v2696_v47, %v2695_v48  ;;  %v2705_v63 = vpack.i.b16 %v2704_v15, %v2703_v60 }
 0x871   : > { %5988 = vmatprep.subr.bf16.mxu1 %v7785_v2 }
 0x873   : > { %5985 = vmatmul.mubr.msk.bf16.vlgmr.msra.gmra.mrb[16].mxu1 %vm2900_vm3, %v2945_v49 }
 0x874   : > { %5989 = vmatpush3.bf16.msra.mxu1 %v2697_v51  ;;  %5990 = vmatprep.mubr.msk.bf16.mxu1 %vm7786_vm1, %v7785_v2 }
 0x875   : > { %5994 = vmatprep.subr.bf16.mxu1 %v7785_v2 }
 0x87b   : > { %5991 = vmatmul.mubr.msk.bf16.vlgmr.msra.gmra.mrb[20].mxu1 %vm2900_vm3, %v2946_v54 }
 0x87c   : > { %5995 = vmatpush3.bf16.msra.mxu1 %v2701_v55  ;;  %5996 = vmatprep.mubr.msk.bf16.mxu1 %vm7786_vm1, %v7785_v2 }
 0x87d   : > { %6000 = vmatprep.subr.bf16.mxu1 %v7785_v2 }
 0x887   : > { %v2933_v56 = vpop.xlane.xlu1 %2932 }
 0x888   : > { %6653 = vrcp.f32 %v2933_v56  ;;  %v6584_v56 = vld [vmem:[#allocation23 + $0x38] sm:$0xff]  }
 0x889   : > { %6655 = vrcp.f32 %v2936_v57 }
 0x892   : > { %v6654_v58 = vpop.eup %6653 }
 0x893   : > { %v2943_v59 = vmul.f32 %v6654_v58, %v8847_v27  ;;  %v6656_v62 = vpop.eup %6655  ;;  %v6577_v27 = vld [vmem:[#allocation23] sm:$0xff]  }
 0x894   : > { %v2944_v23 = vmul.f32 %v6656_v62, %v8843_v20  ;;  %6007 = vmatpush3.bf16.msra.mxu0 %v6577_v27  ;;  %v6581_v20 = vld [vmem:[#allocation23 + $0x20] sm:$0xff]  }
 0x895   : > { %v2947_v61 = vpack.c.bf16 %v2943_v59, %v2943_v59  ;;  %6008 = vmatprep.subr.bf16.mxu0 %v7785_v2 }
 0x896   : > { %v2948_v0 = vpack.c.bf16 %v2944_v23, %v2944_v23 }
 0x897   : > { %5997 = vmatmul.mubr.msk.bf16.vlgmr.msra.gmra.mrb[24].mxu1 %vm2900_vm3, %v2947_v61 }
 0x898   : > { %6001 = vmatpush3.bf16.msra.mxu1 %v2705_v63  ;;  %6002 = vmatprep.mubr.msk.bf16.mxu1 %vm7786_vm1, %v7785_v2 }
 0x899   : > { %6026 = vmatprep.subr.bf16.mxu1 %v7785_v2  ;;  %6009 = vmatpush3.bf16.msra.mxu0 %v6578_v1 }
 0x89a   : > { %6010 = vmatprep.subr.bf16.mxu0 %v7785_v2 }
 0x89d   : > { %6011 = vmatpush3.bf16.msra.mxu0 %v6579_v3 }
 0x89e   : > { %6012 = vmatprep.subr.bf16.mxu0 %v7785_v2 }
 0x89f   : > { %6003 = vmatmul.mubr.msk.bf16.vlgmr.msra.gmra.mrb[28].mxu1 %vm2900_vm3, %v2948_v0 }
 0x8a0   : > { %6042 = vmatprep.mubr.msk.bf16.mxu1 %vm7786_vm1, %v7785_v2 }
 0x8a1   : > { %6013 = vmatpush3.bf16.msra.mxu0 %v6580_v4 }
 0x8a2   : > { %6014 = vmatprep.subr.bf16.mxu0 %v7785_v2 }
 0x8a5   : > { %6015 = vmatpush3.bf16.msra.mxu0 %v6581_v20 }
 0x8a6   : > { %6016 = vmatprep.subr.bf16.mxu0 %v7785_v2 }
 0x8a9   : > { %6017 = vmatpush3.bf16.msra.mxu0 %v6582_v5 }
 0x8aa   : > { %6018 = vmatprep.subr.bf16.mxu0 %v7785_v2 }
 0x8ad   : > { %6019 = vmatpush3.bf16.msra.mxu0 %v6583_v43 }
 0x8ae   : > { %6020 = vmatprep.subr.bf16.mxu0 %v7785_v2 }
 0x8b1   : > { %6021 = vmatpush3.bf16.msra.mxu0 %v6584_v56 }
 0x8b2   : > { %6046 = vmatprep.subr.bf16.mxu0 %v7785_v2 }
 0x946   : > { %v2986_v6 = vpop.f32.mrb[16].mxu1 }
 0x947   : > { %v5986_v7 = vpop.f32.mrb[17].mxu1 }
 0x948   : > { %v2989_v8 = vpop.f32.mrb[18].mxu1 }
 0x949   : > { %v5987_v9 = vpop.f32.mrb[19].mxu1 }
 0x94a   : > { %v5644_v9 = vld [vmem:[#allocation24] ss:$0 sm:$0xff] }
 0x94e   : > { %v3029_v10 = vpop.f32.mrb[20].mxu1 }
 0x94f   : > { %v5992_v13 = vpop.f32.mrb[21].mxu1 }
 0x950   : > { %v3032_v14 = vpop.f32.mrb[22].mxu1 }
 0x951   : > { %v5993_v16 = vpop.f32.mrb[23].mxu1 }
 0x96a   : > { %v3072_v17 = vpop.f32.mrb[24].mxu1 }
 0x96b   : > { %v3121_v18 = vcombine.low %v2986_v6, %v3072_v17  ;;  %v3122_v19 = vcombine.high %v2986_v6, %v3072_v17  ;;  %v5998_v21 = vpop.f32.mrb[25].mxu1 }
 0x96c   : > { %v3075_v24 = vpop.f32.mrb[26].mxu1  ;;  %v6585_v21 = vld [vmem:[#allocation29] sm:$0xff]  }
 0x96d   : > { %v5999_v25 = vpop.f32.mrb[27].mxu1  ;;  %v3129_v34 = vrot.slane %v3121_v18, %v8743_v32  ;;  %v3136_v35 = vrot.slane %v3122_v19, %v8743_v32  ;;  %6027 = vmatpush3.bf16.msra.mxu1 %v6585_v21  ;;  %v6586_v24 = vld [vmem:[#allocation29 + $0x8] sm:$0xff]  }
 0x96e   : > { %6028 = vmatprep.subr.bf16.mxu1 %v7785_v2 }
 0x971   : > { %6029 = vmatpush3.bf16.msra.mxu1 %v6586_v24 }
 0x972   : > { %v3115_v28 = vpop.f32.mrb[28].mxu1  ;;  %6030 = vmatprep.subr.bf16.mxu1 %v7785_v2 }
 0x973   : > { %v3137_v29 = vcombine.low %v3029_v10, %v3115_v28  ;;  %v3138_v30 = vcombine.high %v3029_v10, %v3115_v28  ;;  %v6004_v31 = vpop.f32.mrb[29].mxu1  ;;  %v1898_v10 = vunpack.c.l.bf16 %v8730_v11  ;;  %v6587_v11 = vld [vmem:[#allocation29 + $0x10] sm:$0xff]  }
 0x974   : > { %v3118_v33 = vpop.f32.mrb[30].mxu1  ;;  %v6588_v31 = vld [vmem:[#allocation29 + $0x18] sm:$0xff]  }
 0x975   : > { %v3145_v36 = vrot.slane %v3137_v29, %v8743_v32  ;;  %v3152_v37 = vrot.slane %v3138_v30, %v8743_v32  ;;  %v6005_v38 = vpop.f32.mrb[31].mxu1  ;;  %6031 = vmatpush3.bf16.msra.mxu1 %v6587_v11  ;;  %v6589_v33 = vld [vmem:[#allocation29 + $0x20] sm:$0xff]  }
 0x976   : > { %6032 = vmatprep.subr.bf16.mxu1 %v7785_v2 }
 0x977   : > { %v3153_v39 = vcombine.low %v3129_v34, %v3145_v36  ;;  %v3154_v40 = vcombine.high %v3129_v34, %v3145_v36  ;;  %v3169_v41 = vcombine.low %v3136_v35, %v3152_v37  ;;  %v3170_v42 = vcombine.high %v3136_v35, %v3152_v37  ;;  %v6590_v34 = vld [vmem:[#allocation29 + $0x28] sm:$0xff]   ;;  %v6591_v35 = vld [vmem:[#allocation29 + $0x30] sm:$0xff]   ;;  %v6592_v36 = vld [vmem:[#allocation29 + $0x38] sm:$0xff]  }
 0x978   : > { %v3527_v37 = vld [vmem:[#allocation4] sm:$0xf] }
 0x979   : > { %v3161_v44 = vrot.slane %v3153_v39, %v8758_v46  ;;  %v3168_v45 = vrot.slane %v3154_v40, %v8758_v46  ;;  %v3177_v47 = vrot.slane %v3169_v41, %v8758_v46  ;;  %v3184_v48 = vrot.slane %v3170_v42, %v8758_v46  ;;  %6033 = vmatpush3.bf16.msra.mxu1 %v6588_v31  ;;  %v5653_v42 = vld [vmem:[#allocation26] ss:$0 sm:$0xff] }
 0x97a   : > { %6034 = vmatprep.subr.bf16.mxu1 %v7785_v2 }
 0x97b   : > { %v3189_v49 = vcombine.low %v3161_v44, %v3168_v45  ;;  %v5642_v50 = vcombine.high %v3161_v44, %v3168_v45  ;;  %v3205_v51 = vcombine.low %v3177_v47, %v3184_v48  ;;  %v5643_v52 = vcombine.high %v3177_v47, %v3184_v48  ;;  %v5654_v44 = vld [vmem:[#allocation27] ss:$0 sm:$0xff] }
 0x97d   : > { %v3196_v12 = vrot.slane %v3189_v49, %v8743_v32  ;;  %v3204_v53 = vrot.slane %v5642_v50, %v8743_v32  ;;  %v3212_v54 = vrot.slane %v3205_v51, %v8743_v32  ;;  %v3220_v55 = vrot.slane %v5643_v52, %v8743_v32  ;;  %6035 = vmatpush3.bf16.msra.mxu1 %v6589_v33 }
 0x97e   : > { %6036 = vmatprep.subr.bf16.mxu1 %v7785_v2  ;;  %v3690_v52 = vshrl.u32 %v3527_v37, 16 }
 0x97f   : > { %v3222_v57 = vcombine.high %v3196_v12, %v3204_v53  ;;  %v3238_v58 = vcombine.high %v3212_v54, %v3220_v55  ;;  %v3221_v15 = vcombine.low %v3196_v12, %v3204_v53  ;;  %v3237_v59 = vcombine.low %v3212_v54, %v3220_v55 }
 0x981   : > { %v3236_v60 = vrot.slane %v3222_v57, %v8758_v46  ;;  %v3252_v61 = vrot.slane %v3238_v58, %v8758_v46  ;;  %v3229_v62 = vrot.slane %v3221_v15, %v8758_v46  ;;  %v3245_v63 = vrot.slane %v3237_v59, %v8758_v46  ;;  %6037 = vmatpush3.bf16.msra.mxu1 %v6590_v34 }
 0x982   : > { %6038 = vmatprep.subr.bf16.mxu1 %v7785_v2 }
 0x983   : > { %v3255_v23 = vcombine.low %v3236_v60, %v3252_v61  ;;  %v3254_v0 = vcombine.high %v3229_v62, %v3245_v63  ;;  %v3256_v27 = vcombine.high %v3236_v60, %v3252_v61  ;;  %v3253_v1 = vcombine.low %v3229_v62, %v3245_v63 }
 0x985   : > { %3262 = vrot.lane.b32.xlu1 %v3255_v23, %s7789_s18  ;;  %3258 = vrot.lane.b32.xlu0 %v3254_v0, %s7788_s4 }
 0x986   : > { %6039 = vmatpush3.bf16.msra.mxu1 %v6591_v35 }
 0x987   : > { %6040 = vmatprep.subr.bf16.mxu1 %v7785_v2 }
 0x989   : > { %3266 = vrot.lane.b32.xlu1 %v3256_v27, %s7787_s19 }
 0x98a   : > { %6041 = vmatpush3.bf16.msra.mxu1 %v6592_v36 }
 0x98b   : > { %6052 = vmatprep.subr.bf16.mxu1 %v7785_v2 }
 0x9f7   : > { %v3263_v3 = vpop.permute.xlu1 %3262  ;;  %v3259_v4 = vpop.permute.xlu0 %3258 }
 0x9f8   : > { %v3269_v20 = vsel %vm2707_vm2, %v3253_v1, %v3259_v4 }
 0x9f9   : > { %v3271_v6 = vsel %vm3270_vm4, %v3269_v20, %v3263_v3 }
 0x9fb   : > { %v3267_v5 = vpop.permute.xlu1 %3266 }
 0x9fc   : > { %v3273_v7 = vsel %vm3272_vm5, %v3271_v6, %v3267_v5 }
 0x9fd   : > { %v3274_v8 = vpack.c.bf16 %v3273_v7, %v3273_v7 }
 0x9ff   : > { %6023 = vmatmul.mubr.bf16.vlgmr.msra.gmra.mrb[4].mxu0 %v3274_v8 }
 0xa00   : > { %6048 = vmatprep.mubr.msk.bf16.mxu0 %vm7786_vm1, %v7785_v2 }
 0xad2   : > { %v3380_v13 = vpop.f32.mrb[4].mxu0 }
 0xad3   : > { %v3381_v14 = vadd.f32 %v5644_v9, %v3380_v13  ;;  %v6024_v16 = vpop.f32.mrb[5].mxu0 }
 0xad4   : > { %v3383_v17 = vpop.f32.mrb[6].mxu0 }
 0xad5   : > { %v6025_v18 = vpop.f32.mrb[7].mxu0  ;;  %v3386_v19 = vadd.f32 %v3381_v14, %v1898_v10 }
 0xad7   : > { %3389 = vadd.xlane.f32.xlu0 %v3386_v19 }
 0xaed   : > { %3681 = vrot.lane.b32.xlu0 %v3527_v37, %s7787_s19 }
 0xaf1   : > { %3685 = vrot.lane.b32.xlu0 %v3527_v37, %s7788_s4 }
 0xb64   : > { %v3390_v25 = vpop.xlane.xlu0 %3389 }
 0xb65   : > { %v3392_v28 = vmul.f32 0.0078125, %v3390_v25 }
 0xb67   : > { %v3393_v29 = vsub.f32 %v3386_v19, %v3392_v28  ;;  %v5655_v19 = vld [vmem:[#allocation30] ss:$0 sm:$0xff] }
 0xb68   : > { %v3682_v49 = vpop.permute.xlu0 %3681 }
 0xb69   : > { %v3394_v30 = vmul.f32 %v3393_v29, %v3393_v29  ;;  %v3691_v12 = vshrl.u32 %v3682_v49, 16  ;;  %v3689_v55 = vpack.i.b16 %v3682_v49, %v3527_v37 }
 0xb6b   : > { %3395 = vadd.xlane.f32.xlu1 %v3394_v30  ;;  %v3692_v56 = vpack.i.b16 %v3691_v12, %v3690_v52  ;;  %v3706_v15 = vrot.slane %v3689_v55, %v8743_v32 }
 0xb6c   : > { %v3686_v51 = vpop.permute.xlu0 %3685 }
 0xb6d   : > { %v3697_v54 = vshrl.u32 %v3686_v51, 16  ;;  %v3740_v59 = vrot.slane %v3692_v56, %v8743_v32 }
 0xb7c   : > { %3683 = vrot.lane.b32.xlu1 %v3527_v37, %s7789_s18 }
 0xbf8   : > { %v3396_v38 = vpop.xlane.xlu1 %3395 }
 0xbf9   : > { %v3397_v39 = vmul.f32 0.0078125, %v3396_v38 }
 0xbfb   : > { %v3398_v40 = vadd.f32 1e-12, %v3397_v39 }
 0xbfc   : > { %v3684_v50 = vpop.permute.xlu1 %3683 }
 0xbfd   : > { %6657 = vrsqrt.f32 %v3398_v40  ;;  %v3696_v53 = vshrl.u32 %v3684_v50, 16  ;;  %v3695_v57 = vpack.i.b16 %v3686_v51, %v3684_v50 }
 0xbff   : > { %v3698_v58 = vpack.i.b16 %v3697_v54, %v3696_v53  ;;  %v3714_v60 = vrot.slane %v3695_v57, %v8743_v32 }
 0xc01   : > { %v3748_v61 = vrot.slane %v3698_v58, %v8743_v32  ;;  %v3715_v62 = vcombine.low %v3706_v15, %v3714_v60  ;;  %v3716_v63 = vcombine.high %v3706_v15, %v3714_v60 }
 0xc03   : > { %v3749_v23 = vcombine.low %v3740_v59, %v3748_v61  ;;  %v3750_v0 = vcombine.high %v3740_v59, %v3748_v61  ;;  %v3723_v27 = vrot.slane %v3715_v62, %v8758_v46  ;;  %v3730_v1 = vrot.slane %v3716_v63, %v8758_v46 }
 0xc05   : > { %v3757_v3 = vrot.slane %v3749_v23, %v8758_v46  ;;  %v3764_v4 = vrot.slane %v3750_v0, %v8758_v46  ;;  %v3767_v20 = vcombine.low %v3723_v27, %v3730_v1  ;;  %v5666_v5 = vcombine.high %v3723_v27, %v3730_v1 }
 0xc07   : > { %v6658_v41 = vpop.eup %6657  ;;  %v3792_v6 = vcombine.low %v3757_v3, %v3764_v4  ;;  %v5667_v7 = vcombine.high %v3757_v3, %v3764_v4  ;;  %v3774_v8 = vrot.slane %v3767_v20, %v8743_v32  ;;  %v3782_v9 = vrot.slane %v5666_v5, %v8743_v32 }
 0xc08   : > { %v3400_v43 = vmul.f32 %v6658_v41, %v3393_v29 }
 0xc09   : > { %v3799_v10 = vrot.slane %v3792_v6, %v8743_v32  ;;  %v3807_v13 = vrot.slane %v5667_v7, %v8743_v32  ;;  %v3783_v14 = vcombine.low %v3774_v8, %v3782_v9 }
 0xc0a   : > { %v3407_v45 = vmul.f32 %v5653_v42, %v3400_v43 }
 0xc0b   : > { %v3808_v16 = vcombine.low %v3799_v10, %v3807_v13  ;;  %v3790_v17 = vrot.slane %v3783_v14, %v8758_v46 }
 0xc0c   : > { %v8947_v47 = vadd.f32 %v5654_v44, %v3407_v45 }
 0xc0d   : > { %v3815_v18 = vrot.slane %v3808_v16, %v8758_v46  ;;  %v3820_v24 = vshrl.u32 %v3790_v17, 16  ;;  %v8968_v28 = vcombine.high %v3790_v17, %v7791_v22 }
 0xc0e   : > { %v3415_v48 = vpack.c.bf16 %v8947_v47, %v8947_v47 }
 0xc0f   : > { %v3819_v21 = vpack.i.b16 %v3815_v18, %v3790_v17  ;;  %v3821_v25 = vshrl.u32 %v3815_v18, 16  ;;  %v3816_v30 = vcombine.high %v3815_v18, %v7791_v22  ;;  %v3826_v35 = vshrl.u32 %v8968_v28, 16 }
 0xc10   : > { %6043 = vmatmul.mubr.bf16.vlgmr.msra.gmra.mrb[32].mxu1 %v3415_v48 }
 0xc11   : > { %6054 = vmatprep.mubr.msk.bf16.mxu1 %vm7786_vm1, %v7785_v2  ;;  %v3982_v33 = vsel %vm2707_vm2, %v3819_v21, 0  ;;  %v3822_v34 = vpack.i.b16 %v3821_v25, %v3820_v24  ;;  %v3825_v37 = vpack.i.b16 %v3816_v30, %v8968_v28  ;;  %v3827_v38 = vshrl.u32 %v3816_v30, 16 }
 0xc12   : > { %6047 = vmatpush3.bf16.xpose.msra.mxu0 %v3982_v33 }
 0xc13   : > { %v4028_v40 = vsel %vm2707_vm2, %v3822_v34, 0  ;;  %6058 = vmatprep.subr.bf16.mxu0 %v7785_v2  ;;  %v3828_v41 = vpack.i.b16 %v3827_v38, %v3826_v35  ;;  %v4074_v18 = vsel %vm2707_vm2, %v3825_v37, 0 }
 0xc14   : > { %6053 = vmatpush3.bf16.xpose.msra.mxu1 %v4028_v40 }
 0xc15   : > { %6064 = vmatprep.subr.bf16.mxu1 %v7785_v2 }
 0xce3   : > { %v3521_v29 = vpop.f32.mrb[32].mxu1 }
 0xce4   : > { %v3522_v11 = vadd.f32 %v5655_v19, %v3521_v29  ;;  %v6044_v31 = vpop.f32.mrb[33].mxu1  ;;  %v4120_v19 = vsel %vm2707_vm2, %v3828_v41, 0 }
 0xce5   : > { %v3524_v36 = vpop.f32.mrb[34].mxu1 }
 0xce6   : > { %3534 = vrot.lane.b32.xlu0 %v3522_v11, %s7789_s18  ;;  %3531 = vrot.lane.b32.xlu1 %v3522_v11, %s7787_s19  ;;  %v6045_v39 = vpop.f32.mrb[35].mxu1 }
 0xcea   : > { %3537 = vrot.lane.b32.xlu1 %v3522_v11, %s7788_s4 }
 0xd58   : > { %v3532_v42 = vpop.permute.xlu1 %3531  ;;  %v3535_v43 = vpop.permute.xlu0 %3534 }
 0xd59   : > { %v3540_v44 = vcombine.low %v3522_v11, %v3535_v43  ;;  %v3541_v45 = vcombine.high %v3522_v11, %v3535_v43  ;;  %v3529_v11 = vld [vmem:[%s8604_s17] sm:$0xff]  ;;  %s5728_s17 = sshll.u32 %s5066_s26, 6 }
 0xd5a   : > { %s9110_s13 = scalar_lea.hbm %s9367_s20, %s5728_s17 }
 0xd5b   : > { %v3548_v51 = vrot.slane %v3540_v44, %v8743_v32  ;;  %v3555_v52 = vrot.slane %v3541_v45, %v8743_v32 }
 0xd5c   : > { %v3538_v48 = vpop.permute.xlu1 %3537 }
 0xd5d   : > { %v3556_v49 = vcombine.low %v3532_v42, %v3538_v48  ;;  %v3557_v50 = vcombine.high %v3532_v42, %v3538_v48 }
 0xd5f   : > { %v3564_v12 = vrot.slane %v3556_v49, %v8743_v32  ;;  %v3571_v53 = vrot.slane %v3557_v50, %v8743_v32 }
 0xd61   : > { %v3572_v54 = vcombine.low %v3548_v51, %v3564_v12  ;;  %v3573_v55 = vcombine.high %v3548_v51, %v3564_v12  ;;  %v3588_v56 = vcombine.low %v3555_v52, %v3571_v53  ;;  %v3589_v57 = vcombine.high %v3555_v52, %v3571_v53 }
 0xd63   : > { %v3580_v58 = vrot.slane %v3572_v54, %v8758_v46  ;;  %v3587_v15 = vrot.slane %v3573_v55, %v8758_v46  ;;  %v3596_v59 = vrot.slane %v3588_v56, %v8758_v46  ;;  %v3603_v60 = vrot.slane %v3589_v57, %v8758_v46 }
 0xd65   : > { %v3608_v61 = vcombine.low %v3580_v58, %v3587_v15  ;;  %v5664_v62 = vcombine.high %v3580_v58, %v3587_v15  ;;  %v3624_v63 = vcombine.low %v3596_v59, %v3603_v60  ;;  %v5665_v23 = vcombine.high %v3596_v59, %v3603_v60  ;;  %v3528_v15 = vld [vmem:[#allocation5] sm:$0xf] }
 0xd67   : > { %v3615_v0 = vrot.slane %v3608_v61, %v8743_v32  ;;  %v3623_v27 = vrot.slane %v5664_v62, %v8743_v32  ;;  %v3631_v1 = vrot.slane %v3624_v63, %v8743_v32  ;;  %v3639_v3 = vrot.slane %v5665_v23, %v8743_v32 }
 0xd69   : > { %v3640_v4 = vcombine.low %v3615_v0, %v3623_v27  ;;  %v3656_v20 = vcombine.low %v3631_v1, %v3639_v3  ;;  %v3641_v5 = vcombine.high %v3615_v0, %v3623_v27  ;;  %v3657_v6 = vcombine.high %v3631_v1, %v3639_v3 }
 0xd6b   : > { %v3648_v7 = vrot.slane %v3640_v4, %v8758_v46  ;;  %v3664_v8 = vrot.slane %v3656_v20, %v8758_v46  ;;  %v3655_v16 = vrot.slane %v3641_v5, %v8758_v46  ;;  %v3671_v17 = vrot.slane %v3657_v6, %v8758_v46 }
 0xd6d   : > { %v3672_v9 = vcombine.low %v3648_v7, %v3664_v8  ;;  %v3673_v10 = vcombine.high %v3648_v7, %v3664_v8  ;;  %v3674_v21 = vcombine.low %v3655_v16, %v3671_v17  ;;  %v3675_v24 = vcombine.high %v3655_v16, %v3671_v17 }
 0xd6f   : > { %v3676_v13 = vpack.c.bf16 %v3672_v9, %v3672_v9  ;;  %v3677_v14 = vpack.c.bf16 %v3673_v10, %v3673_v10  ;;  %v3678_v25 = vpack.c.bf16 %v3674_v21, %v3674_v21  ;;  %v3679_v28 = vpack.c.bf16 %v3675_v24, %v3675_v24 }
 0xd71   : > { %6049 = vmatmul.mubr.msk.bf16.vlgmr.msra.gmra.mrb[8].mxu0 %vm2707_vm2, %v3676_v13  ;;  %6055 = vmatmul.mubr.msk.bf16.vlgmr.msra.gmra.mrb[36].mxu1 %vm2707_vm2, %v3677_v14 }
 0xd72   : > { %6059 = vmatpush3.bf16.xpose.msra.mxu0 %v4074_v18  ;;  %6065 = vmatpush3.bf16.xpose.msra.mxu1 %v4120_v19  ;;  %v3839_v19 = vshrl.u32 %v3528_v15, 16 }
 0xd73   : > { %6060 = vmatprep.mubr.msk.bf16.mxu0 %vm7786_vm1, %v7785_v2  ;;  %6066 = vmatprep.mubr.msk.bf16.mxu1 %vm7786_vm1, %v7785_v2 }
 0xd74   : > { %6070 = vmatprep.subr.bf16.mxu0 %v7785_v2  ;;  %6076 = vmatprep.subr.bf16.mxu1 %v7785_v2 }
 0xd79   : > { %6061 = vmatmul.mubr.msk.bf16.vlgmr.msra.gmra.mrb[12].mxu0 %vm2707_vm2, %v3678_v25  ;;  %6067 = vmatmul.mubr.msk.bf16.vlgmr.msra.gmra.mrb[40].mxu1 %vm2707_vm2, %v3679_v28 }
 0xd7a   : > { %6072 = vmatprep.mubr.msk.bf16.mxu0 %vm7786_vm1, %v7785_v2  ;;  %6078 = vmatprep.mubr.msk.bf16.mxu1 %vm7786_vm1, %v7785_v2 }
 0xe44   : > { %v4018_v29 = vpop.f32.mrb[8].mxu0  ;;  %v4064_v30 = vpop.f32.mrb[36].mxu1 }
 0xe45   : > { %v4162_v31 = vmul.f32 0.17677669, %v4018_v29  ;;  %v4163_v33 = vmul.f32 0.17677669, %v4064_v30  ;;  %v6050_v34 = vpop.f32.mrb[9].mxu0  ;;  %v6056_v35 = vpop.f32.mrb[37].mxu1 }
 0xe46   : > { %v4021_v36 = vpop.f32.mrb[10].mxu0  ;;  %v4067_v37 = vpop.f32.mrb[38].mxu1 }
 0xe47   : > { %v6051_v38 = vpop.f32.mrb[11].mxu0  ;;  %v6057_v39 = vpop.f32.mrb[39].mxu1  ;;  %v4167_v40 = vadd.f32 %v4163_v33, %v3529_v11  ;;  %v4166_v41 = vadd.f32 %v4162_v31, %v3529_v11 }
 0xe49   : > { %v4174_v42 = vsel %vm4170_vm6, %v4167_v40, -inf  ;;  %v4171_v43 = vsel %vm4170_vm6, %v4166_v41, -inf }
 0xe4a   : > { %4175 = vmax.xlane.f32.xlu1 %v4174_v42  ;;  %4172 = vmax.xlane.f32.xlu0 %v4171_v43 }
 0xe4c   : > { %v4110_v44 = vpop.f32.mrb[12].mxu0  ;;  %v4156_v45 = vpop.f32.mrb[40].mxu1 }
 0xe4d   : > { %v4164_v48 = vmul.f32 0.17677669, %v4110_v44  ;;  %v4165_v49 = vmul.f32 0.17677669, %v4156_v45  ;;  %v6062_v50 = vpop.f32.mrb[13].mxu0  ;;  %v6068_v51 = vpop.f32.mrb[41].mxu1 }
 0xe4e   : > { %v4113_v52 = vpop.f32.mrb[14].mxu0  ;;  %v4159_v12 = vpop.f32.mrb[42].mxu1 }
 0xe4f   : > { %v6063_v53 = vpop.f32.mrb[15].mxu0  ;;  %v6069_v54 = vpop.f32.mrb[43].mxu1  ;;  %v4168_v55 = vadd.f32 %v4164_v48, %v3529_v11  ;;  %v4169_v57 = vadd.f32 %v4165_v49, %v3529_v11 }
 0xe51   : > { %v4177_v56 = vsel %vm4170_vm6, %v4168_v55, -inf  ;;  %v4180_v58 = vsel %vm4170_vm6, %v4169_v57, -inf }
 0xe52   : > { %4178 = vmax.xlane.f32.xlu0 %v4177_v56 }
 0xe56   : > { %4181 = vmax.xlane.f32.xlu0 %v4180_v58 }
 0xe5b   : > { %3830 = vrot.lane.b32.xlu1 %v3528_v15, %s7787_s19 }
 0xed7   : > { %v4176_v59 = vpop.xlane.xlu1 %4175  ;;  %v4173_v60 = vpop.xlane.xlu0 %4172 }
 0xed8   : > { %v4184_v61 = vsub.f32 %v4167_v40, %v4176_v59  ;;  %v4183_v62 = vsub.f32 %v4166_v41, %v4173_v60 }
 0xeda   : > { %v4189_v63 = vmul.f32 1.442695, %v4184_v61  ;;  %v4187_v23 = vmul.f32 1.442695, %v4183_v62 }
 0xedb   : > { %v3831_v16 = vpop.permute.xlu1 %3830 }
 0xedc   : > { %6659 = vpow2.f32 %v4189_v63  ;;  %v3840_v21 = vshrl.u32 %v3831_v16, 16  ;;  %v3838_v24 = vpack.i.b16 %v3831_v16, %v3528_v15 }
 0xedd   : > { %6661 = vpow2.f32 %v4187_v23 }
 0xede   : > { %v3841_v30 = vpack.i.b16 %v3840_v21, %v3839_v19  ;;  %v3855_v33 = vrot.slane %v3838_v24, %v8743_v32 }
 0xedf   : > { %v4179_v4 = vpop.xlane.xlu0 %4178 }
 0xee0   : > { %v4185_v6 = vsub.f32 %v4168_v55, %v4179_v4  ;;  %v3889_v36 = vrot.slane %v3841_v30, %v8743_v32  ;;  %v6593_v30 = vld [vmem:[#allocation38] sm:$0xff]  }
 0xee2   : > { %v4191_v8 = vmul.f32 1.442695, %v4185_v6 }
 0xee3   : > { %v4182_v20 = vpop.xlane.xlu0 %4181 }
 0xee4   : > { %v4186_v5 = vsub.f32 %v4169_v57, %v4182_v20 }
 0xee6   : > { %v9018_v0 = vpop.eup %6659  ;;  %v4193_v7 = vmul.f32 1.442695, %v4186_v5 }
 0xee7   : > { %v9020_v27 = vpop.eup %6661  ;;  %v4198_v1 = vsel %vm4170_vm6, %v9018_v0, 0.0 }
 0xee8   : > { %v4195_v3 = vsel %vm4170_vm6, %v9020_v27, 0.0  ;;  %4199 = vadd.xlane.f32.xlu0 %v4198_v1  ;;  %6663 = vpow2.f32 %v4193_v7 }
 0xee9   : > { %4196 = vadd.xlane.f32.xlu1 %v4195_v3  ;;  %6665 = vpow2.f32 %v4191_v8 }
 0xef2   : > { %v9028_v9 = vpop.eup %6663 }
 0xef3   : > { %v9030_v10 = vpop.eup %6665  ;;  %v4204_v13 = vsel %vm4170_vm6, %v9028_v9, 0.0 }
 0xef4   : > { %v4201_v14 = vsel %vm4170_vm6, %v9030_v10, 0.0 }
 0xefa   : > { %3834 = vrot.lane.b32.xlu1 %v3528_v15, %s7788_s4 }
 0xefe   : > { %3832 = vrot.lane.b32.xlu0 %v3528_v15, %s7789_s18 }
 0xf1d   : > { %4205 = vadd.xlane.f32.xlu0 %v4204_v13 }
 0xf1e   : > { %4202 = vadd.xlane.f32.xlu1 %v4201_v14 }
 0xf75   : > { %v4200_v17 = vpop.xlane.xlu0 %4199 }
 0xf76   : > { %v4197_v18 = vpop.xlane.xlu1 %4196 }
 0xf77   : > { %6667 = vrcp.f32 %v4197_v18 }
 0xf78   : > { %6669 = vrcp.f32 %v4200_v17 }
 0xf79   : > { %v3833_v25 = vpop.permute.xlu0 %3832 }
 0xf7a   : > { %v3835_v28 = vpop.permute.xlu1 %3834  ;;  %v3845_v29 = vshrl.u32 %v3833_v25, 16 }
 0xf7b   : > { %v3846_v11 = vshrl.u32 %v3835_v28, 16  ;;  %v3844_v31 = vpack.i.b16 %v3835_v28, %v3833_v25 }
 0xf7d   : > { %v3847_v34 = vpack.i.b16 %v3846_v11, %v3845_v29  ;;  %v3863_v35 = vrot.slane %v3844_v31, %v8743_v32  ;;  %v6594_v11 = vld [vmem:[#allocation38 + $0x8] sm:$0xff]   ;;  %v6597_v31 = vld [vmem:[#allocation38 + $0x20] sm:$0xff]  }
 0xf7f   : > { %v3864_v37 = vcombine.low %v3855_v33, %v3863_v35  ;;  %v3865_v38 = vcombine.high %v3855_v33, %v3863_v35  ;;  %v3897_v39 = vrot.slane %v3847_v34, %v8743_v32 }
 0xf81   : > { %v3872_v40 = vrot.slane %v3864_v37, %v8758_v46  ;;  %v3879_v41 = vrot.slane %v3865_v38, %v8758_v46  ;;  %v3898_v42 = vcombine.low %v3889_v36, %v3897_v39  ;;  %v3899_v43 = vcombine.high %v3889_v36, %v3897_v39  ;;  %v6668_v57 = vpop.eup %6667 }
 0xf82   : > { %v6670_v59 = vpop.eup %6669  ;;  %v4211_v61 = vmul.f32 %v6668_v57, %v9020_v27 }
 0xf83   : > { %v3906_v44 = vrot.slane %v3898_v42, %v8758_v46  ;;  %v3916_v45 = vcombine.low %v3872_v40, %v3879_v41  ;;  %v5668_v48 = vcombine.high %v3872_v40, %v3879_v41  ;;  %v3913_v49 = vrot.slane %v3899_v43, %v8758_v46 }
 0xf84   : > { %v4212_v3 = vmul.f32 %v6670_v59, %v9018_v0  ;;  %v4215_v13 = vpack.c.bf16 %v4211_v61, %v4211_v61  ;;  %v6599_v61 = vld [vmem:[#allocation38 + $0x30] sm:$0xff]  }
 0xf85   : > { %v3923_v50 = vrot.slane %v3916_v45, %v8743_v32  ;;  %v3931_v51 = vrot.slane %v5668_v48, %v8743_v32  ;;  %v3941_v52 = vcombine.low %v3906_v44, %v3913_v49  ;;  %v5669_v12 = vcombine.high %v3906_v44, %v3913_v49 }
 0xf86   : > { %v4216_v16 = vpack.c.bf16 %v4212_v3, %v4212_v3 }
 0xf87   : > { %v3932_v53 = vcombine.low %v3923_v50, %v3931_v51  ;;  %v3948_v54 = vrot.slane %v3941_v52, %v8743_v32  ;;  %v3956_v55 = vrot.slane %v5669_v12, %v8743_v32 }
 0xf89   : > { %v3939_v56 = vrot.slane %v3932_v53, %v8758_v46  ;;  %v3957_v58 = vcombine.low %v3948_v54, %v3956_v55 }
 0xf8b   : > { %v3940_v15 = vcombine.high %v3939_v56, %v7791_v22  ;;  %v3964_v60 = vrot.slane %v3957_v58, %v8758_v46  ;;  %v3969_v63 = vshrl.u32 %v3939_v56, 16 }
 0xf8d   : > { %v3968_v62 = vpack.i.b16 %v3964_v60, %v3939_v56  ;;  %v3970_v23 = vshrl.u32 %v3964_v60, 16  ;;  %v3965_v1 = vcombine.high %v3964_v60, %v7791_v22  ;;  %v3975_v4 = vshrl.u32 %v3940_v15, 16 }
 0xf8f   : > { %v4224_v20 = vsel %vm4222_vm7, %v3968_v62, 0  ;;  %v3971_v5 = vpack.i.b16 %v3970_v23, %v3969_v63  ;;  %v3974_v6 = vpack.i.b16 %v3965_v1, %v3940_v15  ;;  %v3976_v7 = vshrl.u32 %v3965_v1, 16 }
 0xf90   : > { %6071 = vmatpush3.bf16.msra.mxu0 %v4224_v20 }
 0xf91   : > { %v4270_v8 = vsel %vm4222_vm7, %v3971_v5, 0  ;;  %6082 = vmatprep.subr.bf16.mxu0 %v7785_v2  ;;  %v3977_v27 = vpack.i.b16 %v3976_v7, %v3975_v4  ;;  %v4316_v14 = vsel %vm4222_vm7, %v3974_v6, 0  ;;  %v6600_v6 = vld [vmem:[#allocation38 + $0x38] sm:$0xff]  }
 0xf92   : > { %6077 = vmatpush3.bf16.msra.mxu1 %v4270_v8 }
 0xf93   : > { %6073 = vmatmul.mubr.msk.bf16.vlgmr.msra.gmra.mrb[16].mxu0 %vm4170_vm6, %v4215_v13  ;;  %6088 = vmatprep.subr.bf16.mxu1 %v7785_v2  ;;  %v4362_v0 = vsel %vm4222_vm7, %v3977_v27, 0 }
 0xf94   : > { %6083 = vmatpush3.bf16.msra.mxu0 %v4316_v14  ;;  %6084 = vmatprep.mubr.msk.bf16.mxu0 %vm7786_vm1, %v7785_v2 }
 0xf95   : > { %6079 = vmatmul.mubr.msk.bf16.vlgmr.msra.gmra.mrb[44].mxu1 %vm4170_vm6, %v4216_v16  ;;  %6094 = vmatprep.subr.bf16.mxu0 %v7785_v2 }
 0xf96   : > { %6089 = vmatpush3.bf16.msra.mxu1 %v4362_v0  ;;  %6090 = vmatprep.mubr.msk.bf16.mxu1 %vm7786_vm1, %v7785_v2 }
 0xfaa   : > { %v4206_v17 = vpop.xlane.xlu0 %4205 }
 0xfab   : > { %v4203_v18 = vpop.xlane.xlu1 %4202  ;;  %6671 = vrcp.f32 %v4206_v17 }
 0xfac   : > { %6673 = vrcp.f32 %v4203_v18 }
 0xfb5   : > { %v6672_v19 = vpop.eup %6671 }
 0xfb6   : > { %v6674_v21 = vpop.eup %6673  ;;  %v4214_v24 = vmul.f32 %v6672_v19, %v9028_v9  ;;  %v6595_v9 = vld [vmem:[#allocation38 + $0x10] sm:$0xff]  }
 0xfb7   : > { %v4213_v25 = vmul.f32 %v6674_v21, %v9030_v10  ;;  %v6596_v10 = vld [vmem:[#allocation38 + $0x18] sm:$0xff]  }
 0xfb8   : > { %v4218_v28 = vpack.c.bf16 %v4214_v24, %v4214_v24 }
 0xfb9   : > { %v4217_v29 = vpack.c.bf16 %v4213_v25, %v4213_v25 }
 0xfba   : > { %6091 = vmatmul.mubr.msk.bf16.vlgmr.msra.gmra.mrb[48].mxu1 %vm4170_vm6, %v4218_v28 }
 0xfbb   : > { %6085 = vmatmul.mubr.msk.bf16.vlgmr.msra.gmra.mrb[20].mxu0 %vm4170_vm6, %v4217_v29  ;;  %4836 = vmatprep.mubr.bf16.mxu1 %v7791_v22  ;;  %v6598_v22 = vld [vmem:[#allocation38 + $0x28] sm:$0xff]  }
 0xfbc   : > { %6110 = vmatprep.mubr.msk.bf16.mxu0 %vm7786_vm1, %v7785_v2  ;;  %6095 = vmatpush3.bf16.msra.mxu0 %v6593_v30 }
 0xfbd   : > { %6096 = vmatprep.subr.bf16.mxu0 %v7785_v2 }
 0xfc0   : > { %6097 = vmatpush3.bf16.msra.mxu0 %v6594_v11 }
 0xfc1   : > { %6098 = vmatprep.subr.bf16.mxu0 %v7785_v2 }
 0xfc4   : > { %6099 = vmatpush3.bf16.msra.mxu0 %v6595_v9 }
 0xfc5   : > { %6100 = vmatprep.subr.bf16.mxu0 %v7785_v2 }
 0xfc8   : > { %6101 = vmatpush3.bf16.msra.mxu0 %v6596_v10 }
 0xfc9   : > { %6102 = vmatprep.subr.bf16.mxu0 %v7785_v2 }
 0xfcc   : > { %6103 = vmatpush3.bf16.msra.mxu0 %v6597_v31 }
 0xfcd   : > { %6104 = vmatprep.subr.bf16.mxu0 %v7785_v2 }
 0xfd0   : > { %6105 = vmatpush3.bf16.msra.mxu0 %v6598_v22  ;;  %v5680_v22 = vld [vmem:[#allocation39] ss:$0 sm:$0xff] }
 0xfd1   : > { %6106 = vmatprep.subr.bf16.mxu0 %v7785_v2 }
 0xfd4   : > { %6107 = vmatpush3.bf16.msra.mxu0 %v6599_v61  ;;  %v6628_v61 = vld [vmem:[#allocation47 + $0x8] sm:$0xff]  }
 0xfd5   : > { %6108 = vmatprep.subr.bf16.mxu0 %v7785_v2 }
 0xfd8   : > { %6109 = vmatpush3.bf16.msra.mxu0 %v6600_v6 }
0x1066   : > { %v4260_v33 = vpop.f32.mrb[16].mxu0 }
0x1067   : > { %v6074_v34 = vpop.f32.mrb[17].mxu0 }
0x1068   : > { %v4263_v35 = vpop.f32.mrb[18].mxu0  ;;  %v4306_v36 = vpop.f32.mrb[44].mxu1 }
0x1069   : > { %v6075_v37 = vpop.f32.mrb[19].mxu0  ;;  %v6080_v38 = vpop.f32.mrb[45].mxu1 }
0x106a   : > { %v4309_v39 = vpop.f32.mrb[46].mxu1 }
0x106b   : > { %v6081_v40 = vpop.f32.mrb[47].mxu1  ;;  %v6601_v39 = vld [vmem:[#allocation44] ss:$8 sps:$4 sm:$0xff]  }
0x106c   : > { %v6603_v40 = vld [vmem:[#allocation44 + $0x4] ss:$8 sps:$4 sm:$0xff]  }
0x106d   : > { %4804 = vmatprep.subr.bf16.mxu1 %v6603_v40 }
0x106e   : > { %4805 = vmatpush1.bf16.msra.mxu1 %v6601_v39 }
0x108d   : > { %v4398_v41 = vpop.f32.mrb[48].mxu1 }
0x108e   : > { %v4352_v42 = vpop.f32.mrb[20].mxu0  ;;  %v4420_v43 = vcombine.low %v4306_v36, %v4398_v41  ;;  %v4421_v44 = vcombine.high %v4306_v36, %v4398_v41  ;;  %v6092_v45 = vpop.f32.mrb[49].mxu1  ;;  %v6606_v41 = vld [vmem:[#allocation44 + $0x14] ss:$8 sps:$4 sm:$0xff]  }
0x108f   : > { %v4404_v48 = vcombine.low %v4260_v33, %v4352_v42  ;;  %v4405_v49 = vcombine.high %v4260_v33, %v4352_v42  ;;  %v6086_v50 = vpop.f32.mrb[21].mxu0  ;;  %v4401_v51 = vpop.f32.mrb[50].mxu1  ;;  %v6604_v42 = vld [vmem:[#allocation44 + $0x10] ss:$8 sps:$4 sm:$0xff]   ;;  %4806 = vmatprep.subr.bf16.mxu1 %v6606_v41 }
0x1090   : > { %v4428_v52 = vrot.slane %v4420_v43, %v8743_v32  ;;  %v4435_v12 = vrot.slane %v4421_v44, %v8743_v32  ;;  %v4355_v53 = vpop.f32.mrb[22].mxu0  ;;  %v6093_v54 = vpop.f32.mrb[51].mxu1  ;;  %v6609_v43 = vld [vmem:[#allocation44 + $0x24] ss:$8 sps:$4 sm:$0xff]   ;;  %4807 = vmatpush1.bf16.msra.mxu1 %v6604_v42  ;;  %v6607_v44 = vld [vmem:[#allocation44 + $0x20] ss:$8 sps:$4 sm:$0xff]  }
0x1091   : > { %v4412_v55 = vrot.slane %v4404_v48, %v8743_v32  ;;  %v4419_v56 = vrot.slane %v4405_v49, %v8743_v32  ;;  %v6087_v57 = vpop.f32.mrb[23].mxu0  ;;  %4808 = vmatprep.subr.bf16.mxu1 %v6609_v43  ;;  %v6612_v51 = vld [vmem:[#allocation44 + $0x34] ss:$8 sps:$4 sm:$0xff]   ;;  %v6616_v54 = vld [vmem:[#allocation44 + $0x50] ss:$8 sps:$4 sm:$0xff]  }
0x1092   : > { %v6618_v53 = vld [vmem:[#allocation44 + $0x54] ss:$8 sps:$4 sm:$0xff]  }
0x1093   : > { %v4436_v58 = vcombine.low %v4412_v55, %v4428_v52  ;;  %v4437_v15 = vcombine.high %v4412_v55, %v4428_v52  ;;  %v4452_v59 = vcombine.low %v4419_v56, %v4435_v12  ;;  %v4453_v60 = vcombine.high %v4419_v56, %v4435_v12  ;;  %v6615_v52 = vld [vmem:[#allocation44 + $0x44] ss:$8 sps:$4 sm:$0xff]   ;;  %v6613_v12 = vld [vmem:[#allocation44 + $0x40] ss:$8 sps:$4 sm:$0xff]   ;;  %v6624_v57 = vld [vmem:[#allocation44 + $0x74] ss:$8 sps:$4 sm:$0xff]  }
0x1094   : > { %4809 = vmatpush1.bf16.msra.mxu1 %v6607_v44  ;;  %v6619_v55 = vld [vmem:[#allocation44 + $0x60] ss:$8 sps:$4 sm:$0xff]   ;;  %v6621_v56 = vld [vmem:[#allocation44 + $0x64] ss:$8 sps:$4 sm:$0xff]  }
0x1095   : > { %v4444_v62 = vrot.slane %v4436_v58, %v8758_v46  ;;  %v4451_v63 = vrot.slane %v4437_v15, %v8758_v46  ;;  %v4460_v23 = vrot.slane %v4452_v59, %v8758_v46  ;;  %v4467_v1 = vrot.slane %v4453_v60, %v8758_v46  ;;  %4810 = vmatprep.subr.bf16.mxu1 %v6612_v51  ;;  %v6622_v58 = vld [vmem:[#allocation44 + $0x70] ss:$8 sps:$4 sm:$0xff]   ;;  %v6625_v15 = vld [vmem:[#allocation47 + $0x40] sm:$0xff]  }
0x1096   : > { %v6626_v59 = vld [vmem:[#allocation47] sm:$0xff]   ;;  %v6627_v60 = vld [vmem:[#allocation47 + $0x48] sm:$0xff]   ;;  %5836 = vmatprep.subr.bf16.mxu0 %v6625_v15 }
0x1097   : > { %v4472_v3 = vcombine.low %v4444_v62, %v4451_v63  ;;  %v5678_v4 = vcombine.high %v4444_v62, %v4451_v63  ;;  %v4488_v20 = vcombine.low %v4460_v23, %v4467_v1  ;;  %v5679_v5 = vcombine.high %v4460_v23, %v4467_v1  ;;  %v6629_v62 = vld [vmem:[#allocation47 + $0x50] sm:$0xff]   ;;  %v6631_v23 = vld [vmem:[#allocation47 + $0x58] sm:$0xff]  }
0x1098   : > { %v6630_v63 = vld [vmem:[#allocation47 + $0x10] sm:$0xff]   ;;  %v6632_v1 = vld [vmem:[#allocation47 + $0x18] sm:$0xff]  }
0x1099   : > { %v4479_v7 = vrot.slane %v4472_v3, %v8743_v32  ;;  %v4487_v8 = vrot.slane %v5678_v4, %v8743_v32  ;;  %v4495_v13 = vrot.slane %v4488_v20, %v8743_v32  ;;  %v4503_v27 = vrot.slane %v5679_v5, %v8743_v32  ;;  %v6633_v3 = vld [vmem:[#allocation47 + $0x60] sm:$0xff]   ;;  %v6635_v20 = vld [vmem:[#allocation47 + $0x68] sm:$0xff]  }
0x109a   : > { %v6634_v4 = vld [vmem:[#allocation47 + $0x20] sm:$0xff]   ;;  %v6636_v5 = vld [vmem:[#allocation47 + $0x28] sm:$0xff]  }
0x109b   : > { %v4505_v14 = vcombine.high %v4479_v7, %v4487_v8  ;;  %v4521_v16 = vcombine.high %v4495_v13, %v4503_v27  ;;  %v4504_v0 = vcombine.low %v4479_v7, %v4487_v8  ;;  %v4520_v17 = vcombine.low %v4495_v13, %v4503_v27  ;;  %v5689_v27 = vld [vmem:[#allocation41] ss:$0 sm:$0xff] }
0x109d   : > { %v4519_v18 = vrot.slane %v4505_v14, %v8758_v46  ;;  %v4535_v19 = vrot.slane %v4521_v16, %v8758_v46  ;;  %v4512_v2 = vrot.slane %v4504_v0, %v8758_v46  ;;  %v4528_v21 = vrot.slane %v4520_v17, %v8758_v46  ;;  %v5690_v16 = vld [vmem:[#allocation42] ss:$0 sm:$0xff] }
0x109f   : > { %v4538_v24 = vcombine.low %v4519_v18, %v4535_v19  ;;  %v4537_v25 = vcombine.high %v4512_v2, %v4528_v21  ;;  %v4539_v28 = vcombine.high %v4519_v18, %v4535_v19  ;;  %v4536_v29 = vcombine.low %v4512_v2, %v4528_v21  ;;  %v6637_v19 = vld [vmem:[#allocation47 + $0x70] sm:$0xff]   ;;  %v6639_v21 = vld [vmem:[#allocation47 + $0x78] sm:$0xff]  }
0x10a0   : > { %v6638_v2 = vld [vmem:[#allocation47 + $0x30] sm:$0xff]  }
0x10a1   : > { %4545 = vrot.lane.b32.xlu1 %v4538_v24, %s7789_s18  ;;  %4541 = vrot.lane.b32.xlu0 %v4537_v25, %s7788_s4  ;;  %v6640_v24 = vld [vmem:[#allocation47 + $0x38] sm:$0xff]   ;;  %v4716_v25 = vsub.s32 0, %v8740_v26 }
0x10a5   : > { %4549 = vrot.lane.b32.xlu1 %v4539_v28, %s7787_s19  ;;  %v4712_v28 = vld [vmem:[#allocation45] sm:$0x3]  ;;  %s7533_s19 = scalar_lea.vmem %s7532_s3, 128 }
0x10a6   : > { %p7535_p12 = scmp.lt.s32.totalorder %s7533_s19, %s7527_s27 }
0x10a8   : > { %p7536_p2 = por %p7535_p12, %p7534_p1 }
0x10aa   : > { %p7537_p5 = pnand %p7536_p2, %p7530_p10 }
0x1113   : > { %v4546_v32 = vpop.permute.xlu1 %4545  ;;  %v4542_v30 = vpop.permute.xlu0 %4541 }
0x1114   : > { %v4552_v11 = vsel %vm2707_vm2, %v4536_v29, %v4542_v30  ;;  %v4720_v29 = vsub.s32 1, %v8740_v26 }
0x1115   : > { %v4553_v10 = vsel %vm3270_vm4, %v4552_v11, %v4546_v32  ;;  %v4717_v32 = vrot.slane %v4712_v28, %v4716_v25 }
0x1116   : > { %v4721_v30 = vrot.slane %v4712_v28, %v4720_v29 }
0x1117   : > { %v4550_v9 = vpop.permute.xlu1 %4549 }
0x1118   : > { %v4554_v31 = vsel %vm3272_vm5, %v4553_v10, %v4550_v9 }
0x1119   : > { %v4555_v46 = vpack.c.bf16 %v4554_v31, %v4554_v31 }
0x111b   : > { %6111 = vmatmul.mubr.bf16.vlgmr.msra.gmra.mrb[24].mxu0 %v4555_v46 }
0x111c   : > { %5837 = vmatpush3.bf16.msra.mxu0 %v6626_v59 }
0x111d   : > { %5838 = vmatprep.subr.bf16.mxu0 %v6627_v60 }
0x1120   : > { %5839 = vmatpush3.bf16.msra.mxu0 %v6628_v61 }
0x1121   : > { %5840 = vmatprep.subr.bf16.mxu0 %v6629_v62 }
0x1124   : > { %5841 = vmatpush3.bf16.msra.mxu0 %v6630_v63 }
0x1125   : > { %5842 = vmatprep.subr.bf16.mxu0 %v6631_v23 }
0x1128   : > { %5843 = vmatpush3.bf16.msra.mxu0 %v6632_v1 }
0x1129   : > { %5844 = vmatprep.subr.bf16.mxu0 %v6633_v3 }
0x112c   : > { %5845 = vmatpush3.bf16.msra.mxu0 %v6634_v4 }
0x112d   : > { %5846 = vmatprep.subr.bf16.mxu0 %v6635_v20 }
0x1130   : > { %5847 = vmatpush3.bf16.msra.mxu0 %v6636_v5 }
0x1131   : > { %5848 = vmatprep.subr.bf16.mxu0 %v6637_v19 }
0x1134   : > { %5849 = vmatpush3.bf16.msra.mxu0 %v6638_v2 }
0x1135   : > { %5850 = vmatprep.subr.bf16.mxu0 %v6639_v21 }
0x1138   : > { %5851 = vmatpush3.bf16.msra.mxu0 %v6640_v24 }
0x11ee   : > { %v4661_v33 = vpop.f32.mrb[24].mxu0 }
0x11ef   : > { %v4662_v34 = vadd.f32 %v5680_v22, %v4661_v33  ;;  %v6112_v35 = vpop.f32.mrb[25].mxu0 }
0x11f0   : > { %v4664_v36 = vpop.f32.mrb[26].mxu0 }
0x11f1   : > { %v6113_v37 = vpop.f32.mrb[27].mxu0  ;;  %v4667_v38 = vadd.f32 %v4662_v34, %v8947_v47  ;;  %v6610_v47 = vld [vmem:[#allocation44 + $0x30] ss:$8 sps:$4 sm:$0xff]  }
0x11f2   : > { %4811 = vmatpush1.bf16.msra.mxu1 %v6610_v47 }
0x11f3   : > { %4670 = vadd.xlane.f32.xlu0 %v4667_v38  ;;  %4812 = vmatprep.subr.bf16.mxu1 %v6615_v52 }
0x11f6   : > { %4813 = vmatpush1.bf16.msra.mxu1 %v6613_v12  ;;  %v5724_v12 = vld [vmem:[#allocation50] ss:$0 sm:$0xff] }
0x11f7   : > { %4814 = vmatprep.subr.bf16.mxu1 %v6618_v53 }
0x11fa   : > { %4815 = vmatpush1.bf16.msra.mxu1 %v6616_v54  ;;  %v5725_v54 = vld [vmem:[#allocation51] ss:$0 sm:$0xff] }
0x11fb   : > { %4816 = vmatprep.subr.bf16.mxu1 %v6621_v56 }
0x11fe   : > { %4817 = vmatpush1.bf16.msra.mxu1 %v6619_v55 }
0x11ff   : > { %4818 = vmatprep.subr.bf16.mxu1 %v6624_v57 }
0x1202   : > { %4819 = vmatpush1.bf16.msra.mxu1 %v6622_v58 }
0x1280   : > { %v4671_v45 = vpop.xlane.xlu0 %4670 }
0x1281   : > { %v4672_v48 = vmul.f32 0.0078125, %v4671_v45 }
0x1283   : > { %v4673_v49 = vsub.f32 %v4667_v38, %v4672_v48  ;;  %v5707_v38 = vld [vmem:[#allocation48] ss:$0 sm:$0xff] }
0x1285   : > { %v4674_v50 = vmul.f32 %v4673_v49, %v4673_v49 }
0x1287   : > { %4675 = vadd.xlane.f32.xlu1 %v4674_v50 }
0x1314   : > { %v4676_v6 = vpop.xlane.xlu1 %4675 }
0x1315   : > { %v4677_v7 = vmul.f32 0.0078125, %v4676_v6 }
0x1317   : > { %v4678_v8 = vadd.f32 1e-12, %v4677_v7 }
0x1319   : > { %6675 = vrsqrt.f32 %v4678_v8 }
0x1323   : > { %v6676_v13 = vpop.eup %6675 }
0x1324   : > { %v4680_v14 = vmul.f32 %v6676_v13, %v4673_v49 }
0x1326   : > { %v4687_v0 = vmul.f32 %v5689_v27, %v4680_v14 }
0x1328   : > { %v4694_v17 = vadd.f32 %v5690_v16, %v4687_v0 }
0x132a   : > { %v4695_v18 = vpack.c.bf16 %v4694_v17, %v4694_v17 }
0x132c   : > { %4837 = vmatmul.mubr.bf16.vlgmr.msra.gmra.mrb[52].mxu1 %v4695_v18 }
0x13ff   : > { %v4838_v11 = vpop.f32.mrb[52].mxu1 }
0x1400   : > { %v4839_v9 = vadd.f32 %v4838_v11, %v4717_v32  ;;  %v4840_v10 = vpop.f32.mrb[53].mxu1 }
0x1401   : > { %v4841_v31 = vadd.f32 %v4840_v10, %v4721_v30  ;;  %v4842_v46 = vpop.f32.mrb[54].mxu1 }
0x1402   : > { %v4845_v22 = vmax.f32 %v4839_v9, 0.0  ;;  %v4843_v33 = vpop.f32.mrb[55].mxu1 }
0x1403   : > { %v4846_v34 = vmax.f32 %v4841_v31, 0.0 }
0x1404   : > { %v4847_v36 = vpack.c.bf16 %v4845_v22, %v4845_v22 }
0x1405   : > { %v4848_v35 = vpack.c.bf16 %v4846_v34, %v4846_v34 }
0x1407   : > { %5016 = vmatprep.mubr.bf16.mxu0 %v4848_v35 }
0x1408   : > { %5017 = vmatmul.mubr.bf16.vlgmr.msra.gmra.mrb[28].mxu0 %v4847_v36 }
0x14db   : > { %v5852_v37 = vpop.f32.mrb[28].mxu0 }
0x14dc   : > { %v5853_v39 = vpop.f32.mrb[29].mxu0 }
0x14dd   : > { %v5854_v40 = vadd.f32 %v5853_v39, %v5852_v37  ;;  %v5855_v26 = vpop.f32.mrb[30].mxu0 }
0x14de   : > { %v5856_v41 = vpop.f32.mrb[31].mxu0 }
0x14df   : > { %v5019_v42 = vadd.f32 %v5854_v40, %v5707_v38 }
0x14e1   : > { %v5024_v43 = vadd.f32 %v5019_v42, %v4694_v17 }
0x14e3   : > { %5027 = vadd.xlane.f32.xlu0 %v5024_v43 }
0x1570   : > { %v5028_v44 = vpop.xlane.xlu0 %5027 }
0x1571   : > { %v5029_v45 = vmul.f32 0.0078125, %v5028_v44 }
0x1573   : > { %v5030_v48 = vsub.f32 %v5024_v43, %v5029_v45 }
0x1575   : > { %v5031_v49 = vmul.f32 %v5030_v48, %v5030_v48 }
0x1577   : > { %5032 = vadd.xlane.f32.xlu0 %v5031_v49 }
0x1604   : > { %v5033_v50 = vpop.xlane.xlu0 %5032 }
0x1605   : > { %v5034_v51 = vmul.f32 0.0078125, %v5033_v50 }
0x1607   : > { %v5035_v47 = vadd.f32 1e-12, %v5034_v51 }
0x1609   : > { %6677 = vrsqrt.f32 %v5035_v47 }
0x1613   : > { %v6678_v52 = vpop.eup %6677 }
0x1614   : > { %v5037_v53 = vmul.f32 %v6678_v52, %v5030_v48 }
0x1616   : > { %v5044_v55 = vmul.f32 %v5724_v12, %v5037_v53 }
0x1618   : > { %v5051_v56 = vadd.f32 %v5725_v54, %v5044_v55 }
0x161a   : > { %v5052_v57 = vpack.c.bf16 %v5051_v56, %v5051_v56 }
0x161c   : > { %5053 = vst [vmem:[%s8667_s1] sm:$0xf] %v5052_v57 }
0x161d   : > { %7540 = shalt.err (!%p7537_p5)
}
0x161e   : > { %s7541_s11 = scalar_lea.hbm %s9110_s13, 64  ;;  %s7545_s1 = scalar_lea.hbm %s9367_s20, 256 }
0x161f   : > { %p7542_p0 = scmp.ne.s32.totalorder %s9110_s13, %s7541_s11  ;;  %p7546_p8 = scmp.lt.u32.totalorder %s9110_s13, %s9367_s20 }
0x1620   : > { %p7547_p3 = scmp.lt.u32.totalorder %s7545_s1, %s7541_s11  ;;  %p7549_p9 = scmp.lt.u32.totalorder %s7541_s11, %s9110_s13 }
0x1621   : > { %p7543_p4 = pnand %p7542_p0, %p9368_p13 }
0x1622   : > { %p7548_p7 = por %p7547_p3, %p7546_p8 }
0x1623   : > { %p7544_p11 = pneg %p7543_p4 }
0x1624   : > { %p7550_p6 = por %p7549_p9, %p7548_p7 }
0x1626   : > { %p7551_p10 = pnand %p7550_p6, %p7544_p11 }
0x1628   : > { %7554 = shalt.err (!%p7551_p10)
}
0x1629   : > { %6226 = dma.vmem_to_hbm [thread:$0]  (%p9368_p13), %s9112_s29, 64, %s9110_s13, %s5055_s2  }
0x162a PF: > { %p6377_p1 = scmp.ge.s32.totalorder %s7717_s7, 2  ;;  %s5082_s4 = sand.u32 1, %s7677_s0  }
0x162b   : > { %p9369_p12 = scmp.ne.s32.totalorder %s9299_s28, 0  ;;  %s5083_s18 = scalar_lea.sflag [#allocation8], %s5082_s4 }
0x162d   : > { %p6321_p2 = pnand %p6377_p1, %p9369_p12 }
0x162f   : > { %7672 = dma.done.wait (!%p6321_p2), %s5083_s18, 64  }
0x1630   : > { %7674 = vsyncadd (!%p6321_p2), %s5083_s18, 4294967232  ;;  %s96_s7 = sadd.s32 1, %s7717_s7   ;;  %s9370_s26 = sld [smem:[#allocation106_spill]] }
0x1631   : > { %p93_p5 = scmp.ge.s32.totalorder %s96_s7, 6   ;;  %s9371_s28 = sld [smem:[#allocation107_spill]] }
0x1632   : > { %s9372_s0 = smov %s7681_s15  ;;  %s9373_s15 = smov %s7685_s16 }
0x1633   : > { %s9374_s16 = smov %s8536_s24  ;;  %s9375_s18 = smov %s7693_s22 }
0x1634   : > { %s9376_s22 = smov %s7697_s23  ;;  %s9377_s23 = smov %s8533_s30 }
0x1635   : > { %s9378_s1 = smov %s9381_s25  ;;  %s9379_s2 = smov %s9385_s12 }
0x1636   :  { %95 = sbr.rel (!%p93_p5) target bundleno = 94 (0x5e), region = 361 }
0x163d   :  { %5088 = vsyncpa [#allocation7], 1 }
0x163e   :  { %5090 = vsyncpa [#allocation7 + $0x1], 1 }
0x163f   :  { %5091 = vsyncpa [#allocation10], 1 }
0x1640   :  { %5093 = vsyncpa [#allocation10 + $0x1], 1 }
0x1641   :  { %5094 = vsyncpa [#allocation13], 1 }
0x1642   :  { %5096 = vsyncpa [#allocation13 + $0x1], 1 }
0x1643   :  { %5097 = vsyncpa [#allocation16], 1 }
0x1644   :  { %5098 = vsyncpa [#allocation19], 1 }
0x1645   :  { %5099 = vsyncpa [#allocation22], 1 }
0x1646   :  { %5100 = vsyncpa [#allocation25], 1 }
0x1647   :  { %5101 = vsyncpa [#allocation28], 1 }
0x1648   :  { %5102 = vsyncpa [#allocation31], 1 }
0x1649   :  { %5103 = vsyncpa [#allocation34], 1 }
0x164a   :  { %5104 = vsyncpa [#allocation37], 1 }
0x164b   :  { %5105 = vsyncpa [#allocation40], 1 }
0x164c   :  { %5106 = vsyncpa [#allocation43], 1 }
0x164d   :  { %5107 = vsyncpa [#allocation46], 1 }
0x164e   :  { %5108 = vsyncpa [#allocation49], 1 }
0x164f   :  { %5109 = vsyncpa [#allocation52], 1 }
0x1650   :  { %5110 = vsyncpa [#allocation8], 1 }
0x1651   :  { %5112 = vsyncpa [#allocation8 + $0x1], 1 }

</bundles_post_ra>
